<compile_context>
chip_gen: v6e
topology: v6e:2x2x1
jax: 0.10.0
libtpu: 0.0.40
codegen_flags: <defaults>
</compile_context>

<pallas_src>
import functools

import jax
import jax.numpy as jnp
from jax import lax
from jax.experimental import pallas as pl
from jax.experimental.pallas import tpu as pltpu

LANE = 128


def _round_up(x, m):
    return (x + m - 1) // m * m


def bottleneck_kernel(x_ref, w1_ref, b1_ref, w2_ref, b2_ref, w3_ref, b3_ref,
                      o_ref, h1s, *, H, W, W_pad, TH, G):
    """One (image n, row-tile t) grid step.

    x_ref : ((HT+2)*W_pad, Cin_p)  bf16, full padded image, resident across t.
            Flat row of image row r, col c  =  (r + 1) * W_pad + c
            (one zero guard row-block above/below, zero tail rows, zero cols
             W..W_pad-1).
    w1_ref: (Cin_p, Wd_p)    bf16  (BN1 scale folded in)
    b1_ref: (1, Wd_p)        f32
    w2_ref: (9*Wd_p, Wd_p)   bf16  (im2col layout, BN2 scale folded in)
    b2_ref: (1, Wd_p)        f32
    w3_ref: (Wd_p, Cout_p)   bf16  (BN3 scale folded in)
    b3_ref: (1, Cout_p)      f32
    o_ref : (TH*W_pad, Cout_p)     out_dtype (bf16 by default)
    h1s   : (G + (TH+2)*W_pad + 8, Wd_p) f32 scratch: conv1 output for this
            tile's rows plus a 1-row halo; G front-guard rows keep every
            shifted tap start >= 0 (guard reads are always edge-masked).
    """
    t = pl.program_id(1)
    M = TH * W_pad                      # flat output rows in this tile
    MH = (TH + 2) * W_pad               # flat rows incl. 1-row halo each side
    rs = t * TH                         # first output image row of this tile

    # ---- conv1 (1x1) + bn1 + relu over image rows rs-1 .. rs+TH ----
    x_halo = x_ref[pl.ds(pl.multiple_of(rs * W_pad, 8), MH), :]
    h1 = jnp.dot(x_halo, w1_ref[...], preferred_element_type=jnp.float32)
    h1 = jnp.maximum(h1 + b1_ref[...], 0.0)
    # Zero every flat row whose image row is outside [0, H): the guard rows
    # and padded tail rows of x are zero, so conv1 there is relu(b1) != 0;
    # conv2's SAME zero-padding needs true zeros.
    j = lax.broadcasted_iota(jnp.int32, (MH, 1), 0)
    row_ok = jnp.logical_and(j >= (1 - rs) * W_pad,
                             j < (H - rs + 1) * W_pad)
    h1s[pl.ds(G, MH), :] = jnp.where(row_ok, h1, 0.0)

    # ---- conv2 (3x3, SAME) as ONE im2col matmul for this row tile ----
    col = lax.broadcasted_iota(jnp.int32, (M, 1), 0) % W_pad
    not_left = col >= 1                  # col-1 exists inside the image row
    not_right = col < (W - 1)            # col+1 exists inside the image row

    taps = []
    for dh in range(3):
        for dw in range(3):
            # tap[i] = h1[out_row(i) + dh - 1, out_col(i) + dw - 1]
            start = G + dh * W_pad + (dw - 1)        # static, >= G-1 >= 0
            tap = h1s[pl.ds(start, M), :]            # (M, Wd_p) f32
            if dw == 0:
                tap = jnp.where(not_left, tap, 0.0)
            elif dw == 2:
                tap = jnp.where(not_right, tap, 0.0)
            taps.append(tap.astype(jnp.bfloat16))
    patch = jnp.concatenate(taps, axis=-1)           # (M, 9*Wd_p) bf16

    h2 = jnp.dot(patch, w2_ref[...], preferred_element_type=jnp.float32)
    h2 = jnp.maximum(h2 + b2_ref[...], 0.0).astype(jnp.bfloat16)

    # ---- conv3 (1x1) + bn3 + identity residual + relu ----
    h3 = jnp.dot(h2, w3_ref[...], preferred_element_type=jnp.float32)
    res = x_ref[pl.ds(pl.multiple_of((rs + 1) * W_pad, 8), M), :]
    out = jnp.maximum(h3 + b3_ref[...] + res.astype(jnp.float32), 0.0)
    o_ref[...] = out.astype(o_ref.dtype)


def bottleneck_forward(x, w1, s1, b1, w2, s2, b2, w3, s3, b3, *,
                       out_dtype=jnp.bfloat16, row_tile_cap=256):
    """x: (N, H, W, Cin) NHWC float32; s*/b* are folded eval-mode BN params."""
    N, H, W, Cin = x.shape
    width = w1.shape[1]
    Cout = w3.shape[1]
    assert Cout == Cin, "downsample=None requires inplanes == planes*expansion"

    Cin_p = _round_up(Cin, LANE)
    Wd_p = _round_up(width, LANE)
    Cout_p = _round_up(Cout, LANE)

    # Pad each image row to a sublane-aligned width; pick the row tile.
    W_pad = _round_up(W, 8)
    TH = max(1, min(H, row_tile_cap // W_pad))
    if (TH * W_pad) % 16 != 0:           # keep bf16 output tiles (16,128) clean
        if TH > 1:
            TH -= 1
        else:
            W_pad = _round_up(W, 16)
    # TODO(synk): if W_pad > row_tile_cap (very wide images) tiles degrade to a
    #             single row; tiling within a row is not implemented.
    T = pl.cdiv(H, TH)
    HT = T * TH                          # padded row count (tail rows unused)
    M = TH * W_pad
    MH = (TH + 2) * W_pad
    G = 8                                # front guard rows in the h1 scratch

    f32, bf16 = jnp.float32, jnp.bfloat16

    # Fold BN scale into conv weights (per output channel); pad channels to a
    # full lane width; cast matmul operands to bf16.
    w1f = (w1 * s1).astype(bf16)                                   # (Cin, width)
    w2f = (w2 * s2.reshape(1, 1, 1, width)).astype(bf16)           # (3,3,wi,wo)
    w3f = (w3 * s3).astype(bf16)                                   # (width, Cout)

    w1p = jnp.zeros((Cin_p, Wd_p), bf16).at[:Cin, :width].set(w1f)
    w2p = jnp.zeros((3, 3, Wd_p, Wd_p), bf16).at[:, :, :width, :width].set(
        w2f).reshape(9 * Wd_p, Wd_p)                               # im2col layout
    w3p = jnp.zeros((Wd_p, Cout_p), bf16).at[:width, :Cout].set(w3f)

    b1p = jnp.zeros((1, Wd_p), f32).at[:, :width].set(b1)
    b2p = jnp.zeros((1, Wd_p), f32).at[:, :width].set(b2)
    b3p = jnp.zeros((1, Cout_p), f32).at[:, :Cout].set(b3)

    # Flat (rows, channels) layout with one zero guard row-block above/below,
    # zero padded columns and zero padded tail rows.
    xp = jnp.zeros((N, HT + 2, W_pad, Cin_p), bf16)
    xp = xp.at[:, 1:H + 1, :W, :Cin].set(x.astype(bf16))
    xp = xp.reshape(N, (HT + 2) * W_pad, Cin_p)

    const2 = lambda shape: pl.BlockSpec(shape, lambda n, t: (0, 0))
    kernel = functools.partial(bottleneck_kernel, H=H, W=W, W_pad=W_pad,
                               TH=TH, G=G)

    # Explicit VMEM budget (matters on v7x: 64 MiB physical / 32 MiB default).
    out_itemsize = jnp.dtype(out_dtype).itemsize
    bytes_x_blk = (HT + 2) * W_pad * Cin_p * 2
    bytes_out_blk = M * Cout_p * out_itemsize
    bytes_w = 2 * (w1p.size + w2p.size + w3p.size) \
        + 4 * (b1p.size + b2p.size + b3p.size)
    bytes_scr = (G + MH + 8) * Wd_p * 4
    bytes_tmp = M * 9 * Wd_p * 2 + MH * Wd_p * 4       # patch + h1 live values
    vmem_est = 2 * (bytes_x_blk + bytes_out_blk + bytes_w) \
        + bytes_scr + 2 * bytes_tmp + (4 << 20)
    vmem_limit = int(min(max(vmem_est, 16 << 20), 64 << 20))

    out = pl.pallas_call(
        kernel,
        out_shape=jax.ShapeDtypeStruct((N, HT * W_pad, Cout_p), out_dtype),
        grid_spec=pltpu.PrefetchScalarGridSpec(
            num_scalar_prefetch=0,
            grid=(N, T),
            in_specs=[
                # full padded image, resident across the row-tile axis
                pl.BlockSpec((None, (HT + 2) * W_pad, Cin_p),
                             lambda n, t: (n, 0, 0)),
                const2(w1p.shape), const2(b1p.shape),
                const2(w2p.shape), const2(b2p.shape),
                const2(w3p.shape), const2(b3p.shape),
            ],
            out_specs=pl.BlockSpec((None, M, Cout_p), lambda n, t: (n, t, 0)),
            scratch_shapes=[pltpu.VMEM((G + MH + 8, Wd_p), f32)],
        ),
        compiler_params=pltpu.CompilerParams(
            dimension_semantics=("parallel", "parallel"),
            vmem_limit_bytes=vmem_limit),
    )(xp, w1p, b1p, w2p, b2p, w3p, b3p)

    # strip row/column/channel padding (lane-dense inside the kernel), to NHWC
    out = out.reshape(N, HT, W_pad, Cout_p)[:, :H, :W, :Cout]
    return out


def fold_bn(gamma, beta, mean, var, eps=1e-5):
    scale = gamma / jnp.sqrt(var + eps)
    bias = beta - mean * scale
    return scale[None, :], bias[None, :]          # (1, C)


def reference_forward(x, w1, s1, b1, w2, s2, b2, w3, s3, b3):
    """Plain-JAX reference mirroring the kernel's bf16 cast points."""
    f32 = jnp.float32
    bf = lambda a: a.astype(jnp.bfloat16).astype(f32)
    xb = bf(x)
    w1f = bf(w1 * s1)
    w2f = bf(w2 * s2.reshape(1, 1, 1, -1))
    w3f = bf(w3 * s3)
    h1 = jnp.maximum(jnp.einsum('nhwc,co->nhwo', xb, w1f) + b1[0], 0.0)
    h1 = bf(h1)
    h2 = lax.conv_general_dilated(
        h1, w2f, window_strides=(1, 1), padding='SAME',
        dimension_numbers=('NHWC', 'HWIO', 'NHWC'))
    h2 = jnp.maximum(h2 + b2[0], 0.0)
    h2 = bf(h2)
    h3 = jnp.einsum('nhwc,co->nhwo', h2, w3f) + b3[0]
    return jnp.maximum(h3 + xb, 0.0)


if __name__ == "__main__":
    # Bottleneck(inplanes=32, planes=8): width = 8, out channels = 32.
    N, H, W = 2, 16, 16
    planes = 8
    inplanes = planes * 4          # = 32, so identity residual is valid
    width = planes                 # base_width=64, groups=1
    cout = planes * 4

    key = jax.random.PRNGKey(0)
    ks = jax.random.split(key, 8)

    x = jax.random.normal(ks[0], (N, H, W, inplanes), jnp.float32)

    # conv weights (no bias), matmul layouts: 1x1 as (Cin, Cout), 3x3 as HWIO.
    w1 = jax.random.normal(ks[1], (inplanes, width), jnp.float32) * 0.1
    w2 = jax.random.normal(ks[2], (3, 3, width, width), jnp.float32) * 0.1
    w3 = jax.random.normal(ks[3], (width, cout), jnp.float32) * 0.1

    # BatchNorm parameters (eval mode), folded into scale/bias.
    def bn_params(k, c):
        k1, k2, k3, k4 = jax.random.split(k, 4)
        gamma = 1.0 + 0.1 * jax.random.normal(k1, (c,), jnp.float32)
        beta = 0.1 * jax.random.normal(k2, (c,), jnp.float32)
        mean = 0.1 * jax.random.normal(k3, (c,), jnp.float32)
        var = jnp.abs(jax.random.normal(k4, (c,), jnp.float32)) + 0.5
        return fold_bn(gamma, beta, mean, var)

    s1, b1 = bn_params(ks[4], width)
    s2, b2 = bn_params(ks[5], width)
    s3, b3 = bn_params(ks[6], cout)

    out = bottleneck_forward(x, w1, s1, b1, w2, s2, b2, w3, s3, b3)
    out = jax.block_until_ready(out)
    assert out.shape == (N, H, W, cout)

    ref = reference_forward(x, w1, s1, b1, w2, s2, b2, w3, s3, b3)
    # kernel output is bf16 by default; compare against the bf16-rounded ref
    ref_q = ref.astype(jnp.bfloat16).astype(jnp.float32)
    out_f = out.astype(jnp.float32)
    err = jnp.max(jnp.abs(out_f - ref_q))
    assert jnp.allclose(out_f, ref_q, atol=4e-2, rtol=4e-2), f"max err {err}"

    print("KERNEL_OK")
</pallas_src>

<mosaic_0001>
module attributes {stable_mosaic.version = 11 : i64} {
  func.func @bottleneck_kernel(%arg0: i32, %arg1: i32, %arg2: memref<1x288x128xbf16, #tpu.memory_space<vmem>>, %arg3: memref<128x128xbf16, #tpu.memory_space<vmem>>, %arg4: memref<1x128xf32, #tpu.memory_space<vmem>>, %arg5: memref<1152x128xbf16, #tpu.memory_space<vmem>>, %arg6: memref<1x128xf32, #tpu.memory_space<vmem>>, %arg7: memref<128x128xbf16, #tpu.memory_space<vmem>>, %arg8: memref<1x128xf32, #tpu.memory_space<vmem>>, %arg9: memref<1x256x128xbf16, #tpu.memory_space<vmem>>, %arg10: memref<304x128xf32, #tpu.memory_space<vmem>>) attributes {dimension_semantics = [#tpu.dimension_semantics<parallel>, #tpu.dimension_semantics<parallel>], iteration_bounds = array<i64: 2, 1>, scalar_prefetch = 0 : i64, scratch_operands = 1 : i64, tpu.core_type = #tpu.core_type<tc>, window_params = [{transform_indices = @transform_0, window_bounds = array<i64: 1, 288, 128>}, {pipeline_mode = #tpu.pipeline_mode<synchronous>, transform_indices = @transform_1, window_bounds = array<i64: 128, 128>}, {pipeline_mode = #tpu.pipeline_mode<synchronous>, transform_indices = @transform_2, window_bounds = array<i64: 1, 128>}, {pipeline_mode = #tpu.pipeline_mode<synchronous>, transform_indices = @transform_3, window_bounds = array<i64: 1152, 128>}, {pipeline_mode = #tpu.pipeline_mode<synchronous>, transform_indices = @transform_4, window_bounds = array<i64: 1, 128>}, {pipeline_mode = #tpu.pipeline_mode<synchronous>, transform_indices = @transform_5, window_bounds = array<i64: 128, 128>}, {pipeline_mode = #tpu.pipeline_mode<synchronous>, transform_indices = @transform_6, window_bounds = array<i64: 1, 128>}, {transform_indices = @transform_7, window_bounds = array<i64: 1, 256, 128>}]} {
    %c16_i32 = arith.constant 16 : i32
    %0 = arith.muli %arg1, %c16_i32 : i32
    %c16_i32_0 = arith.constant 16 : i32
    %1 = arith.muli %0, %c16_i32_0 : i32
    %2 = tpu.assume_multiple %1, 8 : i32
    %c0 = arith.constant 0 : index
    %3 = arith.index_cast %2 : i32 to index
    %c0_1 = arith.constant 0 : index
    %4 = vector.load %arg2[%c0, %3, %c0_1] : memref<1x288x128xbf16, #tpu.memory_space<vmem>>, vector<1x288x128xbf16>
    %5 = vector.shape_cast %4 : vector<1x288x128xbf16> to vector<288x128xbf16>
    %c0_2 = arith.constant 0 : index
    %c0_3 = arith.constant 0 : index
    %6 = vector.load %arg3[%c0_2, %c0_3] : memref<128x128xbf16, #tpu.memory_space<vmem>>, vector<128x128xbf16>
    %cst = arith.constant dense<0.000000e+00> : vector<288x128xf32>
    %7 = tpu.matmul %5, %6, %cst {dimension_numbers = #tpu.dot_dimension_numbers<[1], [0], [0], [1], [0, 0, 1, 1], [], []>} : vector<288x128xbf16>, vector<128x128xbf16>, vector<288x128xf32> -> vector<288x128xf32>
    %c0_4 = arith.constant 0 : index
    %c0_5 = arith.constant 0 : index
    %8 = vector.load %arg4[%c0_4, %c0_5] : memref<1x128xf32, #tpu.memory_space<vmem>>, vector<1x128xf32>
    %9 = vector.broadcast %8 : vector<1x128xf32> to vector<288x128xf32>
    %10 = arith.addf %7, %9 : vector<288x128xf32>
    %cst_6 = arith.constant 0.000000e+00 : f32
    %11 = vector.broadcast %cst_6 : f32 to vector<288x128xf32>
    %12 = arith.maximumf %10, %11 : vector<288x128xf32>
    %13 = tpu.iota {dimensions = array<i32: 0>} : vector<288x1xi32>
    %c1_i32 = arith.constant 1 : i32
    %14 = arith.subi %c1_i32, %0 : i32
    %c16_i32_7 = arith.constant 16 : i32
    %15 = arith.muli %14, %c16_i32_7 : i32
    %16 = vector.broadcast %15 : i32 to vector<288x1xi32>
    %17 = arith.cmpi sge, %13, %16 : vector<288x1xi32>
    %c16_i32_8 = arith.constant 16 : i32
    %18 = arith.subi %c16_i32_8, %0 : i32
    %c1_i32_9 = arith.constant 1 : i32
    %19 = arith.addi %18, %c1_i32_9 : i32
    %c16_i32_10 = arith.constant 16 : i32
    %20 = arith.muli %19, %c16_i32_10 : i32
    %21 = vector.broadcast %20 : i32 to vector<288x1xi32>
    %22 = arith.cmpi slt, %13, %21 : vector<288x1xi32>
    %23 = arith.andi %17, %22 : vector<288x1xi1>
    %cst_11 = arith.constant 0.000000e+00 : f32
    %24 = vector.shape_cast %23 : vector<288x1xi1> to vector<288x1xi1>
    %25 = vector.broadcast %24 : vector<288x1xi1> to vector<288x128xi1>
    %26 = vector.broadcast %cst_11 : f32 to vector<288x128xf32>
    %27 = arith.select %25, %12, %26 : vector<288x128xi1>, vector<288x128xf32>
    %c8 = arith.constant 8 : index
    %c0_12 = arith.constant 0 : index
    %28 = vector.load %arg10[%c8, %c0_12] : memref<304x128xf32, #tpu.memory_space<vmem>>, vector<288x128xf32>
    tpu.vector_store %arg10[%c8, %c0_12], %27 {strides = array<i32>} : memref<304x128xf32, #tpu.memory_space<vmem>>, vector<288x128xf32>,
    %29 = tpu.iota {dimensions = array<i32: 0>} : vector<256x1xi32>
    %c16_i32_13 = arith.constant 16 : i32
    %c0_i32 = arith.constant 0 : i32
    %30 = arith.cmpi eq, %c16_i32_13, %c0_i32 : i32
    %c1_i32_14 = arith.constant 1 : i32
    %31 = arith.select %30, %c1_i32_14, %c16_i32_13 : i32
    %32 = vector.broadcast %31 : i32 to vector<256x1xi32>
    %33 = arith.remsi %29, %32 : vector<256x1xi32>
    %c0_i32_15 = arith.constant 0 : i32
    %34 = vector.broadcast %c0_i32_15 : i32 to vector<256x1xi32>
    %35 = arith.cmpi ne, %33, %34 : vector<256x1xi32>
    %c0_i32_16 = arith.constant 0 : i32
    %36 = vector.broadcast %c0_i32_16 : i32 to vector<256x1xi32>
    %37 = arith.cmpi slt, %33, %36 : vector<256x1xi32>
    %c0_i32_17 = arith.constant 0 : i32
    %38 = arith.cmpi slt, %31, %c0_i32_17 : i32
    %39 = vector.broadcast %38 : i1 to vector<256x1xi1>
    %40 = vector.broadcast %39 : vector<256x1xi1> to vector<256x1xi1>
    %41 = arith.xori %37, %40 : vector<256x1xi1>
    %42 = arith.andi %41, %35 : vector<256x1xi1>
    %43 = vector.broadcast %31 : i32 to vector<256x1xi32>
    %44 = arith.addi %33, %43 : vector<256x1xi32>
    %45 = arith.select %42, %44, %33 : vector<256x1xi1>, vector<256x1xi32>
    %c1_i32_18 = arith.constant 1 : i32
    %46 = vector.broadcast %c1_i32_18 : i32 to vector<256x1xi32>
    %47 = arith.cmpi sge, %45, %46 : vector<256x1xi32>
    %c15_i32 = arith.constant 15 : i32
    %48 = vector.broadcast %c15_i32 : i32 to vector<256x1xi32>
    %49 = arith.cmpi slt, %45, %48 : vector<256x1xi32>
    %c7 = arith.constant 7 : index
    %c0_19 = arith.constant 0 : index
    %50 = vector.load %arg10[%c7, %c0_19] : memref<304x128xf32, #tpu.memory_space<vmem>>, vector<256x128xf32>
    %cst_20 = arith.constant 0.000000e+00 : f32
    %51 = vector.shape_cast %47 : vector<256x1xi1> to vector<256x1xi1>
    %52 = vector.broadcast %51 : vector<256x1xi1> to vector<256x128xi1>
    %53 = vector.broadcast %cst_20 : f32 to vector<256x128xf32>
    %54 = arith.select %52, %50, %53 : vector<256x128xi1>, vector<256x128xf32>
    %55 = arith.truncf %54 : vector<256x128xf32> to vector<256x128xbf16>
    %c8_21 = arith.constant 8 : index
    %c0_22 = arith.constant 0 : index
    %56 = vector.load %arg10[%c8_21, %c0_22] : memref<304x128xf32, #tpu.memory_space<vmem>>, vector<256x128xf32>
    %57 = arith.truncf %56 : vector<256x128xf32> to vector<256x128xbf16>
    %c9 = arith.constant 9 : index
    %c0_23 = arith.constant 0 : index
    %58 = vector.load %arg10[%c9, %c0_23] : memref<304x128xf32, #tpu.memory_space<vmem>>, vector<256x128xf32>
    %cst_24 = arith.constant 0.000000e+00 : f32
    %59 = vector.shape_cast %49 : vector<256x1xi1> to vector<256x1xi1>
    %60 = vector.broadcast %59 : vector<256x1xi1> to vector<256x128xi1>
    %61 = vector.broadcast %cst_24 : f32 to vector<256x128xf32>
    %62 = arith.select %60, %58, %61 : vector<256x128xi1>, vector<256x128xf32>
    %63 = arith.truncf %62 : vector<256x128xf32> to vector<256x128xbf16>
    %c23 = arith.constant 23 : index
    %c0_25 = arith.constant 0 : index
    %64 = vector.load %arg10[%c23, %c0_25] : memref<304x128xf32, #tpu.memory_space<vmem>>, vector<256x128xf32>
    %cst_26 = arith.constant 0.000000e+00 : f32
    %65 = vector.shape_cast %47 : vector<256x1xi1> to vector<256x1xi1>
    %66 = vector.broadcast %65 : vector<256x1xi1> to vector<256x128xi1>
    %67 = vector.broadcast %cst_26 : f32 to vector<256x128xf32>
    %68 = arith.select %66, %64, %67 : vector<256x128xi1>, vector<256x128xf32>
    %69 = arith.truncf %68 : vector<256x128xf32> to vector<256x128xbf16>
    %c24 = arith.constant 24 : index
    %c0_27 = arith.constant 0 : index
    %70 = vector.load %arg10[%c24, %c0_27] : memref<304x128xf32, #tpu.memory_space<vmem>>, vector<256x128xf32>
    %71 = arith.truncf %70 : vector<256x128xf32> to vector<256x128xbf16>
    %c25 = arith.constant 25 : index
    %c0_28 = arith.constant 0 : index
    %72 = vector.load %arg10[%c25, %c0_28] : memref<304x128xf32, #tpu.memory_space<vmem>>, vector<256x128xf32>
    %cst_29 = arith.constant 0.000000e+00 : f32
    %73 = vector.shape_cast %49 : vector<256x1xi1> to vector<256x1xi1>
    %74 = vector.broadcast %73 : vector<256x1xi1> to vector<256x128xi1>
    %75 = vector.broadcast %cst_29 : f32 to vector<256x128xf32>
    %76 = arith.select %74, %72, %75 : vector<256x128xi1>, vector<256x128xf32>
    %77 = arith.truncf %76 : vector<256x128xf32> to vector<256x128xbf16>
    %c39 = arith.constant 39 : index
    %c0_30 = arith.constant 0 : index
    %78 = vector.load %arg10[%c39, %c0_30] : memref<304x128xf32, #tpu.memory_space<vmem>>, vector<256x128xf32>
    %cst_31 = arith.constant 0.000000e+00 : f32
    %79 = vector.shape_cast %47 : vector<256x1xi1> to vector<256x1xi1>
    %80 = vector.broadcast %79 : vector<256x1xi1> to vector<256x128xi1>
    %81 = vector.broadcast %cst_31 : f32 to vector<256x128xf32>
    %82 = arith.select %80, %78, %81 : vector<256x128xi1>, vector<256x128xf32>
    %83 = arith.truncf %82 : vector<256x128xf32> to vector<256x128xbf16>
    %c40 = arith.constant 40 : index
    %c0_32 = arith.constant 0 : index
    %84 = vector.load %arg10[%c40, %c0_32] : memref<304x128xf32, #tpu.memory_space<vmem>>, vector<256x128xf32>
    %85 = arith.truncf %84 : vector<256x128xf32> to vector<256x128xbf16>
    %c41 = arith.constant 41 : index
    %c0_33 = arith.constant 0 : index
    %86 = vector.load %arg10[%c41, %c0_33] : memref<304x128xf32, #tpu.memory_space<vmem>>, vector<256x128xf32>
    %cst_34 = arith.constant 0.000000e+00 : f32
    %87 = vector.shape_cast %49 : vector<256x1xi1> to vector<256x1xi1>
    %88 = vector.broadcast %87 : vector<256x1xi1> to vector<256x128xi1>
    %89 = vector.broadcast %cst_34 : f32 to vector<256x128xf32>
    %90 = arith.select %88, %86, %89 : vector<256x128xi1>, vector<256x128xf32>
    %91 = arith.truncf %90 : vector<256x128xf32> to vector<256x128xbf16>
    %92 = tpu.concatenate %55, %57, %63, %69, %71, %77, %83, %85, %91 in 1 : vector<256x128xbf16>, vector<256x128xbf16>, vector<256x128xbf16>, vector<256x128xbf16>, vector<256x128xbf16>, vector<256x128xbf16>, vector<256x128xbf16>, vector<256x128xbf16>, vector<256x128xbf16> -> vector<256x1152xbf16>
    %c0_35 = arith.constant 0 : index
    %c0_36 = arith.constant 0 : index
    %93 = vector.load %arg5[%c0_35, %c0_36] : memref<1152x128xbf16, #tpu.memory_space<vmem>>, vector<1152x128xbf16>
    %cst_37 = arith.constant dense<0.000000e+00> : vector<256x128xf32>
    %94 = tpu.matmul %92, %93, %cst_37 {dimension_numbers = #tpu.dot_dimension_numbers<[1], [0], [0], [1], [0, 0, 1, 1], [], []>} : vector<256x1152xbf16>, vector<1152x128xbf16>, vector<256x128xf32> -> vector<256x128xf32>
    %c0_38 = arith.constant 0 : index
    %c0_39 = arith.constant 0 : index
    %95 = vector.load %arg6[%c0_38, %c0_39] : memref<1x128xf32, #tpu.memory_space<vmem>>, vector<1x128xf32>
    %96 = vector.broadcast %95 : vector<1x128xf32> to vector<256x128xf32>
    %97 = arith.addf %94, %96 : vector<256x128xf32>
    %cst_40 = arith.constant 0.000000e+00 : f32
    %98 = vector.broadcast %cst_40 : f32 to vector<256x128xf32>
    %99 = arith.maximumf %97, %98 : vector<256x128xf32>
    %100 = arith.truncf %99 : vector<256x128xf32> to vector<256x128xbf16>
    %c0_41 = arith.constant 0 : index
    %c0_42 = arith.constant 0 : index
    %101 = vector.load %arg7[%c0_41, %c0_42] : memref<128x128xbf16, #tpu.memory_space<vmem>>, vector<128x128xbf16>
    %cst_43 = arith.constant dense<0.000000e+00> : vector<256x128xf32>
    %102 = tpu.matmul %100, %101, %cst_43 {dimension_numbers = #tpu.dot_dimension_numbers<[1], [0], [0], [1], [0, 0, 1, 1], [], []>} : vector<256x128xbf16>, vector<128x128xbf16>, vector<256x128xf32> -> vector<256x128xf32>
    %c1_i32_44 = arith.constant 1 : i32
    %103 = arith.addi %0, %c1_i32_44 : i32
    %c16_i32_45 = arith.constant 16 : i32
    %104 = arith.muli %103, %c16_i32_45 : i32
    %105 = tpu.assume_multiple %104, 8 : i32
    %c0_46 = arith.constant 0 : index
    %106 = arith.index_cast %105 : i32 to index
    %c0_47 = arith.constant 0 : index
    %107 = vector.load %arg2[%c0_46, %106, %c0_47] : memref<1x288x128xbf16, #tpu.memory_space<vmem>>, vector<1x256x128xbf16>
    %108 = vector.shape_cast %107 : vector<1x256x128xbf16> to vector<256x128xbf16>
    %c0_48 = arith.constant 0 : index
    %c0_49 = arith.constant 0 : index
    %109 = vector.load %arg8[%c0_48, %c0_49] : memref<1x128xf32, #tpu.memory_space<vmem>>, vector<1x128xf32>
    %110 = vector.broadcast %109 : vector<1x128xf32> to vector<256x128xf32>
    %111 = arith.addf %102, %110 : vector<256x128xf32>
    %112 = arith.extf %108 : vector<256x128xbf16> to vector<256x128xf32>
    %113 = arith.addf %111, %112 : vector<256x128xf32>
    %cst_50 = arith.constant 0.000000e+00 : f32
    %114 = vector.broadcast %cst_50 : f32 to vector<256x128xf32>
    %115 = arith.maximumf %113, %114 : vector<256x128xf32>
    %116 = arith.truncf %115 : vector<256x128xf32> to vector<256x128xbf16>
    %c0_51 = arith.constant 0 : index
    %c0_52 = arith.constant 0 : index
    %c0_53 = arith.constant 0 : index
    %117 = vector.load %arg9[%c0_51, %c0_52, %c0_53] : memref<1x256x128xbf16, #tpu.memory_space<vmem>>, vector<1x256x128xbf16>
    %118 = vector.shape_cast %117 : vector<1x256x128xbf16> to vector<256x128xbf16>
    %119 = vector.shape_cast %116 : vector<256x128xbf16> to vector<1x256x128xbf16>
    tpu.vector_store %arg9[%c0_51, %c0_52, %c0_53], %119 {strides = array<i32>} : memref<1x256x128xbf16, #tpu.memory_space<vmem>>, vector<1x256x128xbf16>,
    return
  }
  func.func @transform_0(%arg0: i32, %arg1: i32) -> (i32, i32, i32) {
    %c0_i32 = arith.constant 0 : i32
    %c0_i32_0 = arith.constant 0 : i32
    %c0_i32_1 = arith.constant 0 : i32
    return %arg0, %c0_i32, %c0_i32_0 : i32, i32, i32
  }
  func.func @transform_1(%arg0: i32, %arg1: i32) -> (i32, i32) {
    %c0_i32 = arith.constant 0 : i32
    %c0_i32_0 = arith.constant 0 : i32
    %c0_i32_1 = arith.constant 0 : i32
    return %c0_i32, %c0_i32_0 : i32, i32
  }
  func.func @transform_2(%arg0: i32, %arg1: i32) -> (i32, i32) {
    %c0_i32 = arith.constant 0 : i32
    %c0_i32_0 = arith.constant 0 : i32
    %c0_i32_1 = arith.constant 0 : i32
    return %c0_i32, %c0_i32_0 : i32, i32
  }
  func.func @transform_3(%arg0: i32, %arg1: i32) -> (i32, i32) {
    %c0_i32 = arith.constant 0 : i32
    %c0_i32_0 = arith.constant 0 : i32
    %c0_i32_1 = arith.constant 0 : i32
    return %c0_i32, %c0_i32_0 : i32, i32
  }
  func.func @transform_4(%arg0: i32, %arg1: i32) -> (i32, i32) {
    %c0_i32 = arith.constant 0 : i32
    %c0_i32_0 = arith.constant 0 : i32
    %c0_i32_1 = arith.constant 0 : i32
    return %c0_i32, %c0_i32_0 : i32, i32
  }
  func.func @transform_5(%arg0: i32, %arg1: i32) -> (i32, i32) {
    %c0_i32 = arith.constant 0 : i32
    %c0_i32_0 = arith.constant 0 : i32
    %c0_i32_1 = arith.constant 0 : i32
    return %c0_i32, %c0_i32_0 : i32, i32
  }
  func.func @transform_6(%arg0: i32, %arg1: i32) -> (i32, i32) {
    %c0_i32 = arith.constant 0 : i32
    %c0_i32_0 = arith.constant 0 : i32
    %c0_i32_1 = arith.constant 0 : i32
    return %c0_i32, %c0_i32_0 : i32, i32
  }
  func.func @transform_7(%arg0: i32, %arg1: i32) -> (i32, i32, i32) {
    %c0_i32 = arith.constant 0 : i32
    %c0_i32_0 = arith.constant 0 : i32
    return %arg0, %arg1, %c0_i32 : i32, i32, i32
  }
}

</mosaic_0001>

<bundles_post_ra>
// kernel: tpu_custom_call.1
= control target key start
LH: loop header
LB: loop body
LE: loop exit
PB: predicated region body
PF: predicated region fallthrough
CT: control target
= control target key end

     0   :  { %s7422_s0 = inlined_call_operand.hbm [shape: bf16[2,288,128], index: 0, kind: input, shape index: {}]   ;;  %s7423_s1 = inlined_call_operand.hbm [shape: bf16[128,128], index: 1, kind: input, shape index: {}]   ;;  %s7424_s2 = inlined_call_operand.vmem [shape: f32[1,128], index: 2, kind: input, shape index: {}]   ;;  %s7425_s3 = inlined_call_operand.hbm [shape: bf16[1152,128], index: 3, kind: input, shape index: {}]   ;;  %s7426_s4 = inlined_call_operand.vmem [shape: f32[1,128], index: 4, kind: input, shape index: {}]   ;;  %s7427_s5 = inlined_call_operand.hbm [shape: bf16[128,128], index: 5, kind: input, shape index: {}]   ;;  %s7428_s6 = inlined_call_operand.vmem [shape: f32[1,128], index: 6, kind: input, shape index: {}]   ;;  %s7429_s7 = inlined_call_operand.hbm [shape: bf16[2,256,128], index: 7, kind: output, shape index: {}]  }
   0x1   :  { %7505 = sst [smem:[#allocation41_spill]] %s7423_s1 }
   0x2   :  { %7506 = sst [smem:[#allocation42_spill]] %s7425_s3 }
   0x3   :  { %7507 = sst [smem:[#allocation43_spill]] %s7427_s5 }
   0x4   :  { %12 = vsyncpa [#allocation4], 0 }
   0x5   :  { %14 = vsyncpa [#allocation4 + $0x1], 0 }
   0x6   :  { %15 = vsyncpa [#allocation7], 0 }
   0x7   :  { %16 = vsyncpa [#allocation10], 0 }
   0x8   :  { %17 = vsyncpa [#allocation5], 0 }
   0x9   :  { %19 = vsyncpa [#allocation5 + $0x1], 0  ;;  %s6001_s24 = smov 0   ;;  %s6003_s25 = smov 0  }
   0xa   :  { %s6005_s26 = smov 0   ;;  %s6007_s27 = smov 0  }
   0xb   :  { %s6009_s28 = smov 0   ;;  %s6011_s29 = smov 0  }
   0xc LB: > { %7508 = sst [smem:[#allocation16_spill]] %s5943_s28  ;;  %s4171_s30 = sadd.s32 4294967295, %s5947_s29   ;;  %s5947_s29 = sphi %s6011_s29, %s25_s29   ;;  %s5943_s28 = sphi %s6009_s28, %s7686_s28   ;;  %s5939_s27 = sphi %s6007_s27, %s7685_s27   ;;  %s5935_s26 = sphi %s6005_s26, %s7689_s26   ;;  %s5931_s25 = sphi %s6003_s25, %s7688_s25   ;;  %s5927_s24 = sphi %s6001_s24, %s7687_s24  }
   0xd   : > { %s4172_s8 = sadd.s32 4294967294, %s5947_s29   ;;  %p57_p0 = scmp.ne.s32.totalorder %s5931_s25, %s5927_s24 }
   0xe   : > { %p6035_p1 = scmp.eq.s32.totalorder %s4171_s30, 0  ;;  %p6039_p2 = scmp.eq.s32.totalorder %s4171_s30, 1 }
   0xf   : > { %p215_p3 = scmp.eq.s32.totalorder %s4172_s8, 1  ;;  %p4173_p5 = scmp.ge.s32.totalorder %s5947_s29, 1 }
  0x10   : > { %p6045_p4 = por %p6035_p1, %p57_p0  ;;  %p222_p7 = scmp.lt.s32.totalorder %s5947_s29, 3 }
  0x11   : > { %p6050_p6 = por %p215_p3, %p57_p0  ;;  %s5949_s14 = smov [#allocation6]  }
  0x12   : > { %p6055_p8 = pnand %p4173_p5, %p222_p7  ;;  %s234_s15 = sshll.u32 %s5949_s14, 4  ;;  %s235_s15 = int_to_ptr.vmem [resolvable:$true] %s234_s15 }
  0x13   : > { %s7512_s12 = scalar_select %p6050_p6, 1, 0 }
  0x14   : > { %p5563_p9 = pneg %p6055_p8  ;;  %s5950_s17 = smov [#allocation8]  }
  0x15   : > { %s250_s18 = sshll.u32 %s5950_s17, 4  ;;  %s5951_s19 = smov [#allocation9]   ;;  %s251_s18 = int_to_ptr.vmem [resolvable:$true] %s250_s18 }
  0x16   : > { %p6064_p11 = pnand %p5563_p9, %p6035_p1  ;;  %s266_s20 = sshll.u32 %s5951_s19, 4  ;;  %s267_s20 = int_to_ptr.vmem [resolvable:$true] %s266_s20 }
  0x17   : > { %s5764_s21 = scalar_lea.vmem %s235_s15, 1024  ;;  %p5772_p5 = scmp.lt.s32.totalorder %s235_s15, %s235_s15 }
  0x18   : > { %p5755_p12 = pneg %p6064_p11  ;;  %p5765_p13 = scmp.ne.s32.totalorder %s235_s15, %s5764_s21 }
  0x19   : > { %p5773_p7 = scmp.lt.s32.totalorder %s5764_s21, %s5764_s21 }
  0x1a   : > { %p5767_p0 = pnand %p5765_p13, %p5755_p12 }
  0x1b   : > { %p5774_p9 = por %p5773_p7, %p5772_p5 }
  0x1c   : > { %p5768_p3 = pneg %p5767_p0 }
  0x1e   : > { %p5775_p10 = pnand %p5774_p9, %p5768_p3 }
  0x20   : > { %5778 = shalt.err (!%p5775_p10)
}
  0x21   : > { %s7430_s22 = smov 64   ;;  %s7431_s23 = smov 4  }
  0x22   : > { %s7515_s1 = sld [smem:[#allocation41_spill]]  ;;  %s5790_s14 = scalar_lea.vmem %s251_s18, 9216 }
  0x23   : > { %p5791_p13 = scmp.ne.s32.totalorder %s251_s18, %s5790_s14  ;;  %p5798_p3 = scmp.lt.s32.totalorder %s251_s18, %s251_s18 }
  0x24   : > { %p5799_p10 = scmp.lt.s32.totalorder %s5790_s14, %s5790_s14 }
  0x25   : > { %p5793_p0 = pnand %p5791_p13, %p5755_p12 }
  0x26   : > { %p5800_p7 = por %p5799_p10, %p5798_p3 }
  0x27   : > { %p5794_p5 = pneg %p5793_p0 }
  0x28   : > { %5566 = dma.hbm_to_vmem [thread:$0]  (!%p6064_p11), %s7515_s1, 1024, %s235_s15, [#allocation7], %s7430_s22, %s7430_s22, %s7431_s23  }
  0x29   : > { %p5801_p9 = pnand %p5800_p7, %p5794_p5 }
  0x2b   : > { %5804 = shalt.err (!%p5801_p9)
}
  0x2c   : > { %s7516_s3 = sld [smem:[#allocation42_spill]]  ;;  %s5816_s15 = scalar_lea.vmem %s267_s20, 1024 }
  0x2d   : > { %p5817_p6 = scmp.ne.s32.totalorder %s267_s20, %s5816_s15  ;;  %p5824_p3 = scmp.lt.s32.totalorder %s267_s20, %s267_s20 }
  0x2e   : > { %p5825_p5 = scmp.lt.s32.totalorder %s5816_s15, %s5816_s15 }
  0x2f   : > { %p5819_p13 = pnand %p5817_p6, %p5755_p12 }
  0x30   : > { %p5826_p10 = por %p5825_p5, %p5824_p3 }
  0x31   : > { %p5820_p0 = pneg %p5819_p13 }
  0x32   : > { %5569 = dma.hbm_to_vmem [thread:$0]  (!%p6064_p11), %s7516_s3, 9216, %s251_s18, [#allocation7], %s7430_s22, %s7430_s22, %s7431_s23  }
  0x33   : > { %p5827_p7 = pnand %p5826_p10, %p5820_p0 }
  0x35   : > { %5830 = shalt.err (!%p5827_p7)
}
  0x36   : > { %s7517_s5 = sld [smem:[#allocation43_spill]]  ;;  %s44_s18 = sadd.s32 1, %s5935_s26 }
  0x37   : > { %s37_s16 = sadd.s32 1, %s5943_s28  ;;  %p51_p6 = scmp.ne.s32.totalorder %s5935_s26, %s5931_s25 }
  0x38   : > { %p39_p12 = scmp.ge.s32.totalorder %s37_s16, 2  ;;  %p52_p9 = scmp.eq.s32.totalorder %s5947_s29, 0 }
  0x39   : > { %p6110_p13 = por %p6039_p2, %p51_p6  ;;  %p5584_p0 = scmp.lt.s32.totalorder %s5947_s29, 2 }
  0x3a   : > { %s7691_s16 = smov (%p39_p12, %s37_s16), 0  ;;  %p53_p3 = por %p52_p9, %p51_p6 }
  0x3b   : > { %7519 = sst [smem:[#allocation17_spill]] %s7691_s16  ;;  %s283_s14 = sand.u32 1, %s5935_s26  }
  0x3c   : > { %5572 = dma.hbm_to_vmem [thread:$0]  (!%p6064_p11), %s7517_s5, 1024, %s267_s20, [#allocation10], %s7430_s22, %s7430_s22, %s7431_s23  }
  0x3d   : > { %s41_s17 = ssub.s32 %s5943_s28, %s7691_s16  ;;  %s5544_s20 = smul.u32 144, %s283_s14 }
  0x3e   : > { %p42_p5 = scmp.eq.s32.totalorder %s41_s17, 0  ;;  %s5545_s19 = smul.u32 2304, %s5943_s28 }
  0x3f   : > { %p6121_p11 = pnand %p5584_p0, %p53_p3  ;;  %s287_s23 = scalar_lea.vmem [#allocation3], %s5544_s20 }
  0x40   : > { %s6126_s10 = scalar_select %p42_p5, %s5935_s26, %s44_s18  }
  0x41   : > { %s293_s22 = scalar_lea.hbm %s7422_s0, %s5545_s19  ;;  %s294_s1 = sshll.u32 %s287_s23, 4  ;;  %s295_s1 = int_to_ptr.vmem [resolvable:$true] %s294_s1 }
  0x42   : > { %s284_s3 = scalar_lea.sflag [#allocation4], %s283_s14  ;;  %p5833_p2 = pneg %p6121_p11 }
  0x43   : > { %s5844_s17 = scalar_lea.vmem %s295_s1, 2304  ;;  %s5954_s5 = smov [#allocation3]  }
  0x44   : > { %p5845_p10 = scmp.ne.s32.totalorder %s295_s1, %s5844_s17  ;;  %s5849_s16 = sshll.u32 %s5954_s5, 4  ;;  %s5850_s16 = int_to_ptr.vmem [resolvable:$false] %s5849_s16 }
  0x45   : > { %s5851_s28 = scalar_lea.vmem %s5850_s16, 4608  ;;  %p5852_p12 = scmp.lt.s32.totalorder %s295_s1, %s5850_s16 }
  0x46   : > { %p5847_p7 = pnand %p5845_p10, %p5833_p2  ;;  %p5853_p9 = scmp.lt.s32.totalorder %s5851_s28, %s5844_s17 }
  0x48   : > { %p5848_p6 = pneg %p5847_p7  ;;  %p5854_p0 = por %p5853_p9, %p5852_p12 }
  0x4a   : > { %p5855_p3 = pnand %p5854_p0, %p5848_p6 }
  0x4c   : > { %5858 = shalt.err (!%p5855_p3)
}
  0x4d   : > { %s7521_s23 = smov 4   ;;  %s7522_s18 = smov 64  }
  0x4e   : > { %5576 = dma.hbm_to_vmem [thread:$0]  (!%p6121_p11), %s293_s22, 2304, %s295_s1, %s284_s3, %s7522_s18, %s7522_s18, %s7521_s23  }
  0x4f   : > { %306 = sbr.rel (%p6055_p8) target bundleno = 1079 (0x437), region = 48 }
  0x54   : > { %s6141_s14 = sand.u32 1, %s5931_s25  }
  0x55   : > { %s5546_s5 = smul.u32 144, %s6141_s14  ;;  %s309_s28 = scalar_lea.sflag [#allocation4], %s6141_s14 }
  0x57   : > { %s6145_s16 = scalar_lea.vmem [#allocation3], %s5546_s5 }
  0x58   : > { %5910 = dma.done.wait (%p6045_p4), %s309_s28, 2304  }
  0x59   : > { %5912 = vsyncadd (%p6045_p4), %s309_s28, 4294964992 }
  0x5a   : > { %5914 = dma.done.wait (%p6035_p1), [#allocation7], 10240  }
  0x5b   : > { %5916 = vsyncadd (%p6035_p1), [#allocation7], 4294957056 }
  0x5c   : > { %5918 = dma.done.wait (%p6035_p1), [#allocation10], 1024  }
  0x5d   : > { %5920 = vsyncadd (%p6035_p1), [#allocation10], 4294966272  ;;  %v5646_v0 = vld [vmem:[#allocation6 + $0x38] sm:$0xff]   ;;  %v5647_v1 = vld [vmem:[#allocation6 + $0x30] sm:$0xff]   ;;  %v5955_v51 = vmov 0.0   ;;  %v791_v53 = vlaneseq  ;;  %v5956_v63 = vmov 0.0|0.0  }
  0x5e   : > { %5380 = vmatprep.subr.bf16.mxu0 %v5646_v0  ;;  %v5648_v2 = vld [vmem:[#allocation6 + $0x28] sm:$0xff]   ;;  %v5649_v3 = vld [vmem:[#allocation6 + $0x20] sm:$0xff]   ;;  %v5650_v5 = vld [vmem:[#allocation6 + $0x18] sm:$0xff]   ;;  %1050 = vst [vmem:[#allocation2 + $0x8] sm:$0xff] %v5955_v51  ;;  %2691 = vmatprep.mubr.bf16.mxu1 %v5956_v63  ;;  %vm5957_vm1 = vmmov 1   ;;  %s4183_s20 = sshll.u32 %s6141_s14, 7 }
  0x5f   : > { %5381 = vmatpush3.bf16.msra.mxu0 %v5646_v0  ;;  %v5654_v4 = vld [vmem:[%s6145_s16] sm:$0xff]   ;;  %v5652_v7 = vld [vmem:[#allocation6 + $0x8] sm:$0xff]   ;;  %v5672_v9 = vld [vmem:[#allocation8 + $0xf8] sm:$0xff]   ;;  %1051 = vst [vmem:[#allocation2 + $0x10] sm:$0xff] %v5955_v51  ;;  %v6177_v55 = vshrl.u32 %v791_v53, 7  ;;  %s7311_s19 = scalar_lea.vmem [#allocation11], %s4183_s20 }
  0x60   : > { %5382 = vmatprep.subr.bf16.mxu0 %v5647_v1  ;;  %5396 = vmatprep.mubr.bf16.mxu0 %v5654_v4  ;;  %v5651_v6 = vld [vmem:[#allocation6 + $0x10] sm:$0xff]   ;;  %v5653_v8 = vld [vmem:[#allocation6] sm:$0xff]   ;;  %v5655_v10 = vld [vmem:[%s6145_s16 + $0x8] sm:$0xff]   ;;  %1084 = vst [vmem:[#allocation2 + $0x118] sm:$0xff] %v5955_v51  ;;  %s4682_s15 = sshll.u32 %s5939_s27, 11  ;;  %s4054_s21 = sshll.u32 %s7311_s19, 4  ;;  %s7372_s21 = int_to_ptr.vmem [resolvable:$true] %s4054_s21 }
  0x61   : > { %v5656_v11 = vld [vmem:[%s6145_s16 + $0x10] sm:$0xff]   ;;  %v5673_v12 = vld [vmem:[#allocation8 + $0xb8] sm:$0xff]   ;;  %v5676_v15 = vld [vmem:[#allocation8 + $0xe8] sm:$0xff]   ;;  %1085 = vst [vmem:[#allocation2 + $0x120] sm:$0xff] %v5955_v51  ;;  %v1090_v58 = vand.u32 15, %v6177_v55  ;;  %s7370_s23 = scalar_lea.hbm %s7429_s7, %s4682_s15  ;;  %s4039_s18 = scalar_lea.sflag [#allocation5], %s6141_s14 }
  0x62   : > { %v5674_v13 = vld [vmem:[#allocation8 + $0xf0] sm:$0xff]   ;;  %v5680_v16 = vld [vmem:[#allocation8 + $0x78] sm:$0xff]   ;;  %v5677_v22 = vld [vmem:[#allocation8 + $0xa8] sm:$0xff]   ;;  %s5859_s5 = scalar_lea.vmem %s7372_s21, 2048  ;;  %s5958_s27 = smov [#allocation11]  }
  0x63   : > { %5383 = vmatpush3.bf16.msra.mxu0 %v5647_v1  ;;  %v5675_v14 = vld [vmem:[#allocation8 + $0xb0] sm:$0xff]   ;;  %v5681_v17 = vld [vmem:[#allocation8 + $0x38] sm:$0xff]   ;;  %4884 = vmatprep.subr.bf16.mxu1 %v5680_v16  ;;  %v5678_v23 = vld [vmem:[#allocation8 + $0xe0] sm:$0xff]   ;;  %vm1470_vm0 = vcmp.ge.s32.totalorder %v1090_v58, 1  ;;  %p5860_p1 = scmp.ne.s32.totalorder %s7372_s21, %s5859_s5  ;;  %s5863_s28 = sshll.u32 %s5958_s27, 4  ;;  %s5864_s28 = int_to_ptr.vmem [resolvable:$false] %s5863_s28 }
  0x64   : > { %5384 = vmatprep.subr.bf16.mxu0 %v5648_v2  ;;  %v5657_v18 = vld [vmem:[%s6145_s16 + $0x18] sm:$0xff]   ;;  %v5682_v19 = vld [vmem:[#allocation8 + $0x70] sm:$0xff]   ;;  %4885 = vmatpush3.bf16.msra.mxu1 %v5681_v17  ;;  %v5688_v26 = vld [vmem:[#allocation8 + $0x60] sm:$0xff]   ;;  %p5866_p5 = scmp.lt.s32.totalorder %s7372_s21, %s5864_s28 }
  0x65   : > { %v5658_v20 = vld [vmem:[%s6145_s16 + $0x20] sm:$0xff]   ;;  %4886 = vmatprep.subr.bf16.mxu1 %v5682_v19  ;;  %v5686_v24 = vld [vmem:[#allocation8 + $0x68] sm:$0xff]   ;;  %v5684_v29 = vld [vmem:[#allocation8 + $0xd8] sm:$0xff]   ;;  %p5861_p4 = pnand %p5860_p1, %p6110_p13 }
  0x66   : > { %v5683_v21 = vld [vmem:[#allocation8 + $0x30] sm:$0xff]   ;;  %v5687_v25 = vld [vmem:[#allocation8 + $0x28] sm:$0xff]   ;;  %v5679_v27 = vld [vmem:[#allocation8 + $0xa0] sm:$0xff]  }
  0x67   : > { %5385 = vmatpush3.bf16.msra.mxu0 %v5648_v2  ;;  %v5659_v28 = vld [vmem:[%s6145_s16 + $0x28] sm:$0xff]   ;;  %v5660_v30 = vld [vmem:[%s6145_s16 + $0x30] sm:$0xff]   ;;  %v5661_v37 = vld [vmem:[%s6145_s16 + $0x38] sm:$0xff]   ;;  %p5862_p8 = pneg %p5861_p4 }
  0x68   : > { %5386 = vmatprep.subr.bf16.mxu0 %v5649_v3  ;;  %4887 = vmatpush3.bf16.msra.mxu1 %v5683_v21  ;;  %v5685_v31 = vld [vmem:[#allocation8 + $0x98] sm:$0xff]   ;;  %v5689_v32 = vld [vmem:[#allocation8 + $0x20] sm:$0xff]   ;;  %v5690_v33 = vld [vmem:[#allocation8 + $0xd0] sm:$0xff]  }
  0x69   : > { %4888 = vmatprep.subr.bf16.mxu1 %v5686_v24  ;;  %v5692_v34 = vld [vmem:[#allocation8 + $0x58] sm:$0xff]   ;;  %v5691_v36 = vld [vmem:[#allocation8 + $0x90] sm:$0xff]   ;;  %v5697_v50 = vld [vmem:[#allocation8 + $0x48] sm:$0xff]   ;;  %v794_v24 = vadd.s32 16, %v6177_v55 }
  0x6a   : > { %v5693_v35 = vld [vmem:[#allocation8 + $0x18] sm:$0xff]   ;;  %v5662_v38 = vld [vmem:[%s6145_s16 + $0x40] sm:$0xff]   ;;  %v5664_v40 = vld [vmem:[%s6145_s16 + $0x50] sm:$0xff]  }
  0x6b   : > { %5387 = vmatpush3.bf16.msra.mxu0 %v5649_v3  ;;  %v5663_v39 = vld [vmem:[%s6145_s16 + $0x48] sm:$0xff]   ;;  %v5665_v41 = vld [vmem:[%s6145_s16 + $0x58] sm:$0xff]   ;;  %v5666_v42 = vld [vmem:[%s6145_s16 + $0x60] sm:$0xff]  }
  0x6c   : > { %5388 = vmatprep.subr.bf16.mxu0 %v5650_v5  ;;  %4889 = vmatpush3.bf16.msra.mxu1 %v5687_v25  ;;  %v5667_v43 = vld [vmem:[%s6145_s16 + $0x68] sm:$0xff]   ;;  %v5668_v44 = vld [vmem:[%s6145_s16 + $0x70] sm:$0xff]   ;;  %v5669_v45 = vld [vmem:[%s6145_s16 + $0x78] sm:$0xff]  }
  0x6d   : > { %4890 = vmatprep.subr.bf16.mxu1 %v5688_v26  ;;  %v5670_v46 = vld [vmem:[%s6145_s16 + $0x80] sm:$0xff]   ;;  %v5671_v47 = vld [vmem:[%s6145_s16 + $0x88] sm:$0xff]   ;;  %vm6181_vm2 = vmpackc.low %vm5957_vm1, %vm1470_vm0 }
  0x6e   : > { %v5694_v48 = vld [vmem:[#allocation8 + $0x50] sm:$0xff]   ;;  %v5699_v52 = vld [vmem:[#allocation8 + $0x8] sm:$0xff]   ;;  %v5700_v54 = vld [vmem:[#allocation8 + $0x40] sm:$0xff]  }
  0x6f   : > { %5389 = vmatpush3.bf16.msra.mxu0 %v5650_v5  ;;  %v5695_v49 = vld [vmem:[#allocation8 + $0x10] sm:$0xff]   ;;  %v5696_v56 = vld [vmem:[#allocation8 + $0xc8] sm:$0xff]   ;;  %v5701_v57 = vld [vmem:[#allocation8] sm:$0xff]  }
  0x70   : > { %5390 = vmatprep.subr.bf16.mxu0 %v5651_v6  ;;  %4891 = vmatpush3.bf16.msra.mxu1 %v5689_v32  ;;  %v1534_v59 = vld [vmem:[#allocation2 + $0x7] sm:$0xff]  ;;  %v1535_v60 = vld [vmem:[#allocation2 + $0xf] sm:$0xff]  ;;  %v5698_v62 = vld [vmem:[#allocation8 + $0x88] sm:$0xff]  }
  0x71   : > { %4892 = vmatprep.subr.bf16.mxu1 %v5692_v34  ;;  %v4285_v61 = vpack.c.bf16 %v1535_v60, %v1534_v59  ;;  %v5702_v1 = vld [vmem:[#allocation8 + $0xc0] sm:$0xff]   ;;  %v5704_v3 = vld [vmem:[#allocation8 + $0x1f8] sm:$0xff]   ;;  %v5729_v16 = vld [vmem:[#allocation8 + $0x110] sm:$0xff]   ;;  %v1104_v34 = vand.u32 15, %v794_v24 }
  0x72   : > { %v5703_v2 = vld [vmem:[#allocation8 + $0x80] sm:$0xff]   ;;  %v5708_v4 = vld [vmem:[#allocation8 + $0x178] sm:$0xff]   ;;  %v5733_v25 = vld [vmem:[#allocation8 + $0x108] sm:$0xff]  }
  0x73   : > { %5391 = vmatpush3.bf16.msra.mxu0 %v5651_v6  ;;  %v5710_v5 = vld [vmem:[#allocation8 + $0x138] sm:$0xff]   ;;  %v5712_v6 = vld [vmem:[#allocation8 + $0x170] sm:$0xff]   ;;  %vm1472_vm3 = vcmp.ge.s32.totalorder %v1104_v34, 1  ;;  %v5742_v0 = vld [vmem:[#allocation8 + $0x208] sm:$0xff]  }
  0x74   : > { %5392 = vmatprep.subr.bf16.mxu0 %v5652_v7  ;;  %4893 = vmatpush3.bf16.msra.mxu1 %v5693_v35  ;;  %vm6219_vm5 = vmpackc.low %vm5957_vm1, %vm1472_vm3  ;;  %v5705_v60 = vld [vmem:[#allocation8 + $0x1b8] sm:$0xff]  }
  0x75   : > { %4894 = vmatprep.subr.bf16.mxu1 %v5694_v48 }
  0x77   : > { %5393 = vmatpush3.bf16.msra.mxu0 %v5652_v7  ;;  %v5714_v7 = vld [vmem:[#allocation8 + $0x130] sm:$0xff]  }
  0x78   : > { %5394 = vmatprep.subr.bf16.mxu0 %v5653_v8  ;;  %4895 = vmatpush3.bf16.msra.mxu1 %v5695_v49  ;;  %v6216_v49 = vld [vmem:[#allocation8 + $0x238] sm:$0xff]  }
  0x79   : > { %4896 = vmatprep.subr.bf16.mxu1 %v5697_v50 }
  0x7b   : > { %5395 = vmatpush3.bf16.msra.mxu0 %v5653_v8  ;;  %v5716_v8 = vld [vmem:[#allocation8 + $0x168] sm:$0xff]  }
  0x7c   : > { %4996 = vmatprep.subr.bf16.mxu0 %v5672_v9  ;;  %4897 = vmatpush3.bf16.msra.mxu1 %v5699_v52  ;;  %v5718_v9 = vld [vmem:[#allocation8 + $0x128] sm:$0xff]  }
  0x7d   : > { %4898 = vmatprep.subr.bf16.mxu1 %v5700_v54  ;;  %v795_v54 = vadd.s32 24, %v6177_v55 }
  0x7e   : > { %5397 = vmatmul.mubr.bf16.vlgmr.msra.gmra.mxu0 %v5655_v10  ;;  %v5720_v10 = vld [vmem:[#allocation8 + $0x160] sm:$0xff]  }
  0x7f   : > { %5400 = vmatprep.mubr.bf16.mxu0 %v5656_v11  ;;  %4997 = vmatpush3.bf16.msra.mxu0 %v5673_v12  ;;  %v5722_v11 = vld [vmem:[#allocation8 + $0x120] sm:$0xff]   ;;  %v5724_v12 = vld [vmem:[#allocation8 + $0x158] sm:$0xff]  }
  0x80   : > { %4998 = vmatprep.subr.bf16.mxu0 %v5674_v13  ;;  %4899 = vmatpush3.bf16.msra.mxu1 %v5701_v57  ;;  %v5726_v13 = vld [vmem:[#allocation8 + $0x118] sm:$0xff]  }
  0x81   : > { %5108 = vmatprep.subr.bf16.mxu1 %v5708_v4 }
  0x83   : > { %4999 = vmatpush3.bf16.msra.mxu0 %v5675_v14  ;;  %4286 = vmatmul.mubr.msk.bf16.vlgmr.msra.gmra.mxu1 %vm6181_vm2, %v4285_v61  ;;  %v6190_v14 = vld [vmem:[%s7424_s2] ss:$0 sm:$0xff] }
  0x84   : > { %5000 = vmatprep.subr.bf16.mxu0 %v5676_v15  ;;  %5109 = vmatpush3.bf16.msra.mxu1 %v5710_v5  ;;  %v5728_v15 = vld [vmem:[#allocation8 + $0x150] sm:$0xff]  }
  0x85   : > { %5110 = vmatprep.subr.bf16.mxu1 %v5712_v6  ;;  %v1111_v6 = vand.u32 15, %v795_v54  ;;  %v799_v54 = vadd.s32 56, %v6177_v55 }
  0x86   : > { %5401 = vmatmul.mubr.bf16.gmra.mxu0 %v5657_v18 }
  0x87   : > { %5404 = vmatprep.mubr.bf16.mxu0 %v5658_v20  ;;  %5001 = vmatpush3.bf16.msra.mxu0 %v5677_v22  ;;  %v5731_v22 = vld [vmem:[#allocation8 + $0x148] sm:$0xff]   ;;  %vm6263_vm8 = vcmp.lt.s32.totalorder %v1111_v6, 15 }
  0x88   : > { %5002 = vmatprep.subr.bf16.mxu0 %v5678_v23  ;;  %5111 = vmatpush3.bf16.msra.mxu1 %v5714_v7  ;;  %vm6290_vm10 = vmpackc.low %vm6263_vm8, %vm5957_vm1 }
  0x89   : > { %5112 = vmatprep.subr.bf16.mxu1 %v5716_v8 }
  0x8b   : > { %5003 = vmatpush3.bf16.msra.mxu0 %v5679_v27  ;;  %v793_v27 = vadd.s32 8, %v6177_v55 }
  0x8c   : > { %5004 = vmatprep.subr.bf16.mxu0 %v5684_v29  ;;  %5113 = vmatpush3.bf16.msra.mxu1 %v5718_v9  ;;  %v5734_v29 = vld [vmem:[#allocation8 + $0x140] sm:$0xff]   ;;  %v5707_v9 = vld [vmem:[#allocation8 + $0x1b0] sm:$0xff]  }
  0x8d   : > { %5114 = vmatprep.subr.bf16.mxu1 %v5720_v10 }
  0x8e   : > { %5405 = vmatmul.mubr.bf16.gmra.mxu0 %v5659_v28 }
  0x8f   : > { %5408 = vmatprep.mubr.bf16.mxu0 %v5660_v30  ;;  %5005 = vmatpush3.bf16.msra.mxu0 %v5685_v31  ;;  %v5735_v30 = vld [vmem:[#allocation8 + $0x100] sm:$0xff]  }
  0x90   : > { %5006 = vmatprep.subr.bf16.mxu0 %v5690_v33  ;;  %5115 = vmatpush3.bf16.msra.mxu1 %v5722_v11  ;;  %v5709_v11 = vld [vmem:[#allocation8 + $0x1e8] sm:$0xff]  }
  0x91   : > { %5116 = vmatprep.subr.bf16.mxu1 %v5724_v12 }
  0x93   : > { %5007 = vmatpush3.bf16.msra.mxu0 %v5691_v36  ;;  %v1097_v36 = vand.u32 15, %v793_v27 }
  0x94   : > { %5008 = vmatprep.subr.bf16.mxu0 %v5696_v56  ;;  %5117 = vmatpush3.bf16.msra.mxu1 %v5726_v13 }
  0x95   : > { %5118 = vmatprep.subr.bf16.mxu1 %v5728_v15  ;;  %vm6209_vm4 = vcmp.lt.s32.totalorder %v1097_v36, 15  ;;  %v798_v15 = vadd.s32 48, %v6177_v55 }
  0x96   : > { %5409 = vmatmul.mubr.bf16.gmra.mxu0 %v5661_v37  ;;  %vm6232_vm6 = vmpackc.low %vm6209_vm4, %vm5957_vm1 }
  0x97   : > { %5412 = vmatprep.mubr.bf16.mxu0 %v5662_v38  ;;  %5009 = vmatpush3.bf16.msra.mxu0 %v5698_v62  ;;  %v1132_v34 = vand.u32 15, %v798_v15  ;;  %v5719_v15 = vld [vmem:[#allocation8 + $0x198] sm:$0xff]  }
  0x98   : > { %5010 = vmatprep.subr.bf16.mxu0 %v5702_v1  ;;  %5119 = vmatpush3.bf16.msra.mxu1 %v5729_v16  ;;  %v5706_v1 = vld [vmem:[#allocation8 + $0x1f0] sm:$0xff]  }
  0x99   : > { %5120 = vmatprep.subr.bf16.mxu1 %v5731_v22  ;;  %vm6329_vm11 = vcmp.ge.s32.totalorder %v1132_v34, 1  ;;  %v5723_v34 = vld [vmem:[#allocation8 + $0x190] sm:$0xff]  }
  0x9a   : > { %vm6348_vm13 = vmpackc.low %vm5957_vm1, %vm6329_vm11 }
  0x9b   : > { %5011 = vmatpush3.bf16.msra.mxu0 %v5703_v2 }
  0x9c   : > { %5220 = vmatprep.subr.bf16.mxu0 %v5704_v3  ;;  %5121 = vmatpush3.bf16.msra.mxu1 %v5733_v25 }
  0x9d   : > { %5122 = vmatprep.subr.bf16.mxu1 %v5734_v29 }
  0x9e   : > { %5413 = vmatmul.mubr.bf16.gmra.mxu0 %v5663_v39 }
  0x9f   : > { %5416 = vmatprep.mubr.bf16.mxu0 %v5664_v40 }
  0xa0   : > { %5123 = vmatpush3.bf16.msra.mxu1 %v5735_v30 }
  0xa1   : > { %5528 = vmatprep.subr.bf16.mxu1 %v6216_v49 }
  0xa6   : > { %5417 = vmatmul.mubr.bf16.gmra.mxu0 %v5665_v41 }
  0xa7   : > { %5420 = vmatprep.mubr.bf16.mxu0 %v5666_v42 }
  0xae   : > { %5421 = vmatmul.mubr.bf16.gmra.mxu0 %v5667_v43  ;;  %v5713_v43 = vld [vmem:[#allocation8 + $0x1e0] sm:$0xff]  }
  0xaf   : > { %5424 = vmatprep.mubr.bf16.mxu0 %v5668_v44  ;;  %v796_v44 = vadd.s32 32, %v6177_v55 }
  0xb1   : > { %v1118_v63 = vand.u32 15, %v796_v44 }
  0xb3   : > { %vm1474_vm7 = vcmp.ge.s32.totalorder %v1118_v63, 1 }
  0xb4   : > { %vm6275_vm9 = vmpackc.low %vm5957_vm1, %vm1474_vm7 }
  0xb6   : > { %5425 = vmatmul.mubr.bf16.gmra.mxu0 %v5669_v45 }
  0xb7   : > { %5428 = vmatprep.mubr.bf16.mxu0 %v5670_v46 }
  0xbe   : > { %5429 = vmatmul.mubr.bf16.gmra.mxu0 %v5671_v47  ;;  %v1726_v47 = vld [vmem:[#allocation2 + $0x9] sm:$0xff] }
 0x13e   : > { %v5398_v17 = vpop.f32.mrf.mxu0 }
 0x13f   : > { %v621_v18 = vadd.f32 %v5398_v17, %v6190_v14 }
 0x140   : > { %v612_v19 = vpop.f32.mrf.mxu0 }
 0x141   : > { %v757_v20 = vmax.f32 %v621_v18, 0.0  ;;  %v797_v18 = vadd.s32 40, %v6177_v55 }
 0x142   : > { %v5399_v21 = vpop.f32.mrf.mxu0 }
 0x143   : > { %1052 = vst [vmem:[#allocation2 + $0x18] sm:$0xff] %v757_v20  ;;  %v624_v23 = vadd.f32 %v5399_v21, %v6190_v14 }
 0x144   : > { %v615_v26 = vpop.f32.mrf.mxu0 }
 0x145   : > { %v758_v28 = vmax.f32 %v624_v23, 0.0 }
 0x146   : > { %v5402_v31 = vpop.f32.mrf.mxu0 }
 0x147   : > { %1053 = vst [vmem:[#allocation2 + $0x20] sm:$0xff] %v758_v28  ;;  %v6197_v32 = vadd.f32 %v5402_v31, %v6190_v14  ;;  %v6199_v33 = vpack.c.bf16 %v758_v28, %v757_v20 }
 0x148   : > { %v628_v35 = vpop.f32.mrf.mxu0 }
 0x149   : > { %v761_v37 = vmax.f32 %v6197_v32, 0.0  ;;  %v629_v38 = vadd.f32 %v6190_v14, %v628_v35  ;;  %2699 = vmatprep.mubr.bf16.mxu1 %v6199_v33  ;;  %v5711_v35 = vld [vmem:[#allocation8 + $0x1a8] sm:$0xff]  }
 0x14a   : > { %v5403_v39 = vpop.f32.mrf.mxu0  ;;  %v1727_v48 = vld [vmem:[#allocation2 + $0x11] sm:$0xff] }
 0x14b   : > { %1056 = vst [vmem:[#allocation2 + $0x38] sm:$0xff] %v761_v37  ;;  %v759_v40 = vmax.f32 %v629_v38, 0.0  ;;  %v6207_v41 = vadd.f32 %v5403_v39, %v6190_v14  ;;  %v1536_v51 = vld [vmem:[#allocation2 + $0x17] sm:$0xff]  ;;  %v4336_v62 = vpack.c.bf16 %v1727_v48, %v1726_v47  ;;  %v800_v48 = vadd.s32 64, %v6177_v55 }
 0x14c   : > { %v631_v42 = vpop.f32.mrf.mxu0 }
 0x14d   : > { %1054 = vst [vmem:[#allocation2 + $0x28] sm:$0xff] %v759_v40  ;;  %v762_v45 = vmax.f32 %v6207_v41, 0.0  ;;  %v632_v46 = vadd.f32 %v6190_v14, %v631_v42  ;;  %v1125_v42 = vand.u32 15, %v797_v18 }
 0x14e   : > { %v5406_v50 = vpop.f32.mrf.mxu0  ;;  %v1537_v52 = vld [vmem:[#allocation2 + $0x1f] sm:$0xff] }
 0x14f   : > { %1057 = vst [vmem:[#allocation2 + $0x40] sm:$0xff] %v762_v45  ;;  %v760_v56 = vmax.f32 %v632_v46, 0.0  ;;  %v6227_v57 = vadd.f32 %v5406_v50, %v6190_v14  ;;  %v4288_v58 = vpack.c.bf16 %v1537_v52, %v1536_v51  ;;  %v1728_v30 = vld [vmem:[#allocation2 + $0x19] sm:$0xff]  ;;  %v6300_v39 = vpack.c.bf16 %v762_v45, %v761_v37  ;;  %v5715_v50 = vld [vmem:[#allocation8 + $0x1a0] sm:$0xff]  }
 0x150   : > { %v644_v61 = vpop.f32.mrf.mxu0  ;;  %vm6334_vm12 = vcmp.lt.s32.totalorder %v1125_v42, 15  ;;  %v5725_v42 = vld [vmem:[#allocation8 + $0x1c8] sm:$0xff]  }
 0x151   : > { %1055 = vst [vmem:[#allocation2 + $0x30] sm:$0xff] %v760_v56  ;;  %v765_v2 = vmax.f32 %v6227_v57, 0.0  ;;  %v6239_v3 = vadd.f32 %v6190_v14, %v644_v61  ;;  %4334 = vmatprep.mubr.msk.bf16.mxu0 %vm6181_vm2, %v4288_v58  ;;  %4289 = vmatmul.mubr.msk.bf16.gmra.mxu1 %vm6219_vm5, %v4288_v58  ;;  %v6245_v4 = vpack.c.bf16 %v760_v56, %v759_v40  ;;  %v5717_v56 = vld [vmem:[#allocation8 + $0x1d8] sm:$0xff]   ;;  %vm6361_vm14 = vmpackc.low %vm6334_vm12, %vm5957_vm1 }
 0x152   : > { %v5407_v5 = vpop.f32.mrf.mxu0  ;;  %4337 = vmatmul.mubr.msk.bf16.vlgmr.msra.gmra.mxu0 %vm6232_vm6, %v4336_v62 }
 0x153   : > { %1060 = vst [vmem:[#allocation2 + $0x58] sm:$0xff] %v765_v2  ;;  %v763_v7 = vmax.f32 %v6239_v3, 0.0  ;;  %v6253_v8 = vadd.f32 %v5407_v5, %v6190_v14  ;;  %5221 = vmatpush3.bf16.msra.mxu0 %v5705_v60  ;;  %2707 = vmatprep.mubr.bf16.mxu1 %v6245_v4 }
 0x154   : > { %v647_v10 = vpop.f32.mrf.mxu0  ;;  %5222 = vmatprep.subr.bf16.mxu0 %v5706_v1  ;;  %v1729_v22 = vld [vmem:[#allocation2 + $0x21] sm:$0xff] }
 0x155   : > { %1058 = vst [vmem:[#allocation2 + $0x48] sm:$0xff] %v763_v7  ;;  %v766_v12 = vmax.f32 %v6253_v8, 0.0  ;;  %v6260_v13 = vadd.f32 %v6190_v14, %v647_v10  ;;  %v1538_v24 = vld [vmem:[#allocation2 + $0x27] sm:$0xff]  ;;  %v6294_v38 = vpack.c.bf16 %v1729_v22, %v1728_v30  ;;  %v802_v30 = vadd.s32 80, %v6177_v55 }
 0x156   : > { %v5410_v16 = vpop.f32.mrf.mxu0  ;;  %v1541_v40 = vld [vmem:[#allocation2 + $0x3f] sm:$0xff] }
 0x157   : > { %1061 = vst [vmem:[#allocation2 + $0x60] sm:$0xff] %v766_v12  ;;  %v764_v19 = vmax.f32 %v6260_v13, 0.0  ;;  %v6272_v20 = vadd.f32 %v5410_v16, %v6190_v14  ;;  %5223 = vmatpush3.bf16.msra.mxu0 %v5707_v9 }
 0x158   : > { %v660_v23 = vpop.f32.mrf.mxu0  ;;  %v1539_v25 = vld [vmem:[#allocation2 + $0x2f] sm:$0xff]  ;;  %v1540_v26 = vld [vmem:[#allocation2 + $0x37] sm:$0xff]  ;;  %5224 = vmatprep.subr.bf16.mxu0 %v5709_v11  ;;  %v1146_v11 = vand.u32 15, %v800_v48  ;;  %v7547_v48 = vmov 0 }
 0x159   : > { %1059 = vst [vmem:[#allocation2 + $0x50] sm:$0xff] %v764_v19  ;;  %v769_v27 = vmax.f32 %v6272_v20, 0.0  ;;  %v6283_v28 = vadd.f32 %v6190_v14, %v660_v23  ;;  %v6285_v29 = vpack.c.bf16 %v1539_v25, %v1538_v24  ;;  %v6314_v32 = vpack.c.bf16 %v1541_v40, %v1540_v26  ;;  %v1730_v61 = vld [vmem:[#allocation2 + $0x29] sm:$0xff]  ;;  %v1731_v62 = vld [vmem:[#allocation2 + $0x31] sm:$0xff]  ;;  %v5721_v24 = vld [vmem:[#allocation8 + $0x1d0] sm:$0xff]  }
 0x15a   : > { %v5411_v36 = vpop.f32.mrf.mxu0  ;;  %v6365_v17 = vpack.c.bf16 %v1731_v62, %v1730_v61  ;;  %v6371_v18 = vpack.c.bf16 %v764_v19, %v763_v7  ;;  %v1139_v23 = vand.u32 15, %v799_v54  ;;  %vm1478_vm15 = vcmp.ge.s32.totalorder %v1146_v11, 1  ;;  %v1732_v54 = vld [vmem:[#allocation2 + $0x39] sm:$0xff] }
 0x15b   : > { %1064 = vst [vmem:[#allocation2 + $0x78] sm:$0xff] %v769_v27  ;;  %v767_v44 = vmax.f32 %v6283_v28, 0.0  ;;  %v6306_v46 = vadd.f32 %v5411_v36, %v6190_v14  ;;  %4340 = vmatprep.mubr.msk.bf16.mxu0 %vm6219_vm5, %v6285_v29  ;;  %4292 = vmatmul.mubr.msk.bf16.gmra.mxu1 %vm6275_vm9, %v6285_v29  ;;  %v801_v40 = vadd.s32 72, %v6177_v55  ;;  %vm6410_vm3 = vmpackc.low %vm5957_vm1, %vm1478_vm15 }
 0x15c   : > { %v663_v37 = vpop.f32.mrf.mxu0  ;;  %4343 = vmatmul.mubr.msk.bf16.gmra.mxu0 %vm6290_vm10, %v6294_v38  ;;  %2715 = vmatprep.mubr.bf16.mxu1 %v6300_v39  ;;  %v1542_v22 = vld [vmem:[#allocation2 + $0x47] sm:$0xff]  ;;  %vm6398_vm0 = vcmp.lt.s32.totalorder %v1139_v23, 15  ;;  %v7548_v48 = vsel %vm6410_vm3, 4294967295, %v7547_v48  ;;  %v5730_v23 = vld [vmem:[#allocation8 + $0x1c0] sm:$0xff]  }
 0x15d   : > { %1062 = vst [vmem:[#allocation2 + $0x68] sm:$0xff] %v767_v44  ;;  %v770_v41 = vmax.f32 %v6306_v46, 0.0  ;;  %v6324_v45 = vadd.f32 %v6190_v14, %v663_v37  ;;  %4346 = vmatprep.mubr.msk.bf16.mxu0 %vm6275_vm9, %v6314_v32  ;;  %5225 = vmatpush3.bf16.msra.mxu0 %v5711_v35  ;;  %v1733_v37 = vld [vmem:[#allocation2 + $0x41] sm:$0xff]  ;;  %7549 = vst [vmem:[#allocation18_spill] sm:$0xff] %v7548_v48  ;;  %v803_v35 = vadd.s32 88, %v6177_v55 }
 0x15e   : > { %v5414_v51 = vpop.f32.mrf.mxu0  ;;  %5226 = vmatprep.subr.bf16.mxu0 %v5713_v43  ;;  %vm6419_vm4 = vmpackc.low %vm6398_vm0, %vm5957_vm1  ;;  %v6427_v11 = vpack.c.bf16 %v1733_v37, %v1732_v54 }
 0x15f   : > { %1065 = vst [vmem:[#allocation2 + $0x80] sm:$0xff] %v770_v41  ;;  %v768_v58 = vmax.f32 %v6324_v45, 0.0  ;;  %v6343_v60 = vadd.f32 %v5414_v51, %v6190_v14  ;;  %v1545_v51 = vld [vmem:[#allocation2 + $0x5f] sm:$0xff] }
 0x160   : > { %v676_v63 = vpop.f32.mrf.mxu0  ;;  %v1543_v5 = vld [vmem:[#allocation2 + $0x4f] sm:$0xff] }
 0x161   : > { %1063 = vst [vmem:[#allocation2 + $0x70] sm:$0xff] %v768_v58  ;;  %v7442_v6 = vmax.f32 %v6343_v60, 0.0  ;;  %v6356_v9 = vadd.f32 %v6190_v14, %v676_v63  ;;  %5227 = vmatpush3.bf16.msra.mxu0 %v5715_v50  ;;  %v6382_v3 = vpack.c.bf16 %v1543_v5, %v1542_v22  ;;  %v1544_v50 = vld [vmem:[#allocation2 + $0x57] sm:$0xff]  ;;  %v1160_v63 = vand.u32 15, %v802_v30 }
 0x162   : > { %v5415_v16 = vpop.f32.mrf.mxu0  ;;  %5228 = vmatprep.subr.bf16.mxu0 %v5717_v56  ;;  %v5727_v5 = vld [vmem:[#allocation8 + $0x188] sm:$0xff]   ;;  %v1153_v22 = vand.u32 15, %v801_v40  ;;  %v804_v30 = vadd.s32 96, %v6177_v55  ;;  %v1734_v40 = vld [vmem:[#allocation2 + $0x49] sm:$0xff] }
 0x163   : > { %1068 = vst [vmem:[#allocation2 + $0x98] sm:$0xff] %v7442_v6  ;;  %v771_v25 = vmax.f32 %v6356_v9, 0.0  ;;  %v6377_v26 = vadd.f32 %v5415_v16, %v6190_v14  ;;  %4295 = vmatmul.mubr.msk.bf16.gmra.mxu1 %vm6348_vm13, %v6314_v32  ;;  %vm1480_vm7 = vcmp.ge.s32.totalorder %v1160_v63, 1 }
 0x164   : > { %4349 = vmatmul.mubr.msk.bf16.gmra.mxu0 %vm6361_vm14, %v6365_v17  ;;  %2723 = vmatprep.mubr.bf16.mxu1 %v6371_v18  ;;  %v679_v7 = vpop.f32.mrf.mxu0  ;;  %vm1511_vm8 = vcmp.lt.s32.totalorder %v1153_v22, 15  ;;  %vm6468_vm11 = vmpackc.low %vm5957_vm1, %vm1480_vm7  ;;  %v7636_v21 = vld [vmem:[#allocation18_spill] sm:$0xff] }
 0x165   : > { %1066 = vst [vmem:[#allocation2 + $0x88] sm:$0xff] %v771_v25  ;;  %v7441_v13 = vmax.f32 %v6377_v26, 0.0  ;;  %4352 = vmatprep.mubr.msk.bf16.mxu0 %vm6348_vm13, %v6382_v3  ;;  %v6395_v19 = vadd.f32 %v6190_v14, %v679_v7  ;;  %5229 = vmatpush3.bf16.msra.mxu0 %v5719_v15  ;;  %v6433_v15 = vpack.c.bf16 %v766_v12, %v765_v2  ;;  %vm6473_vm12 = vmpackc.low %vm1511_vm8, %vm5957_vm1 }
 0x166   : > { %v5418_v36 = vpop.f32.mrf.mxu0  ;;  %5230 = vmatprep.subr.bf16.mxu0 %v5721_v24  ;;  %v6438_v24 = vpack.c.bf16 %v1545_v51, %v1544_v50  ;;  %v7552_v51 = vmov 0 }
 0x167   : > { %1069 = vst [vmem:[#allocation2 + $0xa0] sm:$0xff] %v7441_v13  ;;  %v7443_v43 = vmax.f32 %v6395_v19, 0.0  ;;  %v6407_v47 = vadd.f32 %v5418_v36, %v6190_v14  ;;  %v7553_v51 = vsel %vm6468_vm11, 4294967295, %v7552_v51  ;;  %v6546_v13 = vpack.c.bf16 %v770_v41, %v769_v27 }
 0x168   : > { %v692_v52 = vpop.f32.mrf.mxu0  ;;  %7554 = vst [vmem:[#allocation19_spill] sm:$0xff] %v7553_v51  ;;  %v808_v27 = vadd.s32 128, %v6177_v55 }
 0x169   : > { %1067 = vst [vmem:[#allocation2 + $0x90] sm:$0xff] %v7443_v43  ;;  %v7435_v61 = vmax.f32 %v6407_v47, 0.0  ;;  %v6425_v62 = vadd.f32 %v6190_v14, %v692_v52  ;;  %5231 = vmatpush3.bf16.msra.mxu0 %v5723_v34  ;;  %v5732_v34 = vld [vmem:[#allocation8 + $0x180] sm:$0xff]   ;;  %7563 = vst [vmem:[#allocation22_spill] sm:$0xff] %v6546_v13 }
 0x16a   : > { %v5419_v16 = vpop.f32.mrf.mxu0  ;;  %5232 = vmatprep.subr.bf16.mxu0 %v5725_v42  ;;  %v1735_v42 = vld [vmem:[#allocation2 + $0x51] sm:$0xff] }
 0x16b   : > { %4298 = vmatmul.mubr.msk.bf16.gmra.mxu1 %vm6410_vm3, %v6382_v3  ;;  %1072 = vst [vmem:[#allocation2 + $0xb8] sm:$0xff] %v7435_v61  ;;  %v7440_v7 = vmax.f32 %v6425_v62, 0.0  ;;  %v6444_v57 = vadd.f32 %v5419_v16, %v6190_v14  ;;  %v1547_v52 = vld [vmem:[#allocation2 + $0x6f] sm:$0xff] }
 0x16c   : > { %4355 = vmatmul.mubr.msk.bf16.gmra.mxu0 %vm6419_vm4, %v6427_v11  ;;  %2731 = vmatprep.mubr.bf16.mxu1 %v6433_v15  ;;  %v695_v2 = vpop.f32.mrf.mxu0 }
 0x16d   : > { %4358 = vmatprep.mubr.msk.bf16.mxu0 %vm6410_vm3, %v6438_v24  ;;  %1070 = vst [vmem:[#allocation2 + $0xa8] sm:$0xff] %v7440_v7  ;;  %v7434_v8 = vmax.f32 %v6444_v57, 0.0  ;;  %v6457_v12 = vadd.f32 %v6190_v14, %v695_v2  ;;  %5233 = vmatpush3.bf16.msra.mxu0 %v5727_v5  ;;  %v1174_v5 = vand.u32 15, %v804_v30  ;;  %v6489_v2 = vpack.c.bf16 %v768_v58, %v767_v44 }
 0x16e   : > { %v5422_v36 = vpop.f32.mrf.mxu0  ;;  %5234 = vmatprep.subr.bf16.mxu0 %v5730_v23  ;;  %v6483_v23 = vpack.c.bf16 %v1735_v42, %v1734_v40  ;;  %v1737_v42 = vld [vmem:[#allocation2 + $0x61] sm:$0xff] }
 0x16f   : > { %1073 = vst [vmem:[#allocation2 + $0xc0] sm:$0xff] %v7434_v8  ;;  %v7439_v37 = vmax.f32 %v6457_v12, 0.0  ;;  %v6465_v50 = vadd.f32 %v5422_v36, %v6190_v14  ;;  %v1546_v36 = vld [vmem:[#allocation2 + $0x67] sm:$0xff]  ;;  %v1167_v8 = vand.u32 15, %v803_v35  ;;  %vm1482_vm15 = vcmp.ge.s32.totalorder %v1174_v5, 1 }
 0x170   : > { %v708_v54 = vpop.f32.mrf.mxu0  ;;  %v6495_v30 = vpack.c.bf16 %v1547_v52, %v1546_v36  ;;  %v805_v35 = vadd.s32 104, %v6177_v55  ;;  %vm6525_vm7 = vmpackc.low %vm5957_vm1, %vm1482_vm15  ;;  %v7558_v5 = vmov 0  ;;  %v1548_v36 = vld [vmem:[#allocation2 + $0x77] sm:$0xff] }
 0x171   : > { %1071 = vst [vmem:[#allocation2 + $0xb0] sm:$0xff] %v7439_v37  ;;  %v7436_v16 = vmax.f32 %v6465_v50, 0.0  ;;  %v6481_v22 = vadd.f32 %v6190_v14, %v708_v54  ;;  %5235 = vmatpush3.bf16.msra.mxu0 %v5732_v34  ;;  %vm1513_vm0 = vcmp.lt.s32.totalorder %v1167_v8, 15  ;;  %v7559_v5 = vsel %vm6525_vm7, 4294967295, %v7558_v5 }
 0x172   : > { %v5423_v61 = vpop.f32.mrf.mxu0  ;;  %5432 = vmatprep.subr.bf16.mxu0 %v6216_v49  ;;  %7557 = vst [vmem:[#allocation20_spill] sm:$0xff] %v6495_v30  ;;  %7560 = vst [vmem:[#allocation21_spill] sm:$0xff] %v7559_v5  ;;  %v1181_v6 = vand.u32 15, %v805_v35  ;;  %v7570_v5 = vmax.f32 %v6395_v19, 0.0 }
 0x173   : > { %4301 = vmatmul.mubr.msk.bf16.gmra.mxu1 %vm6468_vm11, %v6438_v24  ;;  %1076 = vst [vmem:[#allocation2 + $0xd8] sm:$0xff] %v7436_v16  ;;  %v7437_v28 = vmax.f32 %v6481_v22, 0.0  ;;  %v6501_v45 = vadd.f32 %v5423_v61, %v6190_v14  ;;  %v806_v61 = vadd.s32 112, %v6177_v55  ;;  %v1736_v16 = vld [vmem:[#allocation2 + $0x59] sm:$0xff]  ;;  %vm6530_vm8 = vmpackc.low %vm1513_vm0, %vm5957_vm1 }
 0x174   : > { %4361 = vmatmul.mubr.msk.bf16.gmra.mxu0 %vm6473_vm12, %v6483_v23  ;;  %2739 = vmatprep.mubr.bf16.mxu1 %v6489_v2  ;;  %v711_v44 = vpop.f32.mrf.mxu0  ;;  %v6540_v7 = vpack.c.bf16 %v1737_v42, %v1736_v16  ;;  %vm1515_vm0 = vcmp.lt.s32.totalorder %v1181_v6, 15  ;;  %v7568_v6 = vmov 0  ;;  %v6596_v51 = vpack.c.bf16 %v7570_v5, %v771_v25  ;;  %v1740_v5 = vld [vmem:[#allocation2 + $0x79] sm:$0xff] }
 0x175   : > { %4364 = vmatprep.mubr.msk.bf16.mxu0 %vm6468_vm11, %v6495_v30  ;;  %1074 = vst [vmem:[#allocation2 + $0xc8] sm:$0xff] %v7437_v28  ;;  %v7438_v58 = vmax.f32 %v6501_v45, 0.0  ;;  %v6515_v34 = vadd.f32 %v6190_v14, %v711_v44  ;;  %v1549_v44 = vld [vmem:[#allocation2 + $0x7f] sm:$0xff]  ;;  %v7561_v28 = vmov 0  ;;  %vm6583_vm11 = vmpackc.low %vm1515_vm0, %vm5957_vm1  ;;  %v810_v25 = vadd.s32 144, %v6177_v55 }
 0x176   : > { %v5426_v40 = vpop.f32.mrf.mxu0  ;;  %v7562_v28 = vsel %vm6530_vm8, 4294967295, %v7561_v28  ;;  %v7569_v6 = vsel %vm6583_vm11, 4294967295, %v7568_v6  ;;  %7571 = vst [vmem:[#allocation25_spill] sm:$0xff] %v6596_v51 }
 0x177   : > { %1077 = vst [vmem:[#allocation2 + $0xe0] sm:$0xff] %v7438_v58  ;;  %v7449_v52 = vmax.f32 %v6515_v34, 0.0  ;;  %v6522_v54 = vadd.f32 %v5426_v40, %v6190_v14  ;;  %v1188_v58 = vand.u32 15, %v806_v61  ;;  %v6551_v61 = vpack.c.bf16 %v1549_v44, %v1548_v36  ;;  %v1738_v36 = vld [vmem:[#allocation2 + $0x69] sm:$0xff]  ;;  %v1739_v44 = vld [vmem:[#allocation2 + $0x71] sm:$0xff] }
 0x178   : > { %v724_v8 = vpop.f32.mrf.mxu0 }
 0x179   : > { %1075 = vst [vmem:[#allocation2 + $0xd0] sm:$0xff] %v7449_v52  ;;  %v7445_v40 = vmax.f32 %v6522_v54, 0.0  ;;  %v6538_v37 = vadd.f32 %v6190_v14, %v724_v8  ;;  %7564 = vst [vmem:[#allocation23_spill] sm:$0xff] %v6551_v61  ;;  %vm1484_vm15 = vcmp.ge.s32.totalorder %v1188_v58, 1  ;;  %v7565_v8 = vmov 0  ;;  %v7635_v53 = vld [vmem:[#allocation20_spill] sm:$0xff] }
 0x17a   : > { %v5427_v43 = vpop.f32.mrf.mxu0  ;;  %v6590_v52 = vpack.c.bf16 %v1739_v44, %v1738_v36  ;;  %v1553_v36 = vld [vmem:[#allocation2 + $0x9f] sm:$0xff]  ;;  %v4900_v44 = vpop.f32.mrf.mxu1 }
 0x17b   : > { %4304 = vmatmul.mubr.msk.bf16.gmra.mxu1 %vm6525_vm7, %v6495_v30  ;;  %1080 = vst [vmem:[#allocation2 + $0xf8] sm:$0xff] %v7445_v40  ;;  %v7446_v16 = vmax.f32 %v6538_v37, 0.0  ;;  %v6557_v42 = vadd.f32 %v5427_v43, %v6190_v14  ;;  %v807_v43 = vadd.s32 120, %v6177_v55  ;;  %v1550_v40 = vld [vmem:[#allocation2 + $0x87] sm:$0xff] }
 0x17c   : > { %4367 = vmatmul.mubr.msk.bf16.gmra.mxu0 %vm6530_vm8, %v6540_v7  ;;  %2747 = vmatprep.mubr.bf16.mxu1 %v6546_v13  ;;  %v727_v20 = vpop.f32.mrf.mxu0 }
 0x17d   : > { %4370 = vmatprep.mubr.msk.bf16.mxu0 %vm6525_vm7, %v6551_v61  ;;  %1078 = vst [vmem:[#allocation2 + $0xe8] sm:$0xff] %v7446_v16  ;;  %v7448_v46 = vmax.f32 %v6557_v42, 0.0  ;;  %v6571_v41 = vadd.f32 %v6190_v14, %v727_v20  ;;  %vm6578_vm7 = vmpackc.low %vm5957_vm1, %vm1484_vm15  ;;  %v1551_v16 = vld [vmem:[#allocation2 + $0x8f] sm:$0xff]  ;;  %v1195_v13 = vand.u32 15, %v807_v43  ;;  %v1552_v43 = vld [vmem:[#allocation2 + $0x97] sm:$0xff] }
 0x17e   : > { %v5430_v35 = vpop.f32.mrf.mxu0  ;;  %v7566_v8 = vsel %vm6578_vm7, 4294967295, %v7565_v8  ;;  %v7644_v1 = vld [vmem:[#allocation25_spill] sm:$0xff] }
 0x17f   : > { %1081 = vst [vmem:[#allocation2 + $0x100] sm:$0xff] %v7448_v46  ;;  %v7459_v58 = vmax.f32 %v6571_v41, 0.0  ;;  %7567 = vst [vmem:[#allocation24_spill] sm:$0xff] %v7566_v8  ;;  %v1202_v35 = vand.u32 15, %v808_v27  ;;  %v6601_v27 = vpack.c.bf16 %v1551_v16, %v1550_v40  ;;  %vm1517_vm0 = vcmp.lt.s32.totalorder %v1195_v13, 15  ;;  %v1741_v40 = vld [vmem:[#allocation2 + $0x81] sm:$0xff] }
 0x180   : > { %v740_v20 = vpop.f32.mrf.mxu0 }
 0x181   : > { %1079 = vst [vmem:[#allocation2 + $0xf0] sm:$0xff] %v7459_v58  ;;  %v741_v46 = vadd.f32 %v6190_v14, %v740_v20  ;;  %vm1486_vm15 = vcmp.ge.s32.totalorder %v1202_v35, 1  ;;  %v7575_v20 = vmov 0  ;;  %v6625_v35 = vpack.c.bf16 %v1741_v40, %v1740_v5  ;;  %v1554_v5 = vld [vmem:[#allocation2 + $0xa7] sm:$0xff]  ;;  %v1555_v40 = vld [vmem:[#allocation2 + $0xaf] sm:$0xff] }
 0x182   : > { %v5431_v48 = vpop.f32.mrf.mxu0 }
 0x183   : > { %4307 = vmatmul.mubr.msk.bf16.gmra.mxu1 %vm6578_vm7, %v6551_v61  ;;  %v787_v30 = vmax.f32 %v741_v46, 0.0  ;;  %v809_v48 = vadd.s32 136, %v6177_v55  ;;  %v7572_v46 = vmov 0  ;;  %v6636_v61 = vpack.c.bf16 %v1553_v36, %v1552_v43 }
 0x184   : > { %4373 = vmatmul.mubr.msk.bf16.gmra.mxu0 %vm6583_vm11, %v6590_v52  ;;  %2755 = vmatprep.mubr.bf16.mxu1 %v6596_v51  ;;  %v743_v9 = vpop.f32.mrf.mxu0  ;;  %vm6614_vm11 = vmpackc.low %vm5957_vm1, %vm1486_vm15  ;;  %v4901_v51 = vpop.f32.mrf.mxu1 }
 0x185   : > { %4376 = vmatprep.mubr.msk.bf16.mxu0 %vm6578_vm7, %v6601_v27  ;;  %1082 = vst [vmem:[#allocation2 + $0x108] sm:$0xff] %v787_v30  ;;  %v744_v19 = vadd.f32 %v6190_v14, %v743_v9  ;;  %v7573_v46 = vsel %vm6614_vm11, 4294967295, %v7572_v46  ;;  %vm6619_vm7 = vmpackc.low %vm1517_vm0, %vm5957_vm1  ;;  %v1216_v14 = vand.u32 15, %v810_v25  ;;  %v7578_v9 = vmax.f32 %v6343_v60, 0.0 }
 0x186   : > { %7574 = vst [vmem:[#allocation26_spill] sm:$0xff] %v7573_v46  ;;  %v7576_v20 = vsel %vm6619_vm7, 4294967295, %v7575_v20  ;;  %v1209_v8 = vand.u32 15, %v809_v48  ;;  %v6638_v25 = vadd.f32 %v4901_v51, %v4900_v44  ;;  %v812_v60 = vadd.s32 160, %v6177_v55  ;;  %v1743_v48 = vld [vmem:[#allocation2 + $0x91] sm:$0xff] }
 0x187   : > { %v788_v16 = vmax.f32 %v744_v19, 0.0  ;;  %v7579_v19 = vmax.f32 %v6377_v26, 0.0  ;;  %vm1488_vm15 = vcmp.ge.s32.totalorder %v1216_v14, 1  ;;  %v811_v26 = vadd.s32 152, %v6177_v55 }
 0x188   : > { %vm1519_vm0 = vcmp.lt.s32.totalorder %v1209_v8, 15  ;;  %vm6650_vm3 = vmpackc.low %vm5957_vm1, %vm1488_vm15  ;;  %v7580_v51 = vmov 0  ;;  %v1230_v43 = vand.u32 15, %v812_v60  ;;  %v7585_v8 = vmax.f32 %v6425_v62, 0.0  ;;  %v1744_v60 = vld [vmem:[#allocation2 + $0x99] sm:$0xff] }
 0x189   : > { %1083 = vst [vmem:[#allocation2 + $0x110] sm:$0xff] %v788_v16  ;;  %v6623_v13 = vpack.c.bf16 %v788_v16, %v787_v30  ;;  %v6631_v58 = vpack.c.bf16 %v7579_v19, %v7578_v9  ;;  %v1742_v30 = vld [vmem:[#allocation2 + $0x89] sm:$0xff]  ;;  %v7581_v51 = vsel %vm6650_vm3, 4294967295, %v7580_v51  ;;  %v7583_v16 = vmov 0 }
 0x18a   : > { %7582 = vst [vmem:[#allocation28_spill] sm:$0xff] %v7581_v51  ;;  %v6659_v36 = vpack.c.bf16 %v1743_v48, %v1742_v30  ;;  %v7586_v44 = vmax.f32 %v6457_v12, 0.0  ;;  %v1223_v9 = vand.u32 15, %v811_v26  ;;  %v6670_v19 = vpack.c.bf16 %v1555_v40, %v1554_v5  ;;  %v1745_v26 = vld [vmem:[#allocation2 + $0xa1] sm:$0xff]  ;;  %v1556_v48 = vld [vmem:[#allocation2 + $0xb7] sm:$0xff] }
 0x18b   : > { %7577 = vst [vmem:[#allocation27_spill] sm:$0xff] %v6623_v13  ;;  %4310 = vmatmul.mubr.msk.bf16.gmra.mxu1 %vm6614_vm11, %v6601_v27  ;;  %vm1490_vm15 = vcmp.ge.s32.totalorder %v1230_v43, 1  ;;  %v814_v62 = vadd.s32 176, %v6177_v55  ;;  %v813_v12 = vadd.s32 168, %v6177_v55  ;;  %v7588_v30 = vmov 0  ;;  %v1557_v5 = vld [vmem:[#allocation2 + $0xbf] sm:$0xff] }
 0x18c   : > { %4379 = vmatmul.mubr.msk.bf16.gmra.mxu0 %vm6619_vm7, %v6625_v35  ;;  %2763 = vmatprep.mubr.bf16.mxu1 %v6631_v58  ;;  %vm6655_vm7 = vmpackc.low %vm1519_vm0, %vm5957_vm1  ;;  %v6665_v14 = vpack.c.bf16 %v7586_v44, %v7585_v8  ;;  %7587 = vst [vmem:[#allocation29_spill] sm:$0xff] %v6670_v19  ;;  %vm1521_vm0 = vcmp.lt.s32.totalorder %v1223_v9, 15  ;;  %v7591_v40 = vmov 0  ;;  %v6691_v8 = vpack.c.bf16 %v1745_v26, %v1744_v60  ;;  %v1558_v26 = vld [vmem:[#allocation2 + $0xc7] sm:$0xff] }
 0x18d   : > { %4382 = vmatprep.mubr.msk.bf16.mxu0 %vm6614_vm11, %v6636_v61  ;;  %v7584_v16 = vsel %vm6655_vm7, 4294967295, %v7583_v16  ;;  %vm6682_vm11 = vmpackc.low %vm5957_vm1, %vm1490_vm15  ;;  %v1244_v43 = vand.u32 15, %v814_v62  ;;  %v7593_v44 = vmax.f32 %v6407_v47, 0.0  ;;  %v7594_v9 = vmax.f32 %v6444_v57, 0.0  ;;  %v1746_v62 = vld [vmem:[#allocation2 + $0xa9] sm:$0xff] }
 0x18e   : > { %v7589_v30 = vsel %vm6682_vm11, 4294967295, %v7588_v30  ;;  %v1237_v51 = vand.u32 15, %v813_v12  ;;  %v6702_v46 = vpack.c.bf16 %v1557_v5, %v1556_v48  ;;  %v816_v47 = vadd.s32 192, %v6177_v55  ;;  %v1747_v12 = vld [vmem:[#allocation2 + $0xb1] sm:$0xff] }
 0x18f   : > { %7590 = vst [vmem:[#allocation30_spill] sm:$0xff] %v7589_v30  ;;  %v6697_v13 = vpack.c.bf16 %v7594_v9, %v7593_v44  ;;  %vm1492_vm15 = vcmp.ge.s32.totalorder %v1244_v43, 1  ;;  %v815_v57 = vadd.s32 184, %v6177_v55  ;;  %v7597_v60 = vmov 0  ;;  %v1559_v48 = vld [vmem:[#allocation2 + $0xcf] sm:$0xff] }
 0x190   : > { %7596 = vst [vmem:[#allocation32_spill] sm:$0xff] %v6702_v46  ;;  %v7600_v5 = vmov 0  ;;  %v1258_v43 = vand.u32 15, %v816_v47  ;;  %v6723_v44 = vpack.c.bf16 %v1747_v12, %v1746_v62  ;;  %v7603_v9 = vmax.f32 %v6515_v34, 0.0  ;;  %v1748_v47 = vld [vmem:[#allocation2 + $0xb9] sm:$0xff] }
 0x191   : > { %7595 = vst [vmem:[#allocation31_spill] sm:$0xff] %v6697_v13  ;;  %v817_v34 = vadd.s32 200, %v6177_v55  ;;  %v7606_v62 = vmov 0  ;;  %v1560_v12 = vld [vmem:[#allocation2 + $0xd7] sm:$0xff] }
 0x193   : > { %4313 = vmatmul.mubr.msk.bf16.gmra.mxu1 %vm6650_vm3, %v6636_v61 }
 0x194   : > { %4385 = vmatmul.mubr.msk.bf16.gmra.mxu0 %vm6655_vm7, %v6659_v36  ;;  %2771 = vmatprep.mubr.bf16.mxu1 %v6665_v14  ;;  %vm6687_vm7 = vmpackc.low %vm1521_vm0, %vm5957_vm1  ;;  %vm1523_vm0 = vcmp.lt.s32.totalorder %v1237_v51, 15  ;;  %v7602_v51 = vmax.f32 %v6481_v22, 0.0  ;;  %v818_v22 = vadd.s32 208, %v6177_v55 }
 0x195   : > { %4388 = vmatprep.mubr.msk.bf16.mxu0 %vm6650_vm3, %v6670_v19  ;;  %v7592_v40 = vsel %vm6687_vm7, 4294967295, %v7591_v40  ;;  %vm6714_vm3 = vmpackc.low %vm5957_vm1, %vm1492_vm15  ;;  %vm1494_vm15 = vcmp.ge.s32.totalorder %v1258_v43, 1 }
 0x196   : > { %v7598_v60 = vsel %vm6714_vm3, 4294967295, %v7597_v60  ;;  %v6729_v30 = vpack.c.bf16 %v7603_v9, %v7602_v51  ;;  %v1272_v43 = vand.u32 15, %v818_v22  ;;  %v7612_v9 = vmax.f32 %v6501_v45, 0.0  ;;  %v1750_v22 = vld [vmem:[#allocation2 + $0xc9] sm:$0xff] }
 0x197   : > { %7599 = vst [vmem:[#allocation33_spill] sm:$0xff] %v7598_v60  ;;  %v819_v45 = vadd.s32 216, %v6177_v55 }
 0x198   : > { %7604 = vst [vmem:[#allocation34_spill] sm:$0xff] %v6729_v30 }
 0x19b   : > { %4316 = vmatmul.mubr.msk.bf16.gmra.mxu1 %vm6682_vm11, %v6670_v19  ;;  %v6734_v19 = vpack.c.bf16 %v1559_v48, %v1558_v26  ;;  %v1561_v26 = vld [vmem:[#allocation2 + $0xdf] sm:$0xff]  ;;  %v7609_v48 = vmov 0 }
 0x19c   : > { %4391 = vmatmul.mubr.msk.bf16.gmra.mxu0 %vm6687_vm7, %v6691_v8  ;;  %2779 = vmatprep.mubr.bf16.mxu1 %v6697_v13  ;;  %vm6719_vm7 = vmpackc.low %vm1523_vm0, %vm5957_vm1  ;;  %v1251_v13 = vand.u32 15, %v815_v57  ;;  %v1749_v57 = vld [vmem:[#allocation2 + $0xc1] sm:$0xff] }
 0x19d   : > { %4394 = vmatprep.mubr.msk.bf16.mxu0 %vm6682_vm11, %v6702_v46  ;;  %v7601_v5 = vsel %vm6719_vm7, 4294967295, %v7600_v5  ;;  %7605 = vst [vmem:[#allocation35_spill] sm:$0xff] %v6734_v19  ;;  %vm6746_vm11 = vmpackc.low %vm5957_vm1, %vm1494_vm15  ;;  %v6755_v51 = vpack.c.bf16 %v1749_v57, %v1748_v47  ;;  %vm1496_vm15 = vcmp.ge.s32.totalorder %v1272_v43, 1  ;;  %v7615_v47 = vmov 0  ;;  %v1562_v57 = vld [vmem:[#allocation2 + $0xe7] sm:$0xff] }
 0x19e   : > { %vm1525_vm0 = vcmp.lt.s32.totalorder %v1251_v13, 15  ;;  %v7607_v62 = vsel %vm6746_vm11, 4294967295, %v7606_v62  ;;  %v7611_v13 = vmax.f32 %v6465_v50, 0.0  ;;  %v820_v50 = vadd.s32 224, %v6177_v55 }
 0x19f   : > { %7608 = vst [vmem:[#allocation36_spill] sm:$0xff] %v7607_v62 }
 0x1a0   : > { %v6761_v60 = vpack.c.bf16 %v7612_v9, %v7611_v13  ;;  %v1286_v43 = vand.u32 15, %v820_v50  ;;  %v7621_v9 = vmax.f32 %v6571_v41, 0.0  ;;  %v821_v41 = vadd.s32 232, %v6177_v55  ;;  %v1752_v50 = vld [vmem:[#allocation2 + $0xd9] sm:$0xff] }
 0x1a2   : > { %7613 = vst [vmem:[#allocation37_spill] sm:$0xff] %v6761_v60 }
 0x1a3   : > { %4319 = vmatmul.mubr.msk.bf16.gmra.mxu1 %vm6714_vm3, %v6702_v46  ;;  %v6766_v46 = vpack.c.bf16 %v1561_v26, %v1560_v12  ;;  %v1563_v12 = vld [vmem:[#allocation2 + $0xef] sm:$0xff]  ;;  %v7618_v26 = vmov 0 }
 0x1a4   : > { %4397 = vmatmul.mubr.msk.bf16.gmra.mxu0 %vm6719_vm7, %v6723_v44  ;;  %2787 = vmatprep.mubr.bf16.mxu1 %v6729_v30  ;;  %vm6751_vm7 = vmpackc.low %vm1525_vm0, %vm5957_vm1  ;;  %v1265_v30 = vand.u32 15, %v817_v34  ;;  %v1751_v34 = vld [vmem:[#allocation2 + $0xd1] sm:$0xff] }
 0x1a5   : > { %4400 = vmatprep.mubr.msk.bf16.mxu0 %vm6714_vm3, %v6734_v19  ;;  %v7610_v48 = vsel %vm6751_vm7, 4294967295, %v7609_v48  ;;  %7614 = vst [vmem:[#allocation38_spill] sm:$0xff] %v6766_v46  ;;  %vm6778_vm3 = vmpackc.low %vm5957_vm1, %vm1496_vm15  ;;  %v6787_v13 = vpack.c.bf16 %v1751_v34, %v1750_v22  ;;  %vm1498_vm15 = vcmp.ge.s32.totalorder %v1286_v43, 1  ;;  %v1564_v34 = vld [vmem:[#allocation2 + $0xf7] sm:$0xff] }
 0x1a6   : > { %vm1527_vm0 = vcmp.lt.s32.totalorder %v1265_v30, 15  ;;  %v7616_v47 = vsel %vm6778_vm3, 4294967295, %v7615_v47  ;;  %v7620_v30 = vmax.f32 %v6538_v37, 0.0  ;;  %v822_v37 = vadd.s32 240, %v6177_v55 }
 0x1a7   : > { %7617 = vst [vmem:[#allocation39_spill] sm:$0xff] %v7616_v47 }
 0x1a8   : > { %v6793_v62 = vpack.c.bf16 %v7621_v9, %v7620_v30  ;;  %v1300_v43 = vand.u32 15, %v822_v37  ;;  %v7628_v9 = vmax.f32 %v6557_v42, 0.0  ;;  %v1754_v42 = vld [vmem:[#allocation2 + $0xe9] sm:$0xff]  ;;  %v1755_v37 = vld [vmem:[#allocation2 + $0xf1] sm:$0xff] }
 0x1aa   : > { %7622 = vst [vmem:[#allocation40_spill] sm:$0xff] %v6793_v62 }
 0x1ab   : > { %4322 = vmatmul.mubr.msk.bf16.gmra.mxu1 %vm6746_vm11, %v6734_v19  ;;  %v6798_v19 = vpack.c.bf16 %v1563_v12, %v1562_v57  ;;  %v1565_v57 = vld [vmem:[#allocation2 + $0xff] sm:$0xff]  ;;  %v7625_v12 = vmov 0 }
 0x1ac   : > { %4403 = vmatmul.mubr.msk.bf16.gmra.mxu0 %vm6751_vm7, %v6755_v51  ;;  %2795 = vmatprep.mubr.bf16.mxu1 %v6761_v60  ;;  %vm6783_vm7 = vmpackc.low %vm1527_vm0, %vm5957_vm1  ;;  %v1279_v60 = vand.u32 15, %v819_v45  ;;  %v1753_v45 = vld [vmem:[#allocation2 + $0xe1] sm:$0xff] }
 0x1ad   : > { %4406 = vmatprep.mubr.msk.bf16.mxu0 %vm6746_vm11, %v6766_v46  ;;  %v7619_v26 = vsel %vm6783_vm7, 4294967295, %v7618_v26  ;;  %vm6810_vm11 = vmpackc.low %vm5957_vm1, %vm1498_vm15  ;;  %v6819_v30 = vpack.c.bf16 %v1753_v45, %v1752_v50  ;;  %vm1500_vm15 = vcmp.ge.s32.totalorder %v1300_v43, 1  ;;  %v1870_v50 = vld [vmem:[#allocation2 + $0x107] sm:$0xff]  ;;  %v1871_v45 = vld [vmem:[#allocation2 + $0x10f] sm:$0xff] }
 0x1ae   : > { %vm1529_vm0 = vcmp.lt.s32.totalorder %v1279_v60, 15  ;;  %v7627_v60 = vmax.f32 %v6522_v54, 0.0  ;;  %v823_v54 = vadd.s32 248, %v6177_v55  ;;  %v6855_v55 = vpack.c.bf16 %v1871_v45, %v1870_v50 }
 0x1b0   : > { %v6825_v47 = vpack.c.bf16 %v7628_v9, %v7627_v60  ;;  %v1307_v43 = vand.u32 15, %v823_v54  ;;  %v1757_v60 = vld [vmem:[#allocation2 + $0x101] sm:$0xff] }
 0x1b3   : > { %4325 = vmatmul.mubr.msk.bf16.gmra.mxu1 %vm6778_vm3, %v6766_v46  ;;  %v6830_v46 = vpack.c.bf16 %v1565_v57, %v1564_v34  ;;  %v6850_v57 = vpack.c.bf16 %v1755_v37, %v1754_v42  ;;  %v5737_v42 = vld [vmem:[#allocation8 + $0x230] sm:$0xff]   ;;  %v5739_v37 = vld [vmem:[#allocation8 + $0x220] sm:$0xff]  }
 0x1b4   : > { %4409 = vmatmul.mubr.msk.bf16.gmra.mxu0 %vm6783_vm7, %v6787_v13  ;;  %2803 = vmatprep.mubr.bf16.mxu1 %v6793_v62  ;;  %vm6815_vm7 = vmpackc.low %vm1529_vm0, %vm5957_vm1  ;;  %v1293_v62 = vand.u32 15, %v821_v41 }
 0x1b5   : > { %4412 = vmatprep.mubr.msk.bf16.mxu0 %vm6778_vm3, %v6798_v19  ;;  %v7626_v12 = vsel %vm6815_vm7, 4294967295, %v7625_v12  ;;  %vm6841_vm3 = vmpackc.low %vm5957_vm1, %vm1500_vm15  ;;  %vm1533_vm15 = vcmp.lt.s32.totalorder %v1307_v43, 15 }
 0x1b6   : > { %vm1531_vm0 = vcmp.lt.s32.totalorder %v1293_v62, 15  ;;  %v1756_v62 = vld [vmem:[#allocation2 + $0xf9] sm:$0xff] }
 0x1b7   : > { %v6871_v54 = vpack.c.bf16 %v1757_v60, %v1756_v62  ;;  %v7651_v60 = vld [vmem:[#allocation29_spill] sm:$0xff] }
 0x1bb   : > { %4328 = vmatmul.mubr.msk.bf16.gmra.mxu1 %vm6810_vm11, %v6798_v19 }
 0x1bc   : > { %4415 = vmatmul.mubr.msk.bf16.gmra.mxu0 %vm6815_vm7, %v6819_v30  ;;  %2811 = vmatprep.mubr.bf16.mxu1 %v6825_v47  ;;  %vm6846_vm7 = vmpackc.low %vm1531_vm0, %vm5957_vm1 }
 0x1bd   : > { %4418 = vmatprep.mubr.msk.bf16.mxu0 %vm6810_vm11, %v6830_v46  ;;  %vm6867_vm0 = vmpackc.low %vm1533_vm15, %vm5957_vm1  ;;  %vm7637_vm1 = vnez %v7636_v21  ;;  %vm7647_vm15 = vnez %v7584_v16 }
 0x1c3   : > { %4331 = vmatmul.mubr.msk.bf16.gmra.mxu1 %vm6841_vm3, %v6830_v46 }
 0x1c4   : > { %4421 = vmatmul.mubr.msk.bf16.gmra.mxu0 %vm6846_vm7, %v6850_v57  ;;  %4430 = vmatprep.mubr.msk.bf16.mxu1 %vm6232_vm6, %v6294_v38  ;;  %v5738_v38 = vld [vmem:[#allocation8 + $0x228] sm:$0xff]  }
 0x1c5   : > { %4424 = vmatprep.mubr.msk.bf16.mxu0 %vm6841_vm3, %v6855_v55 }
 0x1cb   : > { %3014 = vmatmul.mubr.bf16.vlgmr.msra.gmra.mxu1 %v6199_v33  ;;  %v5740_v33 = vld [vmem:[#allocation8 + $0x218] sm:$0xff]  }
 0x1cc   : > { %4427 = vmatmul.mubr.msk.bf16.gmra.mxu0 %vm6867_vm0, %v6871_v54  ;;  %4433 = vmatprep.mubr.msk.bf16.mxu1 %vm6290_vm10, %v6365_v17 }
 0x1cd   : > { %3174 = vmatprep.mubr.bf16.mxu0 %v6245_v4  ;;  %5536 = vmatpush3.bf16.msra.mxu1 %v6216_v49 }
 0x1ce   : > { %5529 = vmatprep.subr.bf16.mxu1 %v5737_v42 }
 0x1d1   : > { %5537 = vmatpush3.bf16.msra.mxu1 %v5737_v42 }
 0x1d2   : > { %5530 = vmatprep.subr.bf16.mxu1 %v5738_v38 }
 0x1d3   : > { %3022 = vmatmul.mubr.bf16.gmra.mxu1 %v6245_v4  ;;  %v5741_v4 = vld [vmem:[#allocation8 + $0x210] sm:$0xff]  }
 0x1d4   : > { %4478 = vmatmul.mubr.msk.bf16.vlgmr.msra.gmra.mxu0 %vm6181_vm2, %v6285_v29  ;;  %4436 = vmatprep.mubr.msk.bf16.mxu1 %vm6361_vm14, %v6427_v11  ;;  %vm7638_vm2 = vnez %v7569_v6  ;;  %v7639_v29 = vld [vmem:[#allocation22_spill] sm:$0xff] }
 0x1d5   : > { %5433 = vmatpush3.bf16.msra.mxu0 %v6216_v49  ;;  %3182 = vmatprep.mubr.bf16.mxu0 %v6300_v39  ;;  %v5743_v49 = vld [vmem:[#allocation8 + $0x200] sm:$0xff]  }
 0x1d6   : > { %5434 = vmatprep.subr.bf16.mxu0 %v5737_v42  ;;  %5538 = vmatpush3.bf16.msra.mxu1 %v5738_v38 }
 0x1d7   : > { %5531 = vmatprep.subr.bf16.mxu1 %v5739_v37 }
 0x1d9   : > { %5435 = vmatpush3.bf16.msra.mxu0 %v5737_v42  ;;  %v7652_v42 = vld [vmem:[#allocation26_spill] sm:$0xff] }
 0x1da   : > { %5436 = vmatprep.subr.bf16.mxu0 %v5738_v38  ;;  %5539 = vmatpush3.bf16.msra.mxu1 %v5739_v37 }
 0x1db   : > { %3030 = vmatmul.mubr.bf16.gmra.mxu1 %v6300_v39  ;;  %5532 = vmatprep.subr.bf16.mxu1 %v5740_v33  ;;  %v7640_v39 = vld [vmem:[#allocation23_spill] sm:$0xff] }
 0x1dc   : > { %4481 = vmatmul.mubr.msk.bf16.gmra.mxu0 %vm6219_vm5, %v6314_v32  ;;  %4439 = vmatprep.mubr.msk.bf16.mxu1 %vm6419_vm4, %v6483_v23  ;;  %v7641_v32 = vld [vmem:[#allocation19_spill] sm:$0xff] }
 0x1dd   : > { %3190 = vmatprep.mubr.bf16.mxu0 %v6371_v18  ;;  %5437 = vmatpush3.bf16.msra.mxu0 %v5738_v38  ;;  %vm7642_vm5 = vnez %v7641_v32 }
 0x1de   : > { %5438 = vmatprep.subr.bf16.mxu0 %v5739_v37  ;;  %5540 = vmatpush3.bf16.msra.mxu1 %v5740_v33 }
 0x1df   : > { %5533 = vmatprep.subr.bf16.mxu1 %v5741_v4 }
 0x1e1   : > { %5439 = vmatpush3.bf16.msra.mxu0 %v5739_v37  ;;  %v7655_v37 = vld [vmem:[#allocation31_spill] sm:$0xff] }
 0x1e2   : > { %5440 = vmatprep.subr.bf16.mxu0 %v5740_v33  ;;  %5541 = vmatpush3.bf16.msra.mxu1 %v5741_v4 }
 0x1e3   : > { %3038 = vmatmul.mubr.bf16.gmra.mxu1 %v6371_v18  ;;  %5534 = vmatprep.subr.bf16.mxu1 %v5742_v0  ;;  %v7645_v18 = vld [vmem:[#allocation21_spill] sm:$0xff] }
 0x1e4   : > { %4484 = vmatmul.mubr.msk.bf16.gmra.mxu0 %vm6275_vm9, %v6382_v3  ;;  %4442 = vmatprep.mubr.msk.bf16.mxu1 %vm6473_vm12, %v6540_v7  ;;  %vm7643_vm9 = vnez %v7576_v20  ;;  %v4903_v3 = vpop.f32.mrf.mxu1 }
 0x1e5   : > { %3198 = vmatprep.mubr.bf16.mxu0 %v6433_v15  ;;  %5441 = vmatpush3.bf16.msra.mxu0 %v5740_v33 }
 0x1e6   : > { %5442 = vmatprep.subr.bf16.mxu0 %v5741_v4  ;;  %5542 = vmatpush3.bf16.msra.mxu1 %v5742_v0 }
 0x1e7   : > { %5535 = vmatprep.subr.bf16.mxu1 %v5743_v49 }
 0x1e9   : > { %5443 = vmatpush3.bf16.msra.mxu0 %v5741_v4 }
 0x1ea   : > { %5444 = vmatprep.subr.bf16.mxu0 %v5742_v0  ;;  %5543 = vmatpush3.bf16.msra.mxu1 %v5743_v49 }
 0x1eb   : > { %3046 = vmatmul.mubr.bf16.gmra.mxu1 %v6433_v15  ;;  %v7648_v15 = vld [vmem:[#allocation24_spill] sm:$0xff] }
 0x1ec   : > { %4487 = vmatmul.mubr.msk.bf16.gmra.mxu0 %vm6348_vm13, %v6438_v24  ;;  %4445 = vmatprep.mubr.msk.bf16.mxu1 %vm6530_vm8, %v6590_v52  ;;  %vm7646_vm13 = vnez %v7645_v18  ;;  %v4904_v24 = vpop.f32.mrf.mxu1  ;;  %v7657_v18 = vld [vmem:[#allocation28_spill] sm:$0xff]  ;;  %vm7669_vm8 = vnez %v7626_v12 }
 0x1ed   : > { %3206 = vmatprep.mubr.bf16.mxu0 %v6489_v2  ;;  %5445 = vmatpush3.bf16.msra.mxu0 %v5742_v0  ;;  %v4905_v45 = vadd.f32 %v4904_v24, %v4903_v3  ;;  %v7660_v3 = vld [vmem:[#allocation34_spill] sm:$0xff] }
 0x1ee   : > { %5446 = vmatprep.subr.bf16.mxu0 %v5743_v49 }
 0x1f1   : > { %5447 = vmatpush3.bf16.msra.mxu0 %v5743_v49 }
 0x1f3   : > { %3054 = vmatmul.mubr.bf16.gmra.mxu1 %v6489_v2  ;;  %v6950_v2 = vld [vmem:[%s7426_s4] ss:$0 sm:$0xff] }
 0x1f4   : > { %4490 = vmatmul.mubr.msk.bf16.gmra.mxu0 %vm7637_vm1, %v7635_v53  ;;  %4448 = vmatprep.mubr.msk.bf16.mxu1 %vm7638_vm2, %v6625_v35  ;;  %vm7649_vm1 = vnez %v7648_v15  ;;  %vm7664_vm2 = vnez %v7619_v26 }
 0x1f5   : > { %3214 = vmatprep.mubr.bf16.mxu0 %v7639_v29 }
 0x1fb   : > { %3062 = vmatmul.mubr.bf16.gmra.mxu1 %v7639_v29 }
 0x1fc   : > { %4493 = vmatmul.mubr.msk.bf16.gmra.mxu0 %vm7642_vm5, %v7640_v39  ;;  %4451 = vmatprep.mubr.msk.bf16.mxu1 %vm7643_vm9, %v6659_v36  ;;  %vm7650_vm5 = vnez %v7592_v40  ;;  %vm7659_vm9 = vnez %v7610_v48 }
 0x1fd   : > { %3222 = vmatprep.mubr.bf16.mxu0 %v7644_v1 }
 0x203   : > { %3070 = vmatmul.mubr.bf16.gmra.mxu1 %v7644_v1  ;;  %v7656_v1 = vld [vmem:[#allocation32_spill] sm:$0xff] }
 0x204   : > { %4496 = vmatmul.mubr.msk.bf16.gmra.mxu0 %vm7646_vm13, %v6601_v27  ;;  %4454 = vmatprep.mubr.msk.bf16.mxu1 %vm7647_vm15, %v6691_v8  ;;  %vm7653_vm13 = vnez %v7652_v42 }
 0x205   : > { %3230 = vmatprep.mubr.bf16.mxu0 %v6631_v58 }
 0x20b   : > { %3078 = vmatmul.mubr.bf16.gmra.mxu1 %v6631_v58  ;;  %v2694_v58 = vadd.f32 %v6638_v25, %v6950_v2  ;;  %v2697_v25 = vadd.f32 %v4905_v45, %v6950_v2 }
 0x20c   : > { %4499 = vmatmul.mubr.msk.bf16.gmra.mxu0 %vm7649_vm1, %v6636_v61  ;;  %4457 = vmatprep.mubr.msk.bf16.mxu1 %vm7650_vm5, %v6723_v44  ;;  %vm7654_vm1 = vnez %v7601_v5 }
 0x20d   : > { %3238 = vmatprep.mubr.bf16.mxu0 %v6665_v14 }
 0x211   : > { %v4906_v27 = vpop.f32.mrf.mxu1 }
 0x212   : > { %v5012_v50 = vpop.f32.mrf.mxu0 }
 0x213   : > { %v4907_v43 = vpop.f32.mrf.mxu1  ;;  %3086 = vmatmul.mubr.bf16.gmra.mxu1 %v6665_v14 }
 0x214   : > { %v4908_v61 = vadd.f32 %v4907_v43, %v4906_v27  ;;  %v5013_v62 = vpop.f32.mrf.mxu0  ;;  %4502 = vmatmul.mubr.msk.bf16.gmra.mxu0 %vm7653_vm13, %v7651_v60  ;;  %4460 = vmatprep.mubr.msk.bf16.mxu1 %vm7654_vm1, %v6755_v51  ;;  %vm7658_vm13 = vnez %v7657_v18 }
 0x215   : > { %v5014_v38 = vadd.f32 %v5013_v62, %v5012_v50  ;;  %3246 = vmatprep.mubr.bf16.mxu0 %v7655_v37  ;;  %v4909_v33 = vpop.f32.mrf.mxu1 }
 0x216   : > { %v5015_v4 = vpop.f32.mrf.mxu0  ;;  %v2702_v50 = vadd.f32 %v4908_v61, %v6950_v2 }
 0x217   : > { %v6963_v0 = vadd.f32 %v5014_v38, %v2694_v58  ;;  %v4910_v14 = vpop.f32.mrf.mxu1 }
 0x218   : > { %v4911_v49 = vadd.f32 %v4910_v14, %v4909_v33  ;;  %v5016_v53 = vpop.f32.mrf.mxu0  ;;  %v7661_v14 = vld [vmem:[#allocation35_spill] sm:$0xff] }
 0x219   : > { %v5017_v21 = vadd.f32 %v5016_v53, %v5015_v4  ;;  %v7662_v53 = vld [vmem:[#allocation30_spill] sm:$0xff] }
 0x21b   : > { %v6965_v29 = vadd.f32 %v5017_v21, %v2697_v25  ;;  %v4912_v39 = vpop.f32.mrf.mxu1  ;;  %3094 = vmatmul.mubr.bf16.gmra.mxu1 %v7655_v37  ;;  %v2705_v37 = vadd.f32 %v4911_v49, %v6950_v2  ;;  %v7665_v21 = vld [vmem:[#allocation37_spill] sm:$0xff] }
 0x21c   : > { %v5018_v32 = vpop.f32.mrf.mxu0  ;;  %4505 = vmatmul.mubr.msk.bf16.gmra.mxu0 %vm7658_vm13, %v7656_v1  ;;  %4463 = vmatprep.mubr.msk.bf16.mxu1 %vm7659_vm9, %v6787_v13  ;;  %vm7663_vm13 = vnez %v7662_v53 }
 0x21d   : > { %3254 = vmatprep.mubr.bf16.mxu0 %v7660_v3  ;;  %v4913_v15 = vpop.f32.mrf.mxu1 }
 0x21e   : > { %v4914_v24 = vadd.f32 %v4913_v15, %v4912_v39  ;;  %v5019_v27 = vpop.f32.mrf.mxu0 }
 0x21f   : > { %v5020_v58 = vadd.f32 %v5019_v27, %v5018_v32  ;;  %v4915_v45 = vpop.f32.mrf.mxu1 }
 0x220   : > { %v5021_v43 = vpop.f32.mrf.mxu0  ;;  %v2710_v1 = vadd.f32 %v4914_v24, %v6950_v2 }
 0x221   : > { %v6976_v62 = vadd.f32 %v5020_v58, %v2702_v50  ;;  %v4916_v60 = vpop.f32.mrf.mxu1 }
 0x222   : > { %v4917_v42 = vadd.f32 %v4916_v60, %v4915_v45  ;;  %v5022_v38 = vpop.f32.mrf.mxu0 }
 0x223   : > { %v5023_v33 = vadd.f32 %v5022_v38, %v5021_v43  ;;  %v4918_v4 = vpop.f32.mrf.mxu1  ;;  %3102 = vmatmul.mubr.bf16.gmra.mxu1 %v7660_v3 }
 0x224   : > { %v5024_v25 = vpop.f32.mrf.mxu0  ;;  %4508 = vmatmul.mubr.msk.bf16.gmra.mxu0 %vm7663_vm13, %v7661_v14  ;;  %4466 = vmatprep.mubr.msk.bf16.mxu1 %vm7664_vm2, %v6819_v30  ;;  %v2713_v43 = vadd.f32 %v4917_v42, %v6950_v2 }
 0x225   : > { %v6986_v61 = vadd.f32 %v5023_v33, %v2705_v37  ;;  %3262 = vmatprep.mubr.bf16.mxu0 %v7665_v21  ;;  %v4919_v39 = vpop.f32.mrf.mxu1  ;;  %v7666_v33 = vld [vmem:[#allocation38_spill] sm:$0xff] }
 0x226   : > { %v4920_v32 = vadd.f32 %v4919_v39, %v4918_v4  ;;  %v5025_v49 = vpop.f32.mrf.mxu0  ;;  %v7667_v4 = vld [vmem:[#allocation33_spill] sm:$0xff] }
 0x227   : > { %v5026_v18 = vadd.f32 %v5025_v49, %v5024_v25  ;;  %v4921_v3 = vpop.f32.mrf.mxu1  ;;  %vm7668_vm13 = vnez %v7667_v4  ;;  %v7670_v25 = vld [vmem:[#allocation40_spill] sm:$0xff] }
 0x228   : > { %v5027_v15 = vpop.f32.mrf.mxu0  ;;  %v2718_v39 = vadd.f32 %v4920_v32, %v6950_v2 }
 0x229   : > { %v6990_v27 = vadd.f32 %v5026_v18, %v2710_v1  ;;  %v4922_v50 = vpop.f32.mrf.mxu1 }
 0x22a   : > { %v4923_v58 = vadd.f32 %v4922_v50, %v4921_v3  ;;  %v5028_v45 = vpop.f32.mrf.mxu0 }
 0x22b   : > { %v5029_v60 = vadd.f32 %v5028_v45, %v5027_v15  ;;  %v4924_v38 = vpop.f32.mrf.mxu1  ;;  %3110 = vmatmul.mubr.bf16.gmra.mxu1 %v7665_v21 }
 0x22c   : > { %v5030_v37 = vpop.f32.mrf.mxu0  ;;  %4511 = vmatmul.mubr.msk.bf16.gmra.mxu0 %vm7668_vm13, %v7666_v33  ;;  %4469 = vmatprep.mubr.msk.bf16.mxu1 %vm7669_vm8, %v6850_v57  ;;  %v2721_v45 = vadd.f32 %v4923_v58, %v6950_v2 }
 0x22d   : > { %v7000_v24 = vadd.f32 %v5029_v60, %v2713_v43  ;;  %3270 = vmatprep.mubr.bf16.mxu0 %v7670_v25  ;;  %v4925_v14 = vpop.f32.mrf.mxu1 }
 0x22e   : > { %v4926_v53 = vadd.f32 %v4925_v14, %v4924_v38  ;;  %v5031_v42 = vpop.f32.mrf.mxu0  ;;  %v7671_v38 = vld [vmem:[#allocation36_spill] sm:$0xff] }
 0x22f   : > { %v5032_v49 = vadd.f32 %v5031_v42, %v5030_v37  ;;  %v4927_v21 = vpop.f32.mrf.mxu1  ;;  %vm7672_vm13 = vnez %v7671_v38 }
 0x230   : > { %v5033_v1 = vpop.f32.mrf.mxu0  ;;  %v2726_v14 = vadd.f32 %v4926_v53, %v6950_v2  ;;  %v7674_v53 = vld [vmem:[#allocation39_spill] sm:$0xff] }
 0x231   : > { %v7004_v18 = vadd.f32 %v5032_v49, %v2718_v39  ;;  %v4928_v3 = vpop.f32.mrf.mxu1  ;;  %v1923_v39 = vld [vmem:[#allocation2 + $0x109] sm:$0xff]  ;;  %v1924_v49 = vld [vmem:[#allocation2 + $0x111] sm:$0xff] }
 0x232   : > { %v4929_v15 = vadd.f32 %v4928_v3, %v4927_v21  ;;  %v5034_v50 = vpop.f32.mrf.mxu0  ;;  %v7020_v38 = vpack.c.bf16 %v1924_v49, %v1923_v39 }
 0x233   : > { %v5035_v33 = vadd.f32 %v5034_v50, %v5033_v1  ;;  %v4930_v43 = vpop.f32.mrf.mxu1  ;;  %3118 = vmatmul.mubr.bf16.gmra.mxu1 %v7670_v25 }
 0x234   : > { %v5036_v60 = vpop.f32.mrf.mxu0  ;;  %4514 = vmatmul.mubr.msk.bf16.gmra.mxu0 %vm7672_vm13, %v6798_v19  ;;  %4472 = vmatprep.mubr.msk.bf16.mxu1 %vm6846_vm7, %v6871_v54  ;;  %vm7675_vm13 = vnez %v7674_v53 }
 0x235   : > { %v7014_v32 = vadd.f32 %v5035_v33, %v2721_v45  ;;  %3278 = vmatprep.mubr.bf16.mxu0 %v6825_v47  ;;  %v4931_v37 = vpop.f32.mrf.mxu1  ;;  %v2729_v45 = vadd.f32 %v4929_v15, %v6950_v2 }
 0x236   : > { %v4932_v4 = vadd.f32 %v4931_v37, %v4930_v43  ;;  %v5037_v58 = vpop.f32.mrf.mxu0  ;;  %v7677_v37 = vld [vmem:[#allocation27_spill] sm:$0xff] }
 0x237   : > { %7673 = vst [vmem:[#allocation20_spill] sm:$0xff] %v7014_v32  ;;  %v5038_v42 = vadd.f32 %v5037_v58, %v5036_v60  ;;  %v4933_v25 = vpop.f32.mrf.mxu1 }
 0x238   : > { %v5039_v21 = vpop.f32.mrf.mxu0 }
 0x239   : > { %v7018_v1 = vadd.f32 %v5038_v42, %v2726_v14  ;;  %v4934_v19 = vpop.f32.mrf.mxu1  ;;  %v2734_v42 = vadd.f32 %v4932_v4, %v6950_v2 }
 0x23a   : > { %v4935_v3 = vadd.f32 %v4934_v19, %v4933_v25  ;;  %v5040_v50 = vpop.f32.mrf.mxu0 }
 0x23b   : > { %v5041_v33 = vadd.f32 %v5040_v50, %v5039_v21  ;;  %v4936_v32 = vpop.f32.mrf.mxu1  ;;  %3126 = vmatmul.mubr.bf16.gmra.mxu1 %v6825_v47 }
 0x23c   : > { %v5042_v43 = vpop.f32.mrf.mxu0  ;;  %4517 = vmatmul.mubr.msk.bf16.gmra.mxu0 %vm7675_vm13, %v6830_v46  ;;  %4475 = vmatprep.mubr.msk.bf16.mxu1 %vm6867_vm0, %v7020_v38  ;;  %v5752_v46 = vld [vmem:[#allocation2 + $0x8] sm:$0xff] }
 0x23d   : > { %v7030_v60 = vadd.f32 %v5041_v33, %v2729_v45  ;;  %3286 = vmatprep.mubr.bf16.mxu0 %v7677_v37  ;;  %v4937_v58 = vpop.f32.mrf.mxu1  ;;  %v2025_v19 = vpack.c.bf16 %v5752_v46, %v5752_v46  ;;  %v2737_v45 = vadd.f32 %v4935_v3, %v6950_v2 }
 0x23e   : > { %v4938_v14 = vadd.f32 %v4937_v58, %v4936_v32  ;;  %v5043_v15 = vpop.f32.mrf.mxu0 }
 0x23f   : > { %7676 = vst [vmem:[#allocation18_spill] sm:$0xff] %v7030_v60  ;;  %v5044_v25 = vadd.f32 %v5043_v15, %v5042_v43  ;;  %v4939_v47 = vpop.f32.mrf.mxu1 }
 0x240   : > { %v5045_v39 = vpop.f32.mrf.mxu0  ;;  %v2742_v3 = vadd.f32 %v4938_v14, %v6950_v2 }
 0x241   : > { %v7034_v49 = vadd.f32 %v5044_v25, %v2734_v42  ;;  %v4940_v21 = vpop.f32.mrf.mxu1 }
 0x242   : > { %v4941_v50 = vadd.f32 %v4940_v21, %v4939_v47  ;;  %v5046_v53 = vpop.f32.mrf.mxu0  ;;  %v1974_v47 = vld [vmem:[#allocation2 + $0x11f] sm:$0xff] }
 0x243   : > { %v5047_v33 = vadd.f32 %v5046_v53, %v5045_v39  ;;  %v4942_v60 = vpop.f32.mrf.mxu1  ;;  %3134 = vmatmul.mubr.bf16.gmra.mxu1 %v7677_v37  ;;  %v1973_v37 = vld [vmem:[#allocation2 + $0x117] sm:$0xff] }
 0x244   : > { %v5048_v32 = vpop.f32.mrf.mxu0  ;;  %4520 = vmatmul.mubr.msk.bf16.gmra.mxu0 %vm6810_vm11, %v6855_v55  ;;  %5464 = vmatprep.mubr.msk.bf16.mxu1 %vm7647_vm15, %v6723_v44  ;;  %v4522_v16 = vpack.c.bf16 %v1974_v47, %v1973_v37  ;;  %v2745_v44 = vadd.f32 %v4941_v50, %v6950_v2 }
 0x245   : > { %v7044_v4 = vadd.f32 %v5047_v33, %v2737_v45  ;;  %v4943_v43 = vpop.f32.mrf.mxu1  ;;  %3294 = vmatprep.mubr.bf16.mxu0 %v2025_v19 }
 0x246   : > { %v4944_v58 = vadd.f32 %v4943_v43, %v4942_v60  ;;  %v5049_v15 = vpop.f32.mrf.mxu0 }
 0x247   : > { %v5050_v42 = vadd.f32 %v5049_v15, %v5048_v32  ;;  %v4945_v25 = vpop.f32.mrf.mxu1 }
 0x248   : > { %v5051_v39 = vpop.f32.mrf.mxu0  ;;  %v2750_v40 = vadd.f32 %v4944_v58, %v6950_v2 }
 0x249   : > { %v7047_v21 = vadd.f32 %v5050_v42, %v2742_v3  ;;  %v4946_v22 = vpop.f32.mrf.mxu1 }
 0x24a   : > { %v4947_v55 = vadd.f32 %v4946_v22, %v4945_v25  ;;  %v5052_v46 = vpop.f32.mrf.mxu0 }
 0x24b   : > { %v5053_v53 = vadd.f32 %v5052_v46, %v5051_v39  ;;  %v4948_v45 = vpop.f32.mrf.mxu1  ;;  %5465 = vmatmul.mubr.msk.bf16.vlgmr.msra.gmra.mxu1 %vm7650_vm5, %v6755_v51 }
 0x24c   : > { %v5054_v60 = vpop.f32.mrf.mxu0  ;;  %4523 = vmatmul.mubr.msk.bf16.gmra.mxu0 %vm6841_vm3, %v4522_v16  ;;  %5468 = vmatprep.mubr.msk.bf16.mxu1 %vm7654_vm1, %v6787_v13  ;;  %v2753_v5 = vadd.f32 %v4947_v55, %v6950_v2  ;;  %v2027_v16 = vld [vmem:[#allocation2 + $0x121] sm:$0xff] }
 0x24d   : > { %v7058_v14 = vadd.f32 %v5053_v53, %v2745_v44  ;;  %5448 = vmatprep.mubr.msk.bf16.mxu0 %vm6232_vm6, %v6365_v17  ;;  %v4949_v19 = vpop.f32.mrf.mxu1  ;;  %vm7678_vm6 = vnez %v7562_v28 }
 0x24e   : > { %v4950_v50 = vadd.f32 %v4949_v19, %v4948_v45  ;;  %v5055_v33 = vpop.f32.mrf.mxu0 }
 0x24f   : > { %v5056_v51 = vadd.f32 %v5055_v33, %v5054_v60  ;;  %v4951_v32 = vpop.f32.mrf.mxu1 }
 0x250   : > { %v5057_v43 = vpop.f32.mrf.mxu0  ;;  %v2758_v48 = vadd.f32 %v4950_v50, %v6950_v2 }
 0x251   : > { %v7064_v41 = vadd.f32 %v5056_v51, %v2750_v40  ;;  %v4952_v15 = vpop.f32.mrf.mxu1 }
 0x252   : > { %v5058_v3 = vpop.f32.mrf.mxu0 }
 0x253   : > { %v5059_v13 = vadd.f32 %v5058_v3, %v5057_v43  ;;  %v4954_v42 = vpop.f32.mrf.mxu1  ;;  %5469 = vmatmul.mubr.msk.bf16.gmra.mxu1 %vm7659_vm9, %v6819_v30  ;;  %v4953_v30 = vadd.f32 %v4952_v15, %v4951_v32 }
 0x254   : > { %v5060_v59 = vpop.f32.mrf.mxu0  ;;  %5449 = vmatmul.mubr.msk.bf16.vlgmr.msra.gmra.mxu0 %vm6290_vm10, %v6427_v11  ;;  %5472 = vmatprep.mubr.msk.bf16.mxu1 %vm7664_vm2, %v6850_v57  ;;  %vm7679_vm10 = vnez %v7569_v6 }
 0x255   : > { %v7076_v17 = vadd.f32 %v5059_v13, %v2753_v5  ;;  %5452 = vmatprep.mubr.msk.bf16.mxu0 %vm6361_vm14, %v6483_v23  ;;  %v4955_v58 = vpop.f32.mrf.mxu1  ;;  %v2761_v57 = vadd.f32 %v4953_v30, %v6950_v2  ;;  %v2026_v23 = vld [vmem:[#allocation2 + $0x119] sm:$0xff]  ;;  %vm7680_vm14 = vnez %v7576_v20 }
 0x256   : > { %v4956_v25 = vadd.f32 %v4955_v58, %v4954_v42  ;;  %v5061_v37 = vpop.f32.mrf.mxu0  ;;  %v4570_v19 = vpack.c.bf16 %v2027_v16, %v2026_v23 }
 0x257   : > { %v5062_v47 = vadd.f32 %v5061_v37, %v5060_v59  ;;  %v4957_v39 = vpop.f32.mrf.mxu1 }
 0x258   : > { %v5063_v31 = vpop.f32.mrf.mxu0  ;;  %v2766_v45 = vadd.f32 %v4956_v25, %v6950_v2 }
 0x259   : > { %v7082_v11 = vadd.f32 %v5062_v47, %v2758_v48  ;;  %v4958_v22 = vpop.f32.mrf.mxu1 }
 0x25a   : > { %v5064_v26 = vpop.f32.mrf.mxu0  ;;  %v4959_v60 = vadd.f32 %v4958_v22, %v4957_v39 }
 0x25b   : > { %v5065_v55 = vadd.f32 %v5064_v26, %v5063_v31  ;;  %v4960_v46 = vpop.f32.mrf.mxu1  ;;  %5473 = vmatmul.mubr.msk.bf16.gmra.mxu1 %vm7669_vm8, %v6871_v54 }
 0x25c   : > { %v5066_v10 = vpop.f32.mrf.mxu0  ;;  %5453 = vmatmul.mubr.msk.bf16.gmra.mxu0 %vm6419_vm4, %v6540_v7  ;;  %5476 = vmatprep.mubr.msk.bf16.mxu1 %vm6846_vm7, %v7020_v38  ;;  %v2769_v40 = vadd.f32 %v4959_v60, %v6950_v2 }
 0x25d   : > { %v7094_v44 = vadd.f32 %v5065_v55, %v2761_v57  ;;  %5456 = vmatprep.mubr.msk.bf16.mxu0 %vm6473_vm12, %v6590_v52  ;;  %v4961_v53 = vpop.f32.mrf.mxu1 }
 0x25e   : > { %v4962_v12 = vadd.f32 %v4961_v53, %v4960_v46  ;;  %v5067_v54 = vpop.f32.mrf.mxu0 }
 0x25f   : > { %v5068_v56 = vadd.f32 %v5067_v54, %v5066_v10  ;;  %v4963_v7 = vpop.f32.mrf.mxu1 }
 0x260   : > { %v5069_v50 = vpop.f32.mrf.mxu0  ;;  %v2774_v5 = vadd.f32 %v4962_v12, %v6950_v2 }
 0x261   : > { %v7100_v34 = vadd.f32 %v5068_v56, %v2766_v45  ;;  %v4964_v38 = vpop.f32.mrf.mxu1 }
 0x262   : > { %v5070_v33 = vpop.f32.mrf.mxu0  ;;  %v4965_v13 = vadd.f32 %v4964_v38, %v4963_v7 }
 0x263   : > { %v5071_v51 = vadd.f32 %v5070_v33, %v5069_v50  ;;  %v4966_v32 = vpop.f32.mrf.mxu1  ;;  %5477 = vmatmul.mubr.msk.bf16.gmra.mxu1 %vm6867_vm0, %v4570_v19 }
 0x264   : > { %v5072_v63 = vpop.f32.mrf.mxu0  ;;  %5457 = vmatmul.mubr.msk.bf16.gmra.mxu0 %vm7678_vm6, %v6625_v35  ;;  %v2777_v35 = vadd.f32 %v4965_v13, %v6950_v2 }
 0x265   : > { %v7108_v52 = vadd.f32 %v5071_v51, %v2769_v40  ;;  %5460 = vmatprep.mubr.msk.bf16.mxu0 %vm7679_vm10, %v6659_v36  ;;  %v4967_v43 = vpop.f32.mrf.mxu1 }
 0x266   : > { %v4968_v15 = vadd.f32 %v4967_v43, %v4966_v32  ;;  %v5073_v3 = vpop.f32.mrf.mxu0 }
 0x267   : > { %v5074_v42 = vadd.f32 %v5073_v3, %v5072_v63  ;;  %v4969_v9 = vpop.f32.mrf.mxu1 }
 0x268   : > { %v5075_v59 = vpop.f32.mrf.mxu0  ;;  %v2782_v31 = vadd.f32 %v4968_v15, %v6950_v2 }
 0x269   : > { %v7114_v58 = vadd.f32 %v5074_v42, %v2774_v5  ;;  %v4970_v25 = vpop.f32.mrf.mxu1 }
 0x26a   : > { %v5076_v28 = vpop.f32.mrf.mxu0  ;;  %v4971_v22 = vadd.f32 %v4970_v25, %v4969_v9 }
 0x26b   : > { %v5077_v37 = vadd.f32 %v5076_v28, %v5075_v59  ;;  %v4972_v48 = vpop.f32.mrf.mxu1 }
 0x26c   : > { %v5078_v30 = vpop.f32.mrf.mxu0  ;;  %5461 = vmatmul.mubr.msk.bf16.gmra.mxu0 %vm7680_vm14, %v6691_v8  ;;  %v2785_v16 = vadd.f32 %v4971_v22, %v6950_v2 }
 0x26d   : > { %v7120_v6 = vadd.f32 %v5077_v37, %v2777_v35  ;;  %v4973_v36 = vpop.f32.mrf.mxu1  ;;  %v5744_v37 = vld [vmem:[#allocation9 + $0x38] sm:$0xff]  }
 0x26e   : > { %v4974_v47 = vadd.f32 %v4973_v36, %v4972_v48  ;;  %v5079_v39 = vpop.f32.mrf.mxu0  ;;  %5480 = vmatprep.subr.bf16.mxu1 %v5744_v37 }
 0x26f   : > { %v5080_v26 = vadd.f32 %v5079_v39, %v5078_v30  ;;  %v4975_v57 = vpop.f32.mrf.mxu1  ;;  %5481 = vmatpush3.bf16.msra.mxu1 %v5744_v37  ;;  %v5748_v37 = vld [vmem:[#allocation9 + $0x18] sm:$0xff]  }
 0x270   : > { %v5081_v55 = vpop.f32.mrf.mxu0  ;;  %v2790_v56 = vadd.f32 %v4974_v47, %v6950_v2 }
 0x271   : > { %v7123_v46 = vadd.f32 %v5080_v26, %v2782_v31  ;;  %v4976_v10 = vpop.f32.mrf.mxu1  ;;  %v5745_v26 = vld [vmem:[#allocation9 + $0x30] sm:$0xff]  }
 0x272   : > { %v5082_v23 = vpop.f32.mrf.mxu0  ;;  %v4977_v7 = vadd.f32 %v4976_v10, %v4975_v57  ;;  %5482 = vmatprep.subr.bf16.mxu1 %v5745_v26 }
 0x273   : > { %v5083_v53 = vadd.f32 %v5082_v23, %v5081_v55  ;;  %v4978_v20 = vpop.f32.mrf.mxu1  ;;  %5483 = vmatpush3.bf16.msra.mxu1 %v5745_v26 }
 0x274   : > { %v5084_v8 = vpop.f32.mrf.mxu0  ;;  %v2793_v32 = vadd.f32 %v4977_v7, %v6950_v2 }
 0x275   : > { %v7126_v12 = vadd.f32 %v5083_v53, %v2785_v16  ;;  %v4979_v54 = vpop.f32.mrf.mxu1 }
 0x276   : > { %v4980_v45 = vadd.f32 %v4979_v54, %v4978_v20  ;;  %v5085_v60 = vpop.f32.mrf.mxu0 }
 0x277   : > { %v5086_v19 = vadd.f32 %v5085_v60, %v5084_v8  ;;  %v4981_v50 = vpop.f32.mrf.mxu1 }
 0x278   : > { %v5087_v38 = vpop.f32.mrf.mxu0  ;;  %v2798_v9 = vadd.f32 %v4980_v45, %v6950_v2  ;;  %v5746_v45 = vld [vmem:[#allocation9 + $0x28] sm:$0xff]  }
 0x279   : > { %v7129_v33 = vadd.f32 %v5086_v19, %v2790_v56  ;;  %v4982_v40 = vpop.f32.mrf.mxu1  ;;  %5484 = vmatprep.subr.bf16.mxu1 %v5746_v45 }
 0x27a   : > { %v5088_v51 = vpop.f32.mrf.mxu0  ;;  %v4983_v59 = vadd.f32 %v4982_v40, %v4981_v50  ;;  %5485 = vmatpush3.bf16.msra.mxu1 %v5746_v45 }
 0x27b   : > { %v5089_v63 = vadd.f32 %v5088_v51, %v5087_v38  ;;  %v4984_v43 = vpop.f32.mrf.mxu1 }
 0x27c   : > { %v5090_v15 = vpop.f32.mrf.mxu0  ;;  %v2801_v47 = vadd.f32 %v4983_v59, %v6950_v2 }
 0x27d   : > { %v7132_v3 = vadd.f32 %v5089_v63, %v2793_v32  ;;  %v4985_v5 = vpop.f32.mrf.mxu1  ;;  %v5747_v63 = vld [vmem:[#allocation9 + $0x20] sm:$0xff]  }
 0x27e   : > { %v4986_v13 = vadd.f32 %v4985_v5, %v4984_v43  ;;  %v5091_v42 = vpop.f32.mrf.mxu0  ;;  %5486 = vmatprep.subr.bf16.mxu1 %v5747_v63 }
 0x27f   : > { %v5092_v25 = vadd.f32 %v5091_v42, %v5090_v15  ;;  %v4987_v28 = vpop.f32.mrf.mxu1  ;;  %5487 = vmatpush3.bf16.msra.mxu1 %v5747_v63 }
 0x280   : > { %v5093_v35 = vpop.f32.mrf.mxu0  ;;  %v2806_v16 = vadd.f32 %v4986_v13, %v6950_v2  ;;  %5488 = vmatprep.subr.bf16.mxu1 %v5748_v37 }
 0x281   : > { %v7135_v48 = vadd.f32 %v5092_v25, %v2798_v9  ;;  %v4988_v30 = vpop.f32.mrf.mxu1 }
 0x282   : > { %v5094_v36 = vpop.f32.mrf.mxu0  ;;  %v4989_v53 = vadd.f32 %v4988_v30, %v4987_v28 }
 0x283   : > { %v5095_v39 = vadd.f32 %v5094_v36, %v5093_v35  ;;  %v4990_v31 = vpop.f32.mrf.mxu1  ;;  %5489 = vmatpush3.bf16.msra.mxu1 %v5748_v37 }
 0x284   : > { %v5096_v22 = vpop.f32.mrf.mxu0  ;;  %v2809_v19 = vadd.f32 %v4989_v53, %v6950_v2 }
 0x285   : > { %v7138_v57 = vadd.f32 %v5095_v39, %v2801_v47  ;;  %v4991_v55 = vpop.f32.mrf.mxu1 }
 0x286   : > { %v4992_v10 = vadd.f32 %v4991_v55, %v4990_v31  ;;  %v5097_v23 = vpop.f32.mrf.mxu0 }
 0x287   : > { %v5098_v20 = vadd.f32 %v5097_v23, %v5096_v22  ;;  %v4993_v8 = vpop.f32.mrf.mxu1 }
 0x288   : > { %v5099_v54 = vpop.f32.mrf.mxu0  ;;  %v2814_v5 = vadd.f32 %v4992_v10, %v6950_v2  ;;  %v5749_v10 = vld [vmem:[#allocation9 + $0x10] sm:$0xff]  }
 0x289   : > { %v7141_v60 = vadd.f32 %v5098_v20, %v2806_v16  ;;  %v4994_v56 = vpop.f32.mrf.mxu1  ;;  %5490 = vmatprep.subr.bf16.mxu1 %v5749_v10 }
 0x28a   : > { %v5100_v7 = vpop.f32.mrf.mxu0  ;;  %v4995_v13 = vadd.f32 %v4994_v56, %v4993_v8  ;;  %5491 = vmatpush3.bf16.msra.mxu1 %v5749_v10  ;;  %v5750_v56 = vld [vmem:[#allocation9 + $0x8] sm:$0xff]  }
 0x28b   : > { %v5101_v50 = vadd.f32 %v5100_v7, %v5099_v54  ;;  %v5124_v38 = vpop.f32.mrf.mxu1  ;;  %5492 = vmatprep.subr.bf16.mxu1 %v5750_v56 }
 0x28c   : > { %v5102_v40 = vpop.f32.mrf.mxu0  ;;  %v2817_v47 = vadd.f32 %v4995_v13, %v6950_v2 }
 0x28d   : > { %v7144_v51 = vadd.f32 %v5101_v50, %v2809_v19  ;;  %v5125_v32 = vpop.f32.mrf.mxu1 }
 0x28e   : > { %v5103_v43 = vpop.f32.mrf.mxu0  ;;  %v5126_v15 = vadd.f32 %v5125_v32, %v5124_v38  ;;  %5493 = vmatpush3.bf16.msra.mxu1 %v5750_v56  ;;  %v7681_v56 = vld [vmem:[#allocation20_spill] sm:$0xff] }
 0x28f   : > { %v5104_v42 = vadd.f32 %v5103_v43, %v5102_v40  ;;  %v5127_v9 = vpop.f32.mrf.mxu1  ;;  %v5751_v43 = vld [vmem:[#allocation9] sm:$0xff]  }
 0x290   : > { %v3016_v59 = vadd.f32 %v5126_v15, %v6963_v0  ;;  %v5105_v25 = vpop.f32.mrf.mxu0  ;;  %5494 = vmatprep.subr.bf16.mxu1 %v5751_v43 }
 0x291   : > { %v7148_v28 = vadd.f32 %v5104_v42, %v2814_v5  ;;  %v5128_v35 = vpop.f32.mrf.mxu1 }
 0x292   : > { %v5106_v30 = vpop.f32.mrf.mxu0  ;;  %v5129_v36 = vadd.f32 %v5128_v35, %v5127_v9  ;;  %5495 = vmatpush3.bf16.msra.mxu1 %v5751_v43 }
 0x293   : > { %v5107_v39 = vadd.f32 %v5106_v30, %v5105_v25  ;;  %v5130_v31 = vpop.f32.mrf.mxu1 }
 0x294   : > { %v3019_v22 = vadd.f32 %v5129_v36, %v6965_v29  ;;  %v5236_v26 = vpop.f32.mrf.mxu0 }
 0x295   : > { %v7152_v55 = vadd.f32 %v5107_v39, %v2817_v47  ;;  %v5131_v0 = vpop.f32.mrf.mxu1 }
 0x296   : > { %v5132_v23 = vadd.f32 %v5131_v0, %v5130_v31  ;;  %v5237_v16 = vpop.f32.mrf.mxu0 }
 0x297   : > { %v5238_v53 = vadd.f32 %v5237_v16, %v5236_v26  ;;  %v5133_v20 = vpop.f32.mrf.mxu1 }
 0x298   : > { %v3024_v8 = vadd.f32 %v5132_v23, %v6976_v62  ;;  %v5239_v54 = vpop.f32.mrf.mxu0 }
 0x299   : > { %v5134_v2 = vpop.f32.mrf.mxu1  ;;  %v7155_v45 = vadd.f32 %v5238_v53, %v3016_v59 }
 0x29a   : > { %v5135_v29 = vadd.f32 %v5134_v2, %v5133_v20  ;;  %v5240_v7 = vpop.f32.mrf.mxu0 }
 0x29b   : > { %v5241_v19 = vadd.f32 %v5240_v7, %v5239_v54  ;;  %v5136_v50 = vpop.f32.mrf.mxu1 }
 0x29c   : > { %v3027_v38 = vadd.f32 %v5135_v29, %v6986_v61  ;;  %v5242_v40 = vpop.f32.mrf.mxu0 }
 0x29d   : > { %v5137_v32 = vpop.f32.mrf.mxu1  ;;  %v7158_v63 = vadd.f32 %v5241_v19, %v3019_v22 }
 0x29e   : > { %v5138_v62 = vadd.f32 %v5137_v32, %v5136_v50  ;;  %v5243_v15 = vpop.f32.mrf.mxu0 }
 0x29f   : > { %v5244_v5 = vadd.f32 %v5243_v15, %v5242_v40  ;;  %v5139_v13 = vpop.f32.mrf.mxu1 }
 0x2a0   : > { %v3032_v42 = vadd.f32 %v5138_v62, %v6990_v27  ;;  %v5245_v9 = vpop.f32.mrf.mxu0 }
 0x2a1   : > { %v5140_v59 = vpop.f32.mrf.mxu1  ;;  %v7161_v25 = vadd.f32 %v5244_v5, %v3024_v8 }
 0x2a2   : > { %v5141_v35 = vadd.f32 %v5140_v59, %v5139_v13  ;;  %v5246_v61 = vpop.f32.mrf.mxu0  ;;  %v7682_v59 = vld [vmem:[#allocation18_spill] sm:$0xff] }
 0x2a3   : > { %v5247_v37 = vadd.f32 %v5246_v61, %v5245_v9  ;;  %v5142_v30 = vpop.f32.mrf.mxu1 }
 0x2a4   : > { %v3035_v36 = vadd.f32 %v5141_v35, %v7000_v24  ;;  %v5248_v47 = vpop.f32.mrf.mxu0 }
 0x2a5   : > { %v5143_v39 = vpop.f32.mrf.mxu1  ;;  %v7164_v31 = vadd.f32 %v5247_v37, %v3027_v38 }
 0x2a6   : > { %v5144_v22 = vadd.f32 %v5143_v39, %v5142_v30  ;;  %v5249_v26 = vpop.f32.mrf.mxu0 }
 0x2a7   : > { %v5250_v0 = vadd.f32 %v5249_v26, %v5248_v47  ;;  %v5145_v10 = vpop.f32.mrf.mxu1 }
 0x2a8   : > { %v3040_v27 = vadd.f32 %v5144_v22, %v7004_v18  ;;  %v5251_v23 = vpop.f32.mrf.mxu0 }
 0x2a9   : > { %v5146_v16 = vpop.f32.mrf.mxu1  ;;  %v7167_v53 = vadd.f32 %v5250_v0, %v3032_v42 }
 0x2aa   : > { %v5147_v20 = vadd.f32 %v5146_v16, %v5145_v10  ;;  %v5252_v8 = vpop.f32.mrf.mxu0 }
 0x2ab   : > { %v5253_v54 = vadd.f32 %v5252_v8, %v5251_v23  ;;  %v5148_v2 = vpop.f32.mrf.mxu1 }
 0x2ac   : > { %v3043_v24 = vadd.f32 %v5147_v20, %v7681_v56  ;;  %v5254_v29 = vpop.f32.mrf.mxu0 }
 0x2ad   : > { %v5149_v7 = vpop.f32.mrf.mxu1  ;;  %v7170_v19 = vadd.f32 %v5253_v54, %v3035_v36 }
 0x2ae   : > { %v5150_v50 = vadd.f32 %v5149_v7, %v5148_v2  ;;  %v5255_v38 = vpop.f32.mrf.mxu0 }
 0x2af   : > { %v5256_v40 = vadd.f32 %v5255_v38, %v5254_v29  ;;  %v5151_v32 = vpop.f32.mrf.mxu1 }
 0x2b0   : > { %v3048_v18 = vadd.f32 %v5150_v50, %v7018_v1  ;;  %v5257_v43 = vpop.f32.mrf.mxu0 }
 0x2b1   : > { %v5152_v62 = vpop.f32.mrf.mxu1  ;;  %v7173_v15 = vadd.f32 %v5256_v40, %v3040_v27 }
 0x2b2   : > { %v5153_v5 = vadd.f32 %v5152_v62, %v5151_v32  ;;  %v5258_v13 = vpop.f32.mrf.mxu0 }
 0x2b3   : > { %v5259_v42 = vadd.f32 %v5258_v13, %v5257_v43  ;;  %v5154_v9 = vpop.f32.mrf.mxu1 }
 0x2b4   : > { %v3051_v35 = vadd.f32 %v5153_v5, %v7682_v59  ;;  %v5260_v61 = vpop.f32.mrf.mxu0 }
 0x2b5   : > { %v5155_v37 = vpop.f32.mrf.mxu1  ;;  %v7176_v30 = vadd.f32 %v5259_v42, %v3043_v24 }
 0x2b6   : > { %v5156_v36 = vadd.f32 %v5155_v37, %v5154_v9  ;;  %v5261_v47 = vpop.f32.mrf.mxu0 }
 0x2b7   : > { %v5262_v39 = vadd.f32 %v5261_v47, %v5260_v61  ;;  %v5157_v22 = vpop.f32.mrf.mxu1 }
 0x2b8   : > { %v3056_v1 = vadd.f32 %v5156_v36, %v7034_v49  ;;  %v5263_v26 = vpop.f32.mrf.mxu0 }
 0x2b9   : > { %v5158_v0 = vpop.f32.mrf.mxu1  ;;  %v7179_v10 = vadd.f32 %v5262_v39, %v3048_v18 }
 0x2ba   : > { %v5159_v27 = vadd.f32 %v5158_v0, %v5157_v22  ;;  %v5264_v23 = vpop.f32.mrf.mxu0 }
 0x2bb   : > { %v5265_v16 = vadd.f32 %v5264_v23, %v5263_v26  ;;  %v5160_v20 = vpop.f32.mrf.mxu1 }
 0x2bc   : > { %v3059_v8 = vadd.f32 %v5159_v27, %v7044_v4  ;;  %v5266_v54 = vpop.f32.mrf.mxu0 }
 0x2bd   : > { %v5161_v2 = vpop.f32.mrf.mxu1  ;;  %v7182_v56 = vadd.f32 %v5265_v16, %v3051_v35 }
 0x2be   : > { %v5162_v24 = vadd.f32 %v5161_v2, %v5160_v20  ;;  %v5267_v29 = vpop.f32.mrf.mxu0 }
 0x2bf   : > { %v5268_v7 = vadd.f32 %v5267_v29, %v5266_v54  ;;  %v5163_v50 = vpop.f32.mrf.mxu1 }
 0x2c0   : > { %v3064_v49 = vadd.f32 %v5162_v24, %v7047_v21  ;;  %v5269_v38 = vpop.f32.mrf.mxu0 }
 0x2c1   : > { %v5164_v40 = vpop.f32.mrf.mxu1  ;;  %v7185_v32 = vadd.f32 %v5268_v7, %v3056_v1 }
 0x2c2   : > { %v5165_v18 = vadd.f32 %v5164_v40, %v5163_v50  ;;  %v5270_v43 = vpop.f32.mrf.mxu0 }
 0x2c3   : > { %v5271_v62 = vadd.f32 %v5270_v43, %v5269_v38  ;;  %v5166_v5 = vpop.f32.mrf.mxu1 }
 0x2c4   : > { %v3067_v4 = vadd.f32 %v5165_v18, %v7058_v14  ;;  %v5272_v13 = vpop.f32.mrf.mxu0 }
 0x2c5   : > { %v5167_v42 = vpop.f32.mrf.mxu1  ;;  %v7188_v9 = vadd.f32 %v5271_v62, %v3059_v8 }
 0x2c6   : > { %v5168_v59 = vadd.f32 %v5167_v42, %v5166_v5  ;;  %v5273_v35 = vpop.f32.mrf.mxu0 }
 0x2c7   : > { %v5274_v61 = vadd.f32 %v5273_v35, %v5272_v13  ;;  %v5169_v37 = vpop.f32.mrf.mxu1 }
 0x2c8   : > { %v3072_v21 = vadd.f32 %v5168_v59, %v7064_v41  ;;  %v5275_v36 = vpop.f32.mrf.mxu0 }
 0x2c9   : > { %v5170_v47 = vpop.f32.mrf.mxu1  ;;  %v7191_v39 = vadd.f32 %v5274_v61, %v3064_v49 }
 0x2ca   : > { %v5171_v22 = vadd.f32 %v5170_v47, %v5169_v37  ;;  %v5276_v1 = vpop.f32.mrf.mxu0 }
 0x2cb   : > { %v5277_v26 = vadd.f32 %v5276_v1, %v5275_v36  ;;  %v5172_v0 = vpop.f32.mrf.mxu1 }
 0x2cc   : > { %v3075_v14 = vadd.f32 %v5171_v22, %v7076_v17  ;;  %v5278_v27 = vpop.f32.mrf.mxu0 }
 0x2cd   : > { %v5173_v23 = vpop.f32.mrf.mxu1  ;;  %v7194_v16 = vadd.f32 %v5277_v26, %v3067_v4 }
 0x2ce   : > { %v5174_v20 = vadd.f32 %v5173_v23, %v5172_v0  ;;  %v5279_v8 = vpop.f32.mrf.mxu0 }
 0x2cf   : > { %v5280_v54 = vadd.f32 %v5279_v8, %v5278_v27  ;;  %v5175_v2 = vpop.f32.mrf.mxu1 }
 0x2d0   : > { %v3080_v41 = vadd.f32 %v5174_v20, %v7082_v11  ;;  %v5281_v24 = vpop.f32.mrf.mxu0 }
 0x2d1   : > { %v5176_v29 = vpop.f32.mrf.mxu1  ;;  %v7197_v7 = vadd.f32 %v5280_v54, %v3072_v21 }
 0x2d2   : > { %v5282_v50 = vpop.f32.mrf.mxu0  ;;  %v5177_v62 = vadd.f32 %v5176_v29, %v5175_v2 }
 0x2d3   : > { %v5283_v49 = vadd.f32 %v5282_v50, %v5281_v24  ;;  %v5178_v38 = vpop.f32.mrf.mxu1 }
 0x2d4   : > { %v5284_v40 = vpop.f32.mrf.mxu0  ;;  %v3083_v35 = vadd.f32 %v5177_v62, %v7094_v44 }
 0x2d5   : > { %v5179_v18 = vpop.f32.mrf.mxu1  ;;  %v7199_v17 = vadd.f32 %v5283_v49, %v3075_v14 }
 0x2d6   : > { %v5285_v43 = vpop.f32.mrf.mxu0  ;;  %v5180_v61 = vadd.f32 %v5179_v18, %v5178_v38 }
 0x2d7   : > { %v5286_v5 = vadd.f32 %v5285_v43, %v5284_v40  ;;  %v5181_v4 = vpop.f32.mrf.mxu1 }
 0x2d8   : > { %v5287_v13 = vpop.f32.mrf.mxu0  ;;  %v3088_v26 = vadd.f32 %v5180_v61, %v7100_v34 }
 0x2d9   : > { %v5182_v42 = vpop.f32.mrf.mxu1  ;;  %v7201_v59 = vadd.f32 %v5286_v5, %v3080_v41 }
 0x2da   : > { %v5288_v11 = vpop.f32.mrf.mxu0  ;;  %v5183_v0 = vadd.f32 %v5182_v42, %v5181_v4 }
 0x2db   : > { %v5289_v37 = vadd.f32 %v5288_v11, %v5287_v13  ;;  %v5184_v21 = vpop.f32.mrf.mxu1 }
 0x2dc   : > { %v5290_v36 = vpop.f32.mrf.mxu0  ;;  %v3091_v44 = vadd.f32 %v5183_v0, %v7108_v52 }
 0x2dd   : > { %v5185_v47 = vpop.f32.mrf.mxu1  ;;  %v7204_v22 = vadd.f32 %v5289_v37, %v3083_v35 }
 0x2de   : > { %v5291_v1 = vpop.f32.mrf.mxu0  ;;  %v5186_v2 = vadd.f32 %v5185_v47, %v5184_v21 }
 0x2df   : > { %v5292_v14 = vadd.f32 %v5291_v1, %v5290_v36  ;;  %v5187_v27 = vpop.f32.mrf.mxu1 }
 0x2e0   : > { %v5293_v23 = vpop.f32.mrf.mxu0  ;;  %v3096_v34 = vadd.f32 %v5186_v2, %v7114_v58 }
 0x2e1   : > { %v5188_v20 = vpop.f32.mrf.mxu1  ;;  %v7207_v8 = vadd.f32 %v5292_v14, %v3088_v26 }
 0x2e2   : > { %v5294_v54 = vpop.f32.mrf.mxu0  ;;  %v5189_v40 = vadd.f32 %v5188_v20, %v5187_v27 }
 0x2e3   : > { %v5295_v41 = vadd.f32 %v5294_v54, %v5293_v23  ;;  %v5190_v24 = vpop.f32.mrf.mxu1 }
 0x2e4   : > { %v5296_v29 = vpop.f32.mrf.mxu0  ;;  %v3099_v52 = vadd.f32 %v5189_v40, %v7120_v6 }
 0x2e5   : > { %v5191_v50 = vpop.f32.mrf.mxu1  ;;  %v7210_v49 = vadd.f32 %v5295_v41, %v3091_v44 }
 0x2e6   : > { %v5297_v38 = vpop.f32.mrf.mxu0  ;;  %v5192_v42 = vadd.f32 %v5191_v50, %v5190_v24 }
 0x2e7   : > { %v5298_v18 = vadd.f32 %v5297_v38, %v5296_v29  ;;  %v5193_v43 = vpop.f32.mrf.mxu1 }
 0x2e8   : > { %v5299_v62 = vpop.f32.mrf.mxu0  ;;  %v3104_v58 = vadd.f32 %v5192_v42, %v7123_v46 }
 0x2e9   : > { %v5194_v5 = vpop.f32.mrf.mxu1  ;;  %v7213_v4 = vadd.f32 %v5298_v18, %v3096_v34 }
 0x2ea   : > { %v5300_v13 = vpop.f32.mrf.mxu0  ;;  %v5195_v47 = vadd.f32 %v5194_v5, %v5193_v43 }
 0x2eb   : > { %v5301_v11 = vadd.f32 %v5300_v13, %v5299_v62  ;;  %v5196_v35 = vpop.f32.mrf.mxu1 }
 0x2ec   : > { %v5302_v61 = vpop.f32.mrf.mxu0  ;;  %v3107_v6 = vadd.f32 %v5195_v47, %v7126_v12 }
 0x2ed   : > { %v5197_v37 = vpop.f32.mrf.mxu1  ;;  %v7216_v21 = vadd.f32 %v5301_v11, %v3099_v52 }
 0x2ee   : > { %v5303_v36 = vpop.f32.mrf.mxu0  ;;  %v5198_v20 = vadd.f32 %v5197_v37, %v5196_v35 }
 0x2ef   : > { %v5304_v1 = vadd.f32 %v5303_v36, %v5302_v61  ;;  %v5199_v26 = vpop.f32.mrf.mxu1 }
 0x2f0   : > { %v5305_v0 = vpop.f32.mrf.mxu0  ;;  %v3112_v46 = vadd.f32 %v5198_v20, %v7129_v33 }
 0x2f1   : > { %v5200_v14 = vpop.f32.mrf.mxu1  ;;  %v7219_v27 = vadd.f32 %v5304_v1, %v3104_v58 }
 0x2f2   : > { %v5306_v23 = vpop.f32.mrf.mxu0  ;;  %v5201_v50 = vadd.f32 %v5200_v14, %v5199_v26 }
 0x2f3   : > { %v5307_v54 = vadd.f32 %v5306_v23, %v5305_v0  ;;  %v5202_v44 = vpop.f32.mrf.mxu1 }
 0x2f4   : > { %v5308_v2 = vpop.f32.mrf.mxu0  ;;  %v3115_v12 = vadd.f32 %v5201_v50, %v7132_v3 }
 0x2f5   : > { %v5203_v41 = vpop.f32.mrf.mxu1  ;;  %v7222_v24 = vadd.f32 %v5307_v54, %v3107_v6 }
 0x2f6   : > { %v5309_v29 = vpop.f32.mrf.mxu0  ;;  %v5204_v5 = vadd.f32 %v5203_v41, %v5202_v44 }
 0x2f7   : > { %v5310_v38 = vadd.f32 %v5309_v29, %v5308_v2  ;;  %v5205_v34 = vpop.f32.mrf.mxu1 }
 0x2f8   : > { %v5311_v40 = vpop.f32.mrf.mxu0  ;;  %v3120_v33 = vadd.f32 %v5204_v5, %v7135_v48 }
 0x2f9   : > { %v5206_v18 = vpop.f32.mrf.mxu1  ;;  %v7225_v43 = vadd.f32 %v5310_v38, %v3112_v46 }
 0x2fa   : > { %v5312_v62 = vpop.f32.mrf.mxu0  ;;  %v5207_v37 = vadd.f32 %v5206_v18, %v5205_v34 }
 0x2fb   : > { %v5313_v13 = vadd.f32 %v5312_v62, %v5311_v40  ;;  %v5208_v52 = vpop.f32.mrf.mxu1 }
 0x2fc   : > { %v5314_v42 = vpop.f32.mrf.mxu0  ;;  %v3123_v3 = vadd.f32 %v5207_v37, %v7138_v57 }
 0x2fd   : > { %v5209_v11 = vpop.f32.mrf.mxu1  ;;  %v7228_v35 = vadd.f32 %v5313_v13, %v3115_v12 }
 0x2fe   : > { %v5315_v61 = vpop.f32.mrf.mxu0  ;;  %v5210_v14 = vadd.f32 %v5209_v11, %v5208_v52 }
 0x2ff   : > { %v5316_v36 = vadd.f32 %v5315_v61, %v5314_v42  ;;  %v5211_v58 = vpop.f32.mrf.mxu1 }
 0x300   : > { %v5317_v47 = vpop.f32.mrf.mxu0  ;;  %v3128_v48 = vadd.f32 %v5210_v14, %v7141_v60 }
 0x301   : > { %v5212_v1 = vpop.f32.mrf.mxu1  ;;  %v7231_v26 = vadd.f32 %v5316_v36, %v3120_v33 }
 0x302   : > { %v5318_v0 = vpop.f32.mrf.mxu0  ;;  %v5213_v41 = vadd.f32 %v5212_v1, %v5211_v58 }
 0x303   : > { %v5319_v23 = vadd.f32 %v5318_v0, %v5317_v47  ;;  %v5214_v6 = vpop.f32.mrf.mxu1 }
 0x304   : > { %v5320_v20 = vpop.f32.mrf.mxu0  ;;  %v3131_v40 = vadd.f32 %v5213_v41, %v7144_v51 }
 0x305   : > { %v5215_v54 = vpop.f32.mrf.mxu1  ;;  %v7234_v44 = vadd.f32 %v5319_v23, %v3123_v3 }
 0x306   : > { %v5321_v2 = vpop.f32.mrf.mxu0  ;;  %v5216_v18 = vadd.f32 %v5215_v54, %v5214_v6 }
 0x307   : > { %v5322_v29 = vadd.f32 %v5321_v2, %v5320_v20  ;;  %v7237_v46 = vpop.f32.mrf.mxu1 }
 0x308   : > { %v5323_v50 = vpop.f32.mrf.mxu0  ;;  %v3136_v11 = vadd.f32 %v5216_v18, %v7148_v28 }
 0x309   : > { %v7239_v38 = vpop.f32.mrf.mxu1  ;;  %v7241_v34 = vadd.f32 %v5322_v29, %v3128_v48 }
 0x30a   : > { %v5324_v57 = vpop.f32.mrf.mxu0 }
 0x30b   : > { %v5325_v62 = vadd.f32 %v5324_v57, %v5323_v50  ;;  %v5466_v12 = vpop.f32.mrf.mxu1 }
 0x30c   : > { %v5326_v5 = vpop.f32.mrf.mxu0  ;;  %v3410_v60 = vadd.f32 %v5466_v12, %v7207_v8 }
 0x30d   : > { %v3401_v13 = vpop.f32.mrf.mxu1  ;;  %v7244_v52 = vadd.f32 %v5325_v62, %v3131_v40 }
 0x30e   : > { %v5327_v42 = vpop.f32.mrf.mxu0  ;;  %v3402_v37 = vadd.f32 %v3401_v13, %v7201_v59  ;;  %v3482_v1 = vmax.f32 %v3410_v60, 0.0 }
 0x30f   : > { %v5328_v61 = vadd.f32 %v5327_v42, %v5326_v5  ;;  %v5467_v33 = vpop.f32.mrf.mxu1 }
 0x310   : > { %v5329_v36 = vpop.f32.mrf.mxu0  ;;  %v3413_v58 = vadd.f32 %v5467_v33, %v7210_v49  ;;  %v3480_v8 = vmax.f32 %v3402_v37, 0.0 }
 0x311   : > { %v3404_v51 = vpop.f32.mrf.mxu1  ;;  %v7250_v47 = vadd.f32 %v5328_v61, %v3136_v11 }
 0x312   : > { %v3483_v0 = vmax.f32 %v3413_v58, 0.0  ;;  %v5330_v3 = vpop.f32.mrf.mxu0  ;;  %v3405_v14 = vadd.f32 %v3404_v51, %v7204_v22 }
 0x313   : > { %v5470_v23 = vpop.f32.mrf.mxu1 }
 0x314   : > { %v7253_v6 = vpack.c.bf16 %v3483_v0, %v3482_v1  ;;  %v3481_v28 = vmax.f32 %v3405_v14, 0.0  ;;  %v5450_v20 = vpop.f32.mrf.mxu0  ;;  %v3426_v59 = vadd.f32 %v5470_v23, %v7219_v27 }
 0x315   : > { %v3417_v54 = vpop.f32.mrf.mxu1  ;;  %v3346_v48 = vadd.f32 %v5450_v20, %v7161_v25 }
 0x316   : > { %v7255_v2 = vpack.c.bf16 %v3481_v28, %v3480_v8  ;;  %v3337_v49 = vpop.f32.mrf.mxu0  ;;  %v3418_v29 = vadd.f32 %v3417_v54, %v7213_v4  ;;  %v3486_v62 = vmax.f32 %v3426_v59, 0.0 }
 0x317   : > { %v5471_v41 = vpop.f32.mrf.mxu1  ;;  %v3338_v57 = vadd.f32 %v3337_v49, %v7155_v45  ;;  %v3466_v27 = vmax.f32 %v3346_v48, 0.0 }
 0x318   : > { %v5451_v50 = vpop.f32.mrf.mxu0  ;;  %v3429_v22 = vadd.f32 %v5471_v41, %v7222_v24  ;;  %v3484_v11 = vmax.f32 %v3418_v29, 0.0 }
 0x319   : > { %v3349_v40 = vadd.f32 %v5451_v50, %v7164_v31  ;;  %v3420_v18 = vpop.f32.mrf.mxu1  ;;  %v3464_v33 = vmax.f32 %v3338_v57, 0.0 }
 0x31a   : > { %v3487_v12 = vmax.f32 %v3429_v22, 0.0  ;;  %v3340_v5 = vpop.f32.mrf.mxu0  ;;  %v3421_v13 = vadd.f32 %v3420_v18, %v7216_v21 }
 0x31b   : > { %v3467_v60 = vmax.f32 %v3349_v40, 0.0  ;;  %v3341_v25 = vadd.f32 %v3340_v5, %v7158_v63  ;;  %v5474_v42 = vpop.f32.mrf.mxu1  ;;  %v5219_v63 = vadd.f32 %v7239_v38, %v7237_v46 }
 0x31c   : > { %v7265_v4 = vpack.c.bf16 %v3487_v12, %v3486_v62  ;;  %v3485_v61 = vmax.f32 %v3421_v13, 0.0  ;;  %v5454_v24 = vpop.f32.mrf.mxu0  ;;  %v3442_v51 = vadd.f32 %v5474_v42, %v7231_v26  ;;  %v5331_v26 = vadd.f32 %v5330_v3, %v5329_v36 }
 0x31d   : > { %v3497_v45 = vpack.c.bf16 %v3467_v60, %v3466_v27  ;;  %v3465_v37 = vmax.f32 %v3341_v25, 0.0  ;;  %v3433_v31 = vpop.f32.mrf.mxu1  ;;  %v3362_v0 = vadd.f32 %v5454_v24, %v7173_v15 }
 0x31e   : > { %v7267_v58 = vpack.c.bf16 %v3485_v61, %v3484_v11  ;;  %v3353_v1 = vpop.f32.mrf.mxu0  ;;  %v3434_v23 = vadd.f32 %v3433_v31, %v7225_v43  ;;  %v3490_v49 = vmax.f32 %v3442_v51, 0.0 }
 0x31f   : > { %v3496_v21 = vpack.c.bf16 %v3465_v37, %v3464_v33  ;;  %v5475_v14 = vpop.f32.mrf.mxu1  ;;  %v3354_v20 = vadd.f32 %v3353_v1, %v7167_v53  ;;  %v3470_v29 = vmax.f32 %v3362_v0, 0.0 }
 0x320   : > { %v5455_v8 = vpop.f32.mrf.mxu0  ;;  %v3445_v28 = vadd.f32 %v5475_v14, %v7234_v44  ;;  %v3139_v44 = vadd.f32 %v5219_v63, %v7152_v55  ;;  %v3488_v50 = vmax.f32 %v3434_v23, 0.0 }
 0x321   : > { %v3365_v54 = vadd.f32 %v5455_v8, %v7176_v30  ;;  %5496 = vmatprep.mubr.bf16.mxu1 %v3496_v21  ;;  %v3436_v59 = vpop.f32.mrf.mxu1  ;;  %v3468_v57 = vmax.f32 %v3354_v20, 0.0 }
 0x322   : > { %v3491_v48 = vmax.f32 %v3445_v28, 0.0  ;;  %v3356_v41 = vpop.f32.mrf.mxu0  ;;  %v3437_v15 = vadd.f32 %v3436_v59, %v7228_v35  ;;  %5497 = vmatmul.mubr.bf16.vlgmr.msra.gmra.mxu1 %v3497_v45  ;;  %v3300_v12 = vadd.f32 %v5331_v26, %v3139_v44 }
 0x323   : > { %v3471_v46 = vmax.f32 %v3365_v54, 0.0  ;;  %v3357_v43 = vadd.f32 %v3356_v41, %v7170_v19  ;;  %v5478_v38 = vpop.f32.mrf.mxu1 }
 0x324   : > { %v3509_v53 = vpack.c.bf16 %v3491_v48, %v3490_v49  ;;  %v3489_v22 = vmax.f32 %v3437_v15, 0.0  ;;  %v5458_v30 = vpop.f32.mrf.mxu0  ;;  %v3458_v62 = vadd.f32 %v5478_v38, %v7250_v47 }
 0x325   : > { %v3499_v40 = vpack.c.bf16 %v3471_v46, %v3470_v29  ;;  %v3469_v36 = vmax.f32 %v3357_v43, 0.0  ;;  %v3449_v3 = vpop.f32.mrf.mxu1  ;;  %v3378_v13 = vadd.f32 %v5458_v30, %v7185_v32 }
 0x326   : > { %v3508_v18 = vpack.c.bf16 %v3489_v22, %v3488_v50  ;;  %v3369_v35 = vpop.f32.mrf.mxu0  ;;  %v3450_v27 = vadd.f32 %v3449_v3, %v7241_v34  ;;  %v3494_v61 = vmax.f32 %v3458_v62, 0.0  ;;  %v4830_v50 = vld [vmem:[%s6145_s16 + $0x20] sm:$0xff]  }
 0x327   : > { %v3498_v5 = vpack.c.bf16 %v3469_v36, %v3468_v57  ;;  %v5479_v19 = vpop.f32.mrf.mxu1  ;;  %v3370_v25 = vadd.f32 %v3369_v35, %v7179_v10  ;;  %v3474_v45 = vmax.f32 %v3378_v13, 0.0  ;;  %v4697_v36 = vunpack.c.l.bf16 %v4830_v50 }
 0x328   : > { %v5459_v55 = vpop.f32.mrf.mxu0  ;;  %v3461_v60 = vadd.f32 %v5479_v19, %v3300_v12  ;;  %v3492_v31 = vmax.f32 %v3450_v27, 0.0  ;;  %v4698_v19 = vunpack.c.h.bf16 %v4830_v50 }
 0x329   : > { %v3381_v42 = vadd.f32 %v5459_v55, %v7188_v9  ;;  %5500 = vmatprep.mubr.bf16.mxu1 %v3498_v5  ;;  %v3452_v11 = vpop.f32.mrf.mxu1  ;;  %v3472_v21 = vmax.f32 %v3370_v25, 0.0 }
 0x32a   : > { %v3495_v24 = vmax.f32 %v3461_v60, 0.0  ;;  %v3372_v33 = vpop.f32.mrf.mxu0  ;;  %v3453_v47 = vadd.f32 %v3452_v11, %v7244_v52  ;;  %5501 = vmatmul.mubr.bf16.gmra.mxu1 %v3499_v40  ;;  %v4829_v40 = vld [vmem:[%s6145_s16 + $0x18] sm:$0xff]  }
 0x32b   : > { %v3475_v37 = vmax.f32 %v3381_v42, 0.0  ;;  %v3373_v32 = vadd.f32 %v3372_v33, %v7182_v56  ;;  %v4693_v5 = vunpack.c.l.bf16 %v4829_v40  ;;  %v4694_v33 = vunpack.c.h.bf16 %v4829_v40 }
 0x32c   : > { %v3511_v34 = vpack.c.bf16 %v3495_v24, %v3494_v61  ;;  %v3493_v51 = vmax.f32 %v3453_v47, 0.0  ;;  %v5462_v1 = vpop.f32.mrf.mxu0  ;;  %v4832_v47 = vld [vmem:[%s6145_s16 + $0x30] sm:$0xff]  }
 0x32d   : > { %v3501_v10 = vpack.c.bf16 %v3475_v37, %v3474_v45  ;;  %v3473_v0 = vmax.f32 %v3373_v32, 0.0  ;;  %v3394_v23 = vadd.f32 %v5462_v1, %v7197_v7 }
 0x32e   : > { %v3510_v9 = vpack.c.bf16 %v3493_v51, %v3492_v31  ;;  %v3385_v14 = vpop.f32.mrf.mxu0  ;;  %v4705_v51 = vunpack.c.l.bf16 %v4832_v47 }
 0x32f   : > { %v3500_v63 = vpack.c.bf16 %v3473_v0, %v3472_v21  ;;  %v3386_v52 = vadd.f32 %v3385_v14, %v7191_v39  ;;  %v3478_v56 = vmax.f32 %v3394_v23, 0.0  ;;  %v4828_v39 = vld [vmem:[%s6145_s16 + $0x10] sm:$0xff]   ;;  %v4706_v23 = vunpack.c.h.bf16 %v4832_v47 }
 0x330   : > { %v5463_v8 = vpop.f32.mrf.mxu0  ;;  %v4690_v29 = vunpack.c.h.bf16 %v4828_v39 }
 0x331   : > { %v3397_v28 = vadd.f32 %v5463_v8, %v7199_v17  ;;  %5504 = vmatprep.mubr.bf16.mxu1 %v3500_v63  ;;  %v3476_v26 = vmax.f32 %v3386_v52, 0.0  ;;  %v4827_v17 = vld [vmem:[%s6145_s16 + $0x8] sm:$0xff]  }
 0x332   : > { %v3388_v20 = vpop.f32.mrf.mxu0  ;;  %5505 = vmatmul.mubr.bf16.gmra.mxu1 %v3501_v10  ;;  %v4686_v44 = vunpack.c.h.bf16 %v4827_v17 }
 0x333   : > { %v3479_v54 = vmax.f32 %v3397_v28, 0.0  ;;  %v3389_v59 = vadd.f32 %v3388_v20, %v7194_v16  ;;  %v7299_v16 = vld [vmem:[%s7428_s6] ss:$0 sm:$0xff] }
 0x335   : > { %v3503_v49 = vpack.c.bf16 %v3479_v54, %v3478_v56  ;;  %v3477_v48 = vmax.f32 %v3389_v59, 0.0 }
 0x337   : > { %v3502_v41 = vpack.c.bf16 %v3477_v48, %v3476_v26  ;;  %v4834_v48 = vld [vmem:[%s6145_s16 + $0x40] sm:$0xff]  }
 0x339   : > { %5508 = vmatprep.mubr.bf16.mxu1 %v3502_v41 }
 0x33a   : > { %5509 = vmatmul.mubr.bf16.gmra.mxu1 %v3503_v49 }
 0x33b   : > { %5512 = vmatprep.mubr.bf16.mxu1 %v7255_v2  ;;  %v4689_v2 = vunpack.c.l.bf16 %v4828_v39 }
 0x342   : > { %5513 = vmatmul.mubr.bf16.gmra.mxu1 %v7253_v6 }
 0x343   : > { %5516 = vmatprep.mubr.bf16.mxu1 %v7267_v58 }
 0x34a   : > { %5517 = vmatmul.mubr.bf16.gmra.mxu1 %v7265_v4  ;;  %v4685_v4 = vunpack.c.l.bf16 %v4827_v17 }
 0x34b   : > { %5520 = vmatprep.mubr.bf16.mxu1 %v3508_v18 }
 0x352   : > { %5521 = vmatmul.mubr.bf16.gmra.mxu1 %v3509_v53 }
 0x353   : > { %5524 = vmatprep.mubr.bf16.mxu1 %v3510_v9 }
 0x35a   : > { %5525 = vmatmul.mubr.bf16.gmra.mxu1 %v3511_v34  ;;  %v4831_v34 = vld [vmem:[%s6145_s16 + $0x28] sm:$0xff]  }
 0x35b   : > { %v4701_v14 = vunpack.c.l.bf16 %v4831_v34  ;;  %v4702_v49 = vunpack.c.h.bf16 %v4831_v34 }
 0x3e2   : > { %v5498_v7 = vpop.f32.mrf.mxu1 }
 0x3e3   : > { %v3664_v6 = vadd.f32 %v5498_v7, %v7299_v16 }
 0x3e4   : > { %v3655_v58 = vpop.f32.mrf.mxu1 }
 0x3e5   : > { %v3656_v15 = vadd.f32 %v7299_v16, %v3655_v58  ;;  %v3816_v43 = vadd.f32 %v4689_v2, %v3664_v6  ;;  %v4833_v2 = vld [vmem:[%s6145_s16 + $0x38] sm:$0xff]   ;;  %v4713_v6 = vunpack.c.l.bf16 %v4834_v48 }
 0x3e6   : > { %v5499_v46 = vpop.f32.mrf.mxu1 }
 0x3e7   : > { %v3667_v38 = vadd.f32 %v5499_v46, %v7299_v16  ;;  %v3814_v22 = vadd.f32 %v4685_v4, %v3656_v15  ;;  %v3848_v18 = vmax.f32 %v3816_v43, 0.0  ;;  %v4709_v43 = vunpack.c.l.bf16 %v4833_v2 }
 0x3e8   : > { %v3658_v53 = vpop.f32.mrf.mxu1 }
 0x3e9   : > { %v3817_v30 = vadd.f32 %v4690_v29, %v3667_v38  ;;  %v3659_v57 = vadd.f32 %v7299_v16, %v3658_v53  ;;  %v3846_v27 = vmax.f32 %v3814_v22, 0.0 }
 0x3ea   : > { %v5502_v3 = vpop.f32.mrf.mxu1 }
 0x3eb   : > { %v3849_v62 = vmax.f32 %v3817_v30, 0.0  ;;  %v3815_v35 = vadd.f32 %v4686_v44, %v3659_v57  ;;  %v3680_v12 = vadd.f32 %v5502_v3, %v7299_v16  ;;  %v4714_v44 = vunpack.c.h.bf16 %v4834_v48 }
 0x3ec   : > { %v3671_v13 = vpop.f32.mrf.mxu1 }
 0x3ed   : > { %v4755_v55 = vpack.c.bf16 %v3849_v62, %v3848_v18  ;;  %v3847_v60 = vmax.f32 %v3815_v35, 0.0  ;;  %v3672_v25 = vadd.f32 %v7299_v16, %v3671_v13  ;;  %v3820_v61 = vadd.f32 %v4697_v36, %v3680_v12  ;;  %v4836_v62 = vld [vmem:[%s6145_s16 + $0x50] sm:$0xff]  }
 0x3ee   : > { %v5503_v42 = vpop.f32.mrf.mxu1  ;;  %v4710_v18 = vunpack.c.h.bf16 %v4833_v2 }
 0x3ef   : > { %4843 = vst [vmem:[%s7311_s19 + $0x8] sm:$0xff] %v4755_v55   ;;  %v4750_v11 = vpack.c.bf16 %v3847_v60, %v3846_v27  ;;  %v3683_v24 = vadd.f32 %v5503_v42, %v7299_v16  ;;  %v3818_v37 = vadd.f32 %v4693_v5, %v3672_v25  ;;  %v3852_v21 = vmax.f32 %v3820_v61, 0.0 }
 0x3f0   : > { %v3674_v45 = vpop.f32.mrf.mxu1  ;;  %v4721_v27 = vunpack.c.l.bf16 %v4836_v62 }
 0x3f1   : > { %4751 = vst [vmem:[%s7311_s19] sm:$0xff] %v4750_v11   ;;  %v3821_v32 = vadd.f32 %v4698_v19, %v3683_v24  ;;  %v3675_v31 = vadd.f32 %v7299_v16, %v3674_v45  ;;  %v3850_v8 = vmax.f32 %v3818_v37, 0.0  ;;  %v4835_v19 = vld [vmem:[%s6145_s16 + $0x48] sm:$0xff]  }
 0x3f2   : > { %v5506_v1 = vpop.f32.mrf.mxu1  ;;  %v4717_v61 = vunpack.c.l.bf16 %v4835_v19 }
 0x3f3   : > { %v3853_v10 = vmax.f32 %v3821_v32, 0.0  ;;  %v3819_v0 = vadd.f32 %v4694_v33, %v3675_v31  ;;  %v3696_v9 = vadd.f32 %v5506_v1, %v7299_v16  ;;  %v4722_v33 = vunpack.c.h.bf16 %v4836_v62 }
 0x3f4   : > { %v3687_v63 = vpop.f32.mrf.mxu1 }
 0x3f5   : > { %v4765_v52 = vpack.c.bf16 %v3853_v10, %v3852_v21  ;;  %v3851_v28 = vmax.f32 %v3819_v0, 0.0  ;;  %v3688_v20 = vadd.f32 %v7299_v16, %v3687_v63  ;;  %v3824_v59 = vadd.f32 %v4705_v51, %v3696_v9  ;;  %v4838_v10 = vld [vmem:[%s6145_s16 + $0x60] sm:$0xff]  }
 0x3f6   : > { %v5507_v56 = vpop.f32.mrf.mxu1  ;;  %v4718_v21 = vunpack.c.h.bf16 %v4835_v19 }
 0x3f7   : > { %4845 = vst [vmem:[%s7311_s19 + $0x18] sm:$0xff] %v4765_v52   ;;  %v4760_v54 = vpack.c.bf16 %v3851_v28, %v3850_v8  ;;  %v3699_v26 = vadd.f32 %v5507_v56, %v7299_v16  ;;  %v3822_v39 = vadd.f32 %v4701_v14, %v3688_v20  ;;  %v3856_v4 = vmax.f32 %v3824_v59, 0.0 }
 0x3f8   : > { %v3690_v41 = vpop.f32.mrf.mxu1  ;;  %v4729_v8 = vunpack.c.l.bf16 %v4838_v10 }
 0x3f9   : > { %4844 = vst [vmem:[%s7311_s19 + $0x10] sm:$0xff] %v4760_v54   ;;  %v3825_v7 = vadd.f32 %v4706_v23, %v3699_v26  ;;  %v3691_v17 = vadd.f32 %v7299_v16, %v3690_v41  ;;  %v3854_v50 = vmax.f32 %v3822_v39, 0.0  ;;  %v4837_v23 = vld [vmem:[%s6145_s16 + $0x58] sm:$0xff]  }
 0x3fa   : > { %v5510_v58 = vpop.f32.mrf.mxu1  ;;  %v4725_v59 = vunpack.c.l.bf16 %v4837_v23 }
 0x3fb   : > { %v3857_v15 = vmax.f32 %v3825_v7, 0.0  ;;  %v3823_v29 = vadd.f32 %v4702_v49, %v3691_v17  ;;  %v3712_v46 = vadd.f32 %v5510_v58, %v7299_v16  ;;  %v4730_v49 = vunpack.c.h.bf16 %v4838_v10 }
 0x3fc   : > { %v3703_v38 = vpop.f32.mrf.mxu1 }
 0x3fd   : > { %v4775_v53 = vpack.c.bf16 %v3857_v15, %v3856_v4  ;;  %v3855_v22 = vmax.f32 %v3823_v29, 0.0  ;;  %v3704_v30 = vadd.f32 %v7299_v16, %v3703_v38  ;;  %v3828_v36 = vadd.f32 %v4713_v6, %v3712_v46  ;;  %v4840_v15 = vld [vmem:[%s6145_s16 + $0x70] sm:$0xff]  }
 0x3fe   : > { %v5511_v57 = vpop.f32.mrf.mxu1  ;;  %v4726_v4 = vunpack.c.h.bf16 %v4837_v23 }
 0x3ff   : > { %4847 = vst [vmem:[%s7311_s19 + $0x28] sm:$0xff] %v4775_v53   ;;  %v4770_v40 = vpack.c.bf16 %v3855_v22, %v3854_v50  ;;  %v3715_v3 = vadd.f32 %v5511_v57, %v7299_v16  ;;  %v3826_v12 = vadd.f32 %v4709_v43, %v3704_v30  ;;  %v3860_v60 = vmax.f32 %v3828_v36, 0.0 }
 0x400   : > { %v3706_v35 = vpop.f32.mrf.mxu1  ;;  %v4737_v50 = vunpack.c.l.bf16 %v4840_v15 }
 0x401   : > { %4846 = vst [vmem:[%s7311_s19 + $0x20] sm:$0xff] %v4770_v40   ;;  %v3829_v5 = vadd.f32 %v4714_v44, %v3715_v3  ;;  %v3707_v13 = vadd.f32 %v7299_v16, %v3706_v35  ;;  %v3858_v47 = vmax.f32 %v3826_v12, 0.0  ;;  %v4839_v44 = vld [vmem:[%s6145_s16 + $0x68] sm:$0xff]  }
 0x402   : > { %v5514_v55 = vpop.f32.mrf.mxu1  ;;  %v4733_v36 = vunpack.c.l.bf16 %v4839_v44 }
 0x403   : > { %v3861_v25 = vmax.f32 %v3829_v5, 0.0  ;;  %v3827_v42 = vadd.f32 %v4710_v18, %v3707_v13  ;;  %v3728_v11 = vadd.f32 %v5514_v55, %v7299_v16  ;;  %v4738_v18 = vunpack.c.h.bf16 %v4840_v15 }
 0x404   : > { %v3719_v24 = vpop.f32.mrf.mxu1 }
 0x405   : > { %v4785_v45 = vpack.c.bf16 %v3861_v25, %v3860_v60  ;;  %v3859_v37 = vmax.f32 %v3827_v42, 0.0  ;;  %v3720_v32 = vadd.f32 %v7299_v16, %v3719_v24  ;;  %v3832_v51 = vadd.f32 %v4721_v27, %v3728_v11  ;;  %v4842_v25 = vld [vmem:[%s6145_s16 + $0x80] sm:$0xff]  }
 0x406   : > { %v5515_v31 = vpop.f32.mrf.mxu1  ;;  %v4734_v60 = vunpack.c.h.bf16 %v4839_v44 }
 0x407   : > { %4849 = vst [vmem:[%s7311_s19 + $0x38] sm:$0xff] %v4785_v45   ;;  %v4780_v34 = vpack.c.bf16 %v3859_v37, %v3858_v47  ;;  %v3731_v1 = vadd.f32 %v5515_v31, %v7299_v16  ;;  %v3830_v9 = vadd.f32 %v4717_v61, %v3720_v32  ;;  %v3864_v28 = vmax.f32 %v3832_v51, 0.0 }
 0x408   : > { %v3722_v0 = vpop.f32.mrf.mxu1  ;;  %v4745_v47 = vunpack.c.l.bf16 %v4842_v25 }
 0x409   : > { %4848 = vst [vmem:[%s7311_s19 + $0x30] sm:$0xff] %v4780_v34   ;;  %v3833_v14 = vadd.f32 %v4722_v33, %v3731_v1  ;;  %v3723_v63 = vadd.f32 %v7299_v16, %v3722_v0  ;;  %v3862_v48 = vmax.f32 %v3830_v9, 0.0  ;;  %v4841_v33 = vld [vmem:[%s6145_s16 + $0x78] sm:$0xff]   ;;  %s5865_s16 = scalar_lea.vmem %s5864_s28, 4096 }
 0x40a   : > { %v5518_v52 = vpop.f32.mrf.mxu1  ;;  %v4741_v51 = vunpack.c.l.bf16 %v4841_v33  ;;  %p5867_p11 = scmp.lt.s32.totalorder %s5865_s16, %s5859_s5 }
 0x40b   : > { %v3865_v20 = vmax.f32 %v3833_v14, 0.0  ;;  %v3831_v56 = vadd.f32 %v4718_v21, %v3723_v63  ;;  %v3744_v54 = vadd.f32 %v5518_v52, %v7299_v16  ;;  %v4746_v21 = vunpack.c.h.bf16 %v4842_v25 }
 0x40c   : > { %v3735_v26 = vpop.f32.mrf.mxu1  ;;  %p5868_p2 = por %p5867_p11, %p5866_p5 }
 0x40d   : > { %v4795_v41 = vpack.c.bf16 %v3865_v20, %v3864_v28  ;;  %v3863_v39 = vmax.f32 %v3831_v56, 0.0  ;;  %v3736_v7 = vadd.f32 %v7299_v16, %v3735_v26  ;;  %v3836_v6 = vadd.f32 %v4729_v8, %v3744_v54 }
 0x40e   : > { %v5519_v17 = vpop.f32.mrf.mxu1  ;;  %v4742_v28 = vunpack.c.h.bf16 %v4841_v33  ;;  %p5869_p10 = pnand %p5868_p2, %p5862_p8 }
 0x40f   : > { %4851 = vst [vmem:[%s7311_s19 + $0x48] sm:$0xff] %v4795_v41   ;;  %v4790_v2 = vpack.c.bf16 %v3863_v39, %v3862_v48  ;;  %v3747_v58 = vadd.f32 %v5519_v17, %v7299_v16  ;;  %v3834_v46 = vadd.f32 %v4725_v59, %v3736_v7  ;;  %v3868_v22 = vmax.f32 %v3836_v6, 0.0 }
 0x410   : > { %v3738_v29 = vpop.f32.mrf.mxu1 }
 0x411   : > { %4850 = vst [vmem:[%s7311_s19 + $0x40] sm:$0xff] %v4790_v2   ;;  %v3837_v43 = vadd.f32 %v4730_v49, %v3747_v58  ;;  %v3739_v38 = vadd.f32 %v7299_v16, %v3738_v29  ;;  %v3866_v62 = vmax.f32 %v3834_v46, 0.0 }
 0x412   : > { %v5522_v53 = vpop.f32.mrf.mxu1 }
 0x413   : > { %v3869_v30 = vmax.f32 %v3837_v43, 0.0  ;;  %v3835_v57 = vadd.f32 %v4726_v4, %v3739_v38  ;;  %v3760_v40 = vadd.f32 %v5522_v53, %v7299_v16 }
 0x414   : > { %v3751_v3 = vpop.f32.mrf.mxu1 }
 0x415   : > { %v4805_v35 = vpack.c.bf16 %v3869_v30, %v3868_v22  ;;  %v3867_v12 = vmax.f32 %v3835_v57, 0.0  ;;  %v3752_v5 = vadd.f32 %v7299_v16, %v3751_v3  ;;  %v3840_v27 = vadd.f32 %v4737_v50, %v3760_v40 }
 0x416   : > { %v5523_v13 = vpop.f32.mrf.mxu1 }
 0x417   : > { %4853 = vst [vmem:[%s7311_s19 + $0x58] sm:$0xff] %v4805_v35   ;;  %v4800_v19 = vpack.c.bf16 %v3867_v12, %v3866_v62  ;;  %v3763_v55 = vadd.f32 %v5523_v13, %v7299_v16  ;;  %v3838_v11 = vadd.f32 %v4733_v36, %v3752_v5  ;;  %v3872_v37 = vmax.f32 %v3840_v27, 0.0 }
 0x418   : > { %v3754_v42 = vpop.f32.mrf.mxu1 }
 0x419   : > { %4852 = vst [vmem:[%s7311_s19 + $0x50] sm:$0xff] %v4800_v19   ;;  %v3841_v61 = vadd.f32 %v4738_v18, %v3763_v55  ;;  %v3755_v24 = vadd.f32 %v7299_v16, %v3754_v42  ;;  %v3870_v10 = vmax.f32 %v3838_v11, 0.0 }
 0x41a   : > { %v5526_v45 = vpop.f32.mrf.mxu1 }
 0x41b   : > { %v3873_v32 = vmax.f32 %v3841_v61, 0.0  ;;  %v3839_v31 = vadd.f32 %v4734_v60, %v3755_v24  ;;  %v3776_v34 = vadd.f32 %v5526_v45, %v7299_v16 }
 0x41c   : > { %v3767_v1 = vpop.f32.mrf.mxu1 }
 0x41d   : > { %v4815_v0 = vpack.c.bf16 %v3873_v32, %v3872_v37  ;;  %v3871_v9 = vmax.f32 %v3839_v31, 0.0  ;;  %v3768_v14 = vadd.f32 %v7299_v16, %v3767_v1  ;;  %v3844_v8 = vadd.f32 %v4745_v47, %v3776_v34 }
 0x41e   : > { %v5527_v63 = vpop.f32.mrf.mxu1 }
 0x41f   : > { %4855 = vst [vmem:[%s7311_s19 + $0x68] sm:$0xff] %v4815_v0   ;;  %v4810_v23 = vpack.c.bf16 %v3871_v9, %v3870_v10  ;;  %v3779_v52 = vadd.f32 %v5527_v63, %v7299_v16  ;;  %v3842_v56 = vadd.f32 %v4741_v51, %v3768_v14  ;;  %v3876_v26 = vmax.f32 %v3844_v8, 0.0 }
 0x420   : > { %v3770_v20 = vpop.f32.mrf.mxu1 }
 0x421   : > { %4854 = vst [vmem:[%s7311_s19 + $0x60] sm:$0xff] %v4810_v23   ;;  %v3845_v54 = vadd.f32 %v4746_v21, %v3779_v52  ;;  %v3771_v59 = vadd.f32 %v7299_v16, %v3770_v20  ;;  %v3874_v41 = vmax.f32 %v3842_v56, 0.0 }
 0x423   : > { %v3877_v49 = vmax.f32 %v3845_v54, 0.0  ;;  %v3843_v48 = vadd.f32 %v4742_v28, %v3771_v59 }
 0x425   : > { %v4825_v39 = vpack.c.bf16 %v3877_v49, %v3876_v26  ;;  %v3875_v7 = vmax.f32 %v3843_v48, 0.0 }
 0x427   : > { %4857 = vst [vmem:[%s7311_s19 + $0x78] sm:$0xff] %v4825_v39   ;;  %v4820_v16 = vpack.c.bf16 %v3875_v7, %v3874_v41 }
 0x429   : > { %4856 = vst [vmem:[%s7311_s19 + $0x70] sm:$0xff] %v4820_v16  }
 0x42a   : > { %5872 = shalt.err (!%p5869_p10)
}
 0x42b   : > { %s5873_s1 = scalar_lea.hbm %s7370_s23, 2048  ;;  %s5877_s11 = scalar_lea.hbm %s7429_s7, 4096 }
 0x42c   : > { %p5874_p7 = scmp.ne.s32.totalorder %s7370_s23, %s5873_s1  ;;  %p5878_p9 = scmp.lt.s32.totalorder %s7370_s23, %s7429_s7 }
 0x42d   : > { %p5879_p0 = scmp.lt.s32.totalorder %s5877_s11, %s5873_s1 }
 0x42e   : > { %p5875_p6 = pnand %p5874_p7, %p6110_p13 }
 0x42f   : > { %p5880_p3 = por %p5879_p0, %p5878_p9 }
 0x430   : > { %p5876_p12 = pneg %p5875_p6 }
 0x432   : > { %p5881_p1 = pnand %p5880_p3, %p5876_p12 }
 0x434   : > { %5884 = shalt.err (!%p5881_p1)
}
 0x435   : > { %s5959_s20 = smov 64   ;;  %s5960_s19 = smov 4  }
 0x436   : > { %5561 = dma.vmem_to_hbm [thread:$0]  (%p6110_p13), %s7372_s21, 2048, %s7370_s23, %s4039_s18, %s5959_s20, %s5959_s20, %s5960_s19  }
 0x437 PF: > { %s4069_s15 = sand.u32 1, %s5927_s24   ;;  %p7683_p4 = scmp.ne.s32.totalorder %s7512_s12, 0 }
 0x438   : > { %p7684_p8 = scmp.ge.s32.totalorder %s5947_s29, 2  ;;  %s4070_s30 = scalar_lea.sflag [#allocation5], %s4069_s15 }
 0x43a   : > { %p5578_p5 = pnand %p7684_p8, %p7683_p4 }
 0x43c   : > { %p5579_p11 = pneg %p5578_p5 }
 0x43e   : > { %5922 = dma.done.wait (%p5579_p11), %s4070_s30, 2048  }
 0x43f   : > { %5924 = vsyncadd (%p5579_p11), %s4070_s30, 4294965248  ;;  %s25_s29 = sadd.s32 1, %s5947_s29   ;;  %s7685_s27 = sld [smem:[#allocation16_spill]] }
 0x440   : > { %p22_p2 = scmp.ge.s32.totalorder %s25_s29, 4   ;;  %s7686_s28 = sld [smem:[#allocation17_spill]] }
 0x441   : > { %s7687_s24 = smov %s5931_s25  ;;  %s7688_s25 = smov %s5935_s26 }
 0x442   : > { %s7689_s26 = smov %s6126_s10  ;;  %24 = sbr.rel (!%p22_p2) target bundleno = 12 (0xc), region = 107 }
 0x447   :  { %4075 = vsyncpa [#allocation4], 1 }
 0x448   :  { %4077 = vsyncpa [#allocation4 + $0x1], 1 }
 0x449   :  { %4078 = vsyncpa [#allocation7], 1 }
 0x44a   :  { %4079 = vsyncpa [#allocation10], 1 }
 0x44b   :  { %4080 = vsyncpa [#allocation5], 1 }
 0x44c   :  { %4082 = vsyncpa [#allocation5 + $0x1], 1 }

</bundles_post_ra>
